<compile_context>
chip_gen: v7x
topology: tpu7x:2x2x1
jax: 0.10.0
libtpu: 0.0.40
codegen_flags: <defaults>
</compile_context>

<pallas_src>
import functools

import jax
import jax.numpy as jnp
import numpy as np
from jax.experimental import pallas as pl
from jax.experimental.pallas import tpu as pltpu

# Builtins saved because the wrapper mirrors torch.clamp's `min=` / `max=` kwargs.
_py_min = min
_py_max = max

_LANE = 128
_MAX_LANE_MULT = 32                       # cols <= 32 * 128 = 4096
_SMALL_INPUT_BYTES = 2 * 1024 * 1024      # below this, a fused XLA clip wins


@functools.lru_cache(maxsize=1)
def _tpu_generation():
    """Best-effort chip detection -> (target_block_bytes, num_tensorcores)."""
    kind = ""
    try:
        kind = (getattr(jax.devices()[0], "device_kind", "") or "").lower()
    except Exception:
        pass
    if "7" in kind:
        # v7x: ~3.2 TB/s HBM, 2 TCs/chip, 64 MiB VMEM per TC -> 8 MiB blocks
        # (double-buffered in+out = 32 MiB + headroom, well under 64 MiB).
        return 8 * 1024 * 1024, 2
    if "v6" in kind or "6e" in kind or "6 lite" in kind:
        # v6e: 1 TC, 128 MiB VMEM -> 4 MiB blocks (85%->86% roofline, free headroom).
        return 4 * 1024 * 1024, 1
    if "v5" in kind or "5 lite" in kind or "5e" in kind or "5p" in kind:
        # v5e: ~0.8 TB/s HBM, 16 MiB scoped-VMEM default -> keep 2 MiB blocks.
        return 2 * 1024 * 1024, 1
    # Unknown chip: conservative middle ground, assume single TC.
    return 4 * 1024 * 1024, 1


def _clamp_kernel(x_ref, o_ref, *, min_val, max_val):
    x = x_ref[...]
    # torch.clamp semantics: min and/or max may be omitted (None).
    # Bounds are cast to x.dtype so output dtype matches the input.
    if min_val is not None:
        x = jnp.maximum(x, jnp.asarray(min_val, dtype=x.dtype))
    if max_val is not None:
        x = jnp.minimum(x, jnp.asarray(max_val, dtype=x.dtype))
    o_ref[...] = x


def _clamp_jnp(x, min_val, max_val):
    """Fused-XLA fallback with identical dtype semantics to the kernel path."""
    y = x
    if min_val is not None:
        y = jnp.maximum(y, jnp.asarray(min_val, dtype=x.dtype))
    if max_val is not None:
        y = jnp.minimum(y, jnp.asarray(max_val, dtype=x.dtype))
    return y


def _as_static_scalar(v):
    """Return (value, is_static_python_scalar)."""
    if v is None:
        return None, True
    if isinstance(v, (bool, int, float)):
        return v, True
    if isinstance(v, np.generic) or (isinstance(v, np.ndarray) and v.ndim == 0):
        return v.item(), True
    return v, False


def clamp_pallas(x, min=None, max=None):
    """Elementwise clamp of `x`, matching torch.clamp(x, min=..., max=...)."""
    if min is None and max is None:
        # torch.clamp raises in this case; keep API fidelity.
        raise ValueError("Clamp: at least one of 'min' or 'max' must not be None")

    min_val, min_static = _as_static_scalar(min)
    max_val, max_static = _as_static_scalar(max)

    orig_shape = x.shape
    n = int(x.size)
    itemsize = jnp.dtype(x.dtype).itemsize

    # TODO(synk): traced/tensor bounds could be passed as SMEM scalar inputs;
    # for now the fused XLA path handles them (numerically identical).
    if not (min_static and max_static):
        return _clamp_jnp(x, min, max)

    # Small, empty or lane-misaligned inputs: the pallas_call launch +
    # pipeline ramp-up dominates and blocks producer/consumer fusion -> a
    # fused XLA clip is strictly better.
    if n == 0 or n % _LANE != 0 or n * itemsize < _SMALL_INPUT_BYTES:
        return _clamp_jnp(x, min_val, max_val)

    target_block_bytes, num_tc = _tpu_generation()

    # ---- choose a contiguous 2-D (rows, cols) view (no pad, no copy) --------
    m = n // _LANE
    d = 1
    for cand in range(_py_min(_MAX_LANE_MULT, m), 0, -1):
        if m % cand == 0:
            d = cand
            break
    cols = _LANE * d               # wide, lane-dense, divides n exactly
    rows = n // cols
    x2d = x.reshape(rows, cols)    # contiguous row-major reshape: no data movement

    # ---- dtype-aware row tile, ~target_block_bytes per block -----------------
    sub = _py_max(8, 32 // itemsize)          # 8 (f32) / 16 (bf16) / 32 (int8/fp8)
    row_bytes = cols * itemsize
    tile_rows = _py_max(sub, (target_block_bytes // row_bytes) // sub * sub)

    if tile_rows >= rows:
        if num_tc >= 2 and rows >= 2 * sub:
            # Only on multi-TC chips (v7x): keep >=2 grid steps so the
            # "parallel" axis can shard across both TensorCores.
            half = -(-rows // 2)
            tile_rows = -(-half // sub) * sub
        else:
            # Single-TC chips: one full-extent block, no extra pipeline step.
            tile_rows = rows

    grid_steps = pl.cdiv(rows, tile_rows)

    # Even grid parity for small grids on multi-TC chips: grid=3 leaves one
    # TensorCore idle for a third of the time; prefer grid=4.
    if num_tc >= 2 and 2 < grid_steps < 8 and grid_steps % 2 == 1:
        cand = -(-rows // (grid_steps + 1))
        cand_rows = _py_max(sub, -(-cand // sub) * sub)
        new_steps = pl.cdiv(rows, cand_rows)
        if new_steps % 2 == 0:
            tile_rows = cand_rows
            grid_steps = new_steps

    grid = (grid_steps,)
    block_bytes = tile_rows * row_bytes

    # in + out, double-buffered, plus headroom; 8 MiB blocks -> 40 MiB, still
    # comfortably under v7x's 64 MiB per-TC VMEM. Floor at 16 MiB (v5e default).
    vmem_limit = int(_py_min(48 * 1024 * 1024,
                             _py_max(16 * 1024 * 1024,
                                     4 * block_bytes + 8 * 1024 * 1024)))

    # Advisory cost: pure bandwidth op (one read + one write of the tensor).
    flops = n * (int(min_val is not None) + int(max_val is not None))
    cost = pl.CostEstimate(flops=flops, transcendentals=0,
                           bytes_accessed=2 * n * itemsize)

    kernel = functools.partial(_clamp_kernel, min_val=min_val, max_val=max_val)

    out2d = pl.pallas_call(
        kernel,
        out_shape=jax.ShapeDtypeStruct((rows, cols), x.dtype),
        grid_spec=pltpu.PrefetchScalarGridSpec(
            num_scalar_prefetch=0,
            grid=grid,
            in_specs=[pl.BlockSpec((tile_rows, cols), lambda i: (i, 0))],
            out_specs=pl.BlockSpec((tile_rows, cols), lambda i: (i, 0)),
        ),
        compiler_params=pltpu.CompilerParams(
            dimension_semantics=("parallel",),
            vmem_limit_bytes=vmem_limit,
        ),
        cost_estimate=cost,
    )(x2d)

    return out2d.reshape(orig_shape)


class ClampPallas:
    """JAX/Pallas equivalent of rlkit Clamp(nn.Module). No parameters."""

    def __init__(self, **kwargs):
        self.kwargs = kwargs
        self.__name__ = "Clamp"

    def __call__(self, x):
        return clamp_pallas(x, **self.kwargs)


if __name__ == "__main__":
    key = jax.random.PRNGKey(0)

    # Small NCHW-like input (takes the fused fast path; semantics identical).
    x_small = jax.random.normal(key, (2, 4, 16, 16), dtype=jnp.float32) * 3.0
    module = ClampPallas(min=-1.0, max=1.0)
    y_small = jax.block_until_ready(module(x_small))
    assert y_small.shape == x_small.shape and y_small.dtype == x_small.dtype
    assert jnp.allclose(y_small, jnp.clip(x_small, -1.0, 1.0)), "small clamp mismatch"

    # Larger input (4 MiB) that exercises the Pallas kernel path.
    x_big = jax.random.normal(jax.random.PRNGKey(0), (256, 4096), dtype=jnp.float32) * 3.0
    y_big = jax.block_until_ready(clamp_pallas(x_big, min=-1.0, max=1.0))
    assert y_big.shape == x_big.shape and y_big.dtype == x_big.dtype
    assert jnp.allclose(y_big, jnp.clip(x_big, -1.0, 1.0)), "kernel clamp mismatch"

    # One-sided clamp through the kernel as well.
    y_one = jax.block_until_ready(clamp_pallas(x_big, min=0.0))
    assert jnp.allclose(y_one, jnp.clip(x_big, 0.0, None)), "one-sided clamp mismatch"

    print("KERNEL_OK")
</pallas_src>

<mosaic_0001>
module attributes {stable_mosaic.version = 11 : i64} {
  func.func @_clamp_kernel(%arg0: i32, %arg1: memref<256x4096xf32, #tpu.memory_space<vmem>>, %arg2: memref<256x4096xf32, #tpu.memory_space<vmem>>) attributes {dimension_semantics = [#tpu.dimension_semantics<parallel>], iteration_bounds = array<i64: 1>, scalar_prefetch = 0 : i64, scratch_operands = 0 : i64, tpu.core_type = #tpu.core_type<tc>, window_params = [{transform_indices = @transform_0, window_bounds = array<i64: 256, 4096>}, {transform_indices = @transform_1, window_bounds = array<i64: 256, 4096>}]} {
    %c0 = arith.constant 0 : index
    %c0_0 = arith.constant 0 : index
    %0 = vector.load %arg1[%c0, %c0_0] : memref<256x4096xf32, #tpu.memory_space<vmem>>, vector<256x4096xf32>
    %cst = arith.constant -1.000000e+00 : f32
    %1 = vector.broadcast %cst : f32 to vector<256x4096xf32>
    %2 = arith.maximumf %0, %1 : vector<256x4096xf32>
    %cst_1 = arith.constant 1.000000e+00 : f32
    %3 = vector.broadcast %cst_1 : f32 to vector<256x4096xf32>
    %4 = arith.minimumf %2, %3 : vector<256x4096xf32>
    %c0_2 = arith.constant 0 : index
    %c0_3 = arith.constant 0 : index
    %5 = vector.load %arg2[%c0_2, %c0_3] : memref<256x4096xf32, #tpu.memory_space<vmem>>, vector<256x4096xf32>
    tpu.vector_store %arg2[%c0_2, %c0_3], %4 {strides = array<i32>} : memref<256x4096xf32, #tpu.memory_space<vmem>>, vector<256x4096xf32>,
    return
  }
  func.func @transform_0(%arg0: i32) -> (i32, i32) {
    %c0_i32 = arith.constant 0 : i32
    %c0_i32_0 = arith.constant 0 : i32
    return %arg0, %c0_i32 : i32, i32
  }
  func.func @transform_1(%arg0: i32) -> (i32, i32) {
    %c0_i32 = arith.constant 0 : i32
    %c0_i32_0 = arith.constant 0 : i32
    return %arg0, %c0_i32 : i32, i32
  }
}

</mosaic_0001>

<bundles_post_ra>
// kernel: tpu_custom_call.1
= control target key start
LH: loop header
LB: loop body
LE: loop exit
PB: predicated region body
PF: predicated region fallthrough
CT: control target
= control target key end

     0   :  { %6 = vsyncpa [#allocation3], 0  ;;  %s5256_s0 = inlined_call_operand.hbm [shape: f32[256,4096], index: 0, kind: input, shape index: {}]   ;;  %s5257_s1 = inlined_call_operand.hbm [shape: f32[256,4096], index: 1, kind: output, shape index: {}]  }
   0x1   :  { %7 = vsyncpa [#allocation4], 0  ;;  %s5212_s6 = smov [#allocation2]   ;;  %s5164_s10 = scalar_lea.hbm %s5256_s0, 131072 }
   0x2   :  { %s13_s7 = sshll.u32 %s5212_s6, 4  ;;  %p5165_p0 = scmp.ne.s32.totalorder %s5256_s0, %s5164_s10  ;;  %s14_s7 = int_to_ptr.vmem [resolvable:$true] %s13_s7 }
   0x3   :  { %p5168_p1 = scmp.lt.u32.totalorder %s5164_s10, %s5256_s0 }
   0x5   :  { %p5170_p2 = pnand %p5168_p1, %p5165_p0 }
   0x7   :  { %5173 = shalt.err (!%p5170_p2)
}
   0x8   :  { %s5174_s15 = scalar_lea.vmem %s14_s7, 131072  ;;  %p5179_p4 = scmp.lt.s32.totalorder %s14_s7, %s14_s7 }
   0x9   :  { %p5175_p3 = scmp.ne.s32.totalorder %s14_s7, %s5174_s15  ;;  %p5180_p5 = scmp.lt.s32.totalorder %s5174_s15, %s5174_s15 }
   0xb   :  { %p5181_p6 = por %p5180_p5, %p5179_p4 }
   0xd   :  { %p5182_p7 = pnand %p5181_p6, %p5175_p3 }
   0xf   :  { %5185 = shalt.err (!%p5182_p7)
}
  0x10   :  { %s5213_s16 = smov 4096   ;;  %s5214_s17 = smov 256  }
  0x11   :  { %19 = dma.hbm_to_vmem [thread:$0]  %s5256_s0, 131072, %s14_s7, [#allocation3], %s5213_s16, %s5213_s16, %s5214_s17  }
  0x12   :  { %5208 = dma.done.wait [#allocation3], 131072  }
  0x13   :  { %5209 = vsyncadd [#allocation3], 4294836224  ;;  %v23_v0 = vld [vmem:[#allocation2] sm:$0xff]  ;;  %v24_v1 = vld [vmem:[#allocation2 + $0x8] sm:$0xff]  ;;  %s5215_s0 = smov [#allocation5]  }
  0x14   :  { %v25_v2 = vld [vmem:[#allocation2 + $0x10] sm:$0xff]  ;;  %v4136_v3 = vclamps-f32 %v23_v0, 1.0  ;;  %v4137_v4 = vclamps-f32 %v24_v1, 1.0  ;;  %v26_v6 = vld [vmem:[#allocation2 + $0x18] sm:$0xff]  ;;  %v27_v7 = vld [vmem:[#allocation2 + $0x20] sm:$0xff]  ;;  %s4124_s20 = sshll.u32 %s5215_s0, 4  ;;  %s4125_s20 = int_to_ptr.vmem [resolvable:$true] %s4124_s20 }
  0x15   :  { %v4138_v5 = vclamps-f32 %v25_v2, 1.0  ;;  %v28_v8 = vld [vmem:[#allocation2 + $0x28] sm:$0xff]  ;;  %v4139_v9 = vclamps-f32 %v26_v6, 1.0  ;;  %v4140_v10 = vclamps-f32 %v27_v7, 1.0  ;;  %v29_v12 = vld [vmem:[#allocation2 + $0x30] sm:$0xff]  ;;  %v30_v13 = vld [vmem:[#allocation2 + $0x38] sm:$0xff]  ;;  %p5191_p9 = scmp.lt.s32.totalorder %s4125_s20, %s4125_s20 }
  0x16   :  { %v4141_v11 = vclamps-f32 %v28_v8, 1.0  ;;  %v31_v14 = vld [vmem:[#allocation2 + $0x40] sm:$0xff]  ;;  %3095 = vst [vmem:[#allocation5] sm:$0xff] %v4136_v3  ;;  %3096 = vst [vmem:[#allocation5 + $0x8] sm:$0xff] %v4137_v4  ;;  %v4142_v15 = vclamps-f32 %v29_v12, 1.0  ;;  %v4143_v16 = vclamps-f32 %v30_v13, 1.0 }
  0x17   :  { %3097 = vst [vmem:[#allocation5 + $0x10] sm:$0xff] %v4138_v5  ;;  %v4144_v17 = vclamps-f32 %v31_v14, 1.0  ;;  %v32_v18 = vld [vmem:[#allocation2 + $0x48] sm:$0xff]  ;;  %v33_v19 = vld [vmem:[#allocation2 + $0x50] sm:$0xff]  ;;  %v34_v20 = vld [vmem:[#allocation2 + $0x58] sm:$0xff]  ;;  %s5186_s21 = scalar_lea.vmem %s4125_s20, 131072 }
  0x18   :  { %3098 = vst [vmem:[#allocation5 + $0x18] sm:$0xff] %v4139_v9  ;;  %3099 = vst [vmem:[#allocation5 + $0x20] sm:$0xff] %v4140_v10  ;;  %v4145_v21 = vclamps-f32 %v32_v18, 1.0  ;;  %v4146_v22 = vclamps-f32 %v33_v19, 1.0  ;;  %v4147_v23 = vclamps-f32 %v34_v20, 1.0  ;;  %v35_v24 = vld [vmem:[#allocation2 + $0x60] sm:$0xff]  ;;  %p5187_p8 = scmp.ne.s32.totalorder %s4125_s20, %s5186_s21  ;;  %p5192_p10 = scmp.lt.s32.totalorder %s5186_s21, %s5186_s21 }
  0x19   :  { %3100 = vst [vmem:[#allocation5 + $0x28] sm:$0xff] %v4141_v11  ;;  %v36_v25 = vld [vmem:[#allocation2 + $0x68] sm:$0xff]  ;;  %v37_v26 = vld [vmem:[#allocation2 + $0x70] sm:$0xff]  ;;  %3101 = vst [vmem:[#allocation5 + $0x30] sm:$0xff] %v4142_v15  ;;  %v4148_v27 = vclamps-f32 %v35_v24, 1.0 }
  0x1a   :  { %3102 = vst [vmem:[#allocation5 + $0x38] sm:$0xff] %v4143_v16  ;;  %3103 = vst [vmem:[#allocation5 + $0x40] sm:$0xff] %v4144_v17  ;;  %v4149_v28 = vclamps-f32 %v36_v25, 1.0  ;;  %v4150_v29 = vclamps-f32 %v37_v26, 1.0  ;;  %v38_v30 = vld [vmem:[#allocation2 + $0x78] sm:$0xff]  ;;  %v39_v31 = vld [vmem:[#allocation2 + $0x80] sm:$0xff]  ;;  %p5193_p11 = por %p5192_p10, %p5191_p9 }
  0x1b   :  { %v40_v32 = vld [vmem:[#allocation2 + $0x88] sm:$0xff]  ;;  %3104 = vst [vmem:[#allocation5 + $0x48] sm:$0xff] %v4145_v21  ;;  %3105 = vst [vmem:[#allocation5 + $0x50] sm:$0xff] %v4146_v22  ;;  %v4151_v33 = vclamps-f32 %v38_v30, 1.0  ;;  %v4152_v34 = vclamps-f32 %v39_v31, 1.0  ;;  %v41_v36 = vld [vmem:[#allocation2 + $0x90] sm:$0xff] }
  0x1c   :  { %3106 = vst [vmem:[#allocation5 + $0x58] sm:$0xff] %v4147_v23  ;;  %v4153_v35 = vclamps-f32 %v40_v32, 1.0  ;;  %v42_v37 = vld [vmem:[#allocation2 + $0x98] sm:$0xff]  ;;  %v43_v38 = vld [vmem:[#allocation2 + $0xa0] sm:$0xff]  ;;  %3107 = vst [vmem:[#allocation5 + $0x60] sm:$0xff] %v4148_v27  ;;  %v4154_v39 = vclamps-f32 %v41_v36, 1.0  ;;  %p5194_p12 = pnand %p5193_p11, %p5187_p8 }
  0x1d   :  { %3108 = vst [vmem:[#allocation5 + $0x68] sm:$0xff] %v4149_v28  ;;  %3109 = vst [vmem:[#allocation5 + $0x70] sm:$0xff] %v4150_v29  ;;  %v4155_v40 = vclamps-f32 %v42_v37, 1.0  ;;  %v4156_v41 = vclamps-f32 %v43_v38, 1.0  ;;  %v44_v42 = vld [vmem:[#allocation2 + $0xa8] sm:$0xff]  ;;  %v45_v43 = vld [vmem:[#allocation2 + $0xb0] sm:$0xff] }
  0x1e   :  { %v46_v44 = vld [vmem:[#allocation2 + $0xb8] sm:$0xff]  ;;  %3110 = vst [vmem:[#allocation5 + $0x78] sm:$0xff] %v4151_v33  ;;  %3111 = vst [vmem:[#allocation5 + $0x80] sm:$0xff] %v4152_v34  ;;  %v4157_v45 = vclamps-f32 %v44_v42, 1.0  ;;  %v4158_v46 = vclamps-f32 %v45_v43, 1.0  ;;  %v47_v48 = vld [vmem:[#allocation2 + $0xc0] sm:$0xff] }
  0x1f   :  { %3112 = vst [vmem:[#allocation5 + $0x88] sm:$0xff] %v4153_v35  ;;  %v4159_v47 = vclamps-f32 %v46_v44, 1.0  ;;  %v48_v49 = vld [vmem:[#allocation2 + $0xc8] sm:$0xff]  ;;  %v49_v50 = vld [vmem:[#allocation2 + $0xd0] sm:$0xff]  ;;  %3113 = vst [vmem:[#allocation5 + $0x90] sm:$0xff] %v4154_v39  ;;  %v4160_v51 = vclamps-f32 %v47_v48, 1.0 }
  0x20   :  { %3114 = vst [vmem:[#allocation5 + $0x98] sm:$0xff] %v4155_v40  ;;  %3115 = vst [vmem:[#allocation5 + $0xa0] sm:$0xff] %v4156_v41  ;;  %v4161_v52 = vclamps-f32 %v48_v49, 1.0  ;;  %v4162_v53 = vclamps-f32 %v49_v50, 1.0  ;;  %v50_v54 = vld [vmem:[#allocation2 + $0xd8] sm:$0xff]  ;;  %v51_v55 = vld [vmem:[#allocation2 + $0xe0] sm:$0xff] }
  0x21   :  { %v52_v56 = vld [vmem:[#allocation2 + $0xe8] sm:$0xff]  ;;  %3116 = vst [vmem:[#allocation5 + $0xa8] sm:$0xff] %v4157_v45  ;;  %3117 = vst [vmem:[#allocation5 + $0xb0] sm:$0xff] %v4158_v46  ;;  %v4163_v57 = vclamps-f32 %v50_v54, 1.0  ;;  %v4164_v58 = vclamps-f32 %v51_v55, 1.0  ;;  %v53_v60 = vld [vmem:[#allocation2 + $0xf0] sm:$0xff] }
  0x22   :  { %3118 = vst [vmem:[#allocation5 + $0xb8] sm:$0xff] %v4159_v47  ;;  %v4165_v59 = vclamps-f32 %v52_v56, 1.0  ;;  %v54_v61 = vld [vmem:[#allocation2 + $0xf8] sm:$0xff]  ;;  %v55_v62 = vld [vmem:[#allocation2 + $0x100] sm:$0xff]  ;;  %3119 = vst [vmem:[#allocation5 + $0xc0] sm:$0xff] %v4160_v51  ;;  %v4166_v63 = vclamps-f32 %v53_v60, 1.0 }
  0x23   :  { %3120 = vst [vmem:[#allocation5 + $0xc8] sm:$0xff] %v4161_v52  ;;  %3121 = vst [vmem:[#allocation5 + $0xd0] sm:$0xff] %v4162_v53  ;;  %v4167_v0 = vclamps-f32 %v54_v61, 1.0  ;;  %v4168_v1 = vclamps-f32 %v55_v62, 1.0  ;;  %v56_v2 = vld [vmem:[#allocation2 + $0x108] sm:$0xff]  ;;  %v57_v3 = vld [vmem:[#allocation2 + $0x110] sm:$0xff] }
  0x24   :  { %v58_v4 = vld [vmem:[#allocation2 + $0x118] sm:$0xff]  ;;  %3122 = vst [vmem:[#allocation5 + $0xd8] sm:$0xff] %v4163_v57  ;;  %3123 = vst [vmem:[#allocation5 + $0xe0] sm:$0xff] %v4164_v58  ;;  %v4169_v5 = vclamps-f32 %v56_v2, 1.0  ;;  %v4170_v6 = vclamps-f32 %v57_v3, 1.0  ;;  %v59_v8 = vld [vmem:[#allocation2 + $0x120] sm:$0xff] }
  0x25   :  { %3124 = vst [vmem:[#allocation5 + $0xe8] sm:$0xff] %v4165_v59  ;;  %v4171_v7 = vclamps-f32 %v58_v4, 1.0  ;;  %v60_v9 = vld [vmem:[#allocation2 + $0x128] sm:$0xff]  ;;  %v61_v10 = vld [vmem:[#allocation2 + $0x130] sm:$0xff]  ;;  %3125 = vst [vmem:[#allocation5 + $0xf0] sm:$0xff] %v4166_v63  ;;  %v4172_v11 = vclamps-f32 %v59_v8, 1.0 }
  0x26   :  { %3126 = vst [vmem:[#allocation5 + $0xf8] sm:$0xff] %v4167_v0  ;;  %3127 = vst [vmem:[#allocation5 + $0x100] sm:$0xff] %v4168_v1  ;;  %v4173_v12 = vclamps-f32 %v60_v9, 1.0  ;;  %v4174_v13 = vclamps-f32 %v61_v10, 1.0  ;;  %v62_v14 = vld [vmem:[#allocation2 + $0x138] sm:$0xff]  ;;  %v63_v15 = vld [vmem:[#allocation2 + $0x140] sm:$0xff] }
  0x27   :  { %v64_v16 = vld [vmem:[#allocation2 + $0x148] sm:$0xff]  ;;  %3128 = vst [vmem:[#allocation5 + $0x108] sm:$0xff] %v4169_v5  ;;  %3129 = vst [vmem:[#allocation5 + $0x110] sm:$0xff] %v4170_v6  ;;  %v4175_v17 = vclamps-f32 %v62_v14, 1.0  ;;  %v4176_v18 = vclamps-f32 %v63_v15, 1.0  ;;  %v65_v20 = vld [vmem:[#allocation2 + $0x150] sm:$0xff] }
  0x28   :  { %3130 = vst [vmem:[#allocation5 + $0x118] sm:$0xff] %v4171_v7  ;;  %v4177_v19 = vclamps-f32 %v64_v16, 1.0  ;;  %v66_v21 = vld [vmem:[#allocation2 + $0x158] sm:$0xff]  ;;  %v67_v22 = vld [vmem:[#allocation2 + $0x160] sm:$0xff]  ;;  %3131 = vst [vmem:[#allocation5 + $0x120] sm:$0xff] %v4172_v11  ;;  %v4178_v23 = vclamps-f32 %v65_v20, 1.0 }
  0x29   :  { %3132 = vst [vmem:[#allocation5 + $0x128] sm:$0xff] %v4173_v12  ;;  %3133 = vst [vmem:[#allocation5 + $0x130] sm:$0xff] %v4174_v13  ;;  %v4179_v24 = vclamps-f32 %v66_v21, 1.0  ;;  %v4180_v25 = vclamps-f32 %v67_v22, 1.0  ;;  %v68_v26 = vld [vmem:[#allocation2 + $0x168] sm:$0xff]  ;;  %v69_v27 = vld [vmem:[#allocation2 + $0x170] sm:$0xff] }
  0x2a   :  { %v70_v28 = vld [vmem:[#allocation2 + $0x178] sm:$0xff]  ;;  %3134 = vst [vmem:[#allocation5 + $0x138] sm:$0xff] %v4175_v17  ;;  %3135 = vst [vmem:[#allocation5 + $0x140] sm:$0xff] %v4176_v18  ;;  %v4181_v29 = vclamps-f32 %v68_v26, 1.0  ;;  %v4182_v30 = vclamps-f32 %v69_v27, 1.0  ;;  %v71_v32 = vld [vmem:[#allocation2 + $0x180] sm:$0xff] }
  0x2b   :  { %3136 = vst [vmem:[#allocation5 + $0x148] sm:$0xff] %v4177_v19  ;;  %v4183_v31 = vclamps-f32 %v70_v28, 1.0  ;;  %v72_v33 = vld [vmem:[#allocation2 + $0x188] sm:$0xff]  ;;  %v73_v34 = vld [vmem:[#allocation2 + $0x190] sm:$0xff]  ;;  %3137 = vst [vmem:[#allocation5 + $0x150] sm:$0xff] %v4178_v23  ;;  %v4184_v35 = vclamps-f32 %v71_v32, 1.0 }
  0x2c   :  { %3138 = vst [vmem:[#allocation5 + $0x158] sm:$0xff] %v4179_v24  ;;  %3139 = vst [vmem:[#allocation5 + $0x160] sm:$0xff] %v4180_v25  ;;  %v4185_v36 = vclamps-f32 %v72_v33, 1.0  ;;  %v4186_v37 = vclamps-f32 %v73_v34, 1.0  ;;  %v74_v38 = vld [vmem:[#allocation2 + $0x198] sm:$0xff]  ;;  %v75_v39 = vld [vmem:[#allocation2 + $0x1a0] sm:$0xff] }
  0x2d   :  { %v76_v40 = vld [vmem:[#allocation2 + $0x1a8] sm:$0xff]  ;;  %3140 = vst [vmem:[#allocation5 + $0x168] sm:$0xff] %v4181_v29  ;;  %3141 = vst [vmem:[#allocation5 + $0x170] sm:$0xff] %v4182_v30  ;;  %v4187_v41 = vclamps-f32 %v74_v38, 1.0  ;;  %v4188_v42 = vclamps-f32 %v75_v39, 1.0  ;;  %v77_v44 = vld [vmem:[#allocation2 + $0x1b0] sm:$0xff] }
  0x2e   :  { %3142 = vst [vmem:[#allocation5 + $0x178] sm:$0xff] %v4183_v31  ;;  %v4189_v43 = vclamps-f32 %v76_v40, 1.0  ;;  %v78_v45 = vld [vmem:[#allocation2 + $0x1b8] sm:$0xff]  ;;  %v79_v46 = vld [vmem:[#allocation2 + $0x1c0] sm:$0xff]  ;;  %3143 = vst [vmem:[#allocation5 + $0x180] sm:$0xff] %v4184_v35  ;;  %v4190_v47 = vclamps-f32 %v77_v44, 1.0 }
  0x2f   :  { %3144 = vst [vmem:[#allocation5 + $0x188] sm:$0xff] %v4185_v36  ;;  %3145 = vst [vmem:[#allocation5 + $0x190] sm:$0xff] %v4186_v37  ;;  %v4191_v48 = vclamps-f32 %v78_v45, 1.0  ;;  %v4192_v49 = vclamps-f32 %v79_v46, 1.0  ;;  %v80_v50 = vld [vmem:[#allocation2 + $0x1c8] sm:$0xff]  ;;  %v81_v51 = vld [vmem:[#allocation2 + $0x1d0] sm:$0xff] }
  0x30   :  { %v82_v52 = vld [vmem:[#allocation2 + $0x1d8] sm:$0xff]  ;;  %3146 = vst [vmem:[#allocation5 + $0x198] sm:$0xff] %v4187_v41  ;;  %3147 = vst [vmem:[#allocation5 + $0x1a0] sm:$0xff] %v4188_v42  ;;  %v4193_v53 = vclamps-f32 %v80_v50, 1.0  ;;  %v4194_v54 = vclamps-f32 %v81_v51, 1.0  ;;  %v83_v56 = vld [vmem:[#allocation2 + $0x1e0] sm:$0xff] }
  0x31   :  { %3148 = vst [vmem:[#allocation5 + $0x1a8] sm:$0xff] %v4189_v43  ;;  %v4195_v55 = vclamps-f32 %v82_v52, 1.0  ;;  %v84_v57 = vld [vmem:[#allocation2 + $0x1e8] sm:$0xff]  ;;  %v85_v58 = vld [vmem:[#allocation2 + $0x1f0] sm:$0xff]  ;;  %3149 = vst [vmem:[#allocation5 + $0x1b0] sm:$0xff] %v4190_v47  ;;  %v4196_v59 = vclamps-f32 %v83_v56, 1.0 }
  0x32   :  { %3150 = vst [vmem:[#allocation5 + $0x1b8] sm:$0xff] %v4191_v48  ;;  %3151 = vst [vmem:[#allocation5 + $0x1c0] sm:$0xff] %v4192_v49  ;;  %v4197_v60 = vclamps-f32 %v84_v57, 1.0  ;;  %v4198_v61 = vclamps-f32 %v85_v58, 1.0  ;;  %v86_v62 = vld [vmem:[#allocation2 + $0x1f8] sm:$0xff]  ;;  %v87_v63 = vld [vmem:[#allocation2 + $0x200] sm:$0xff] }
  0x33   :  { %v88_v0 = vld [vmem:[#allocation2 + $0x208] sm:$0xff]  ;;  %3152 = vst [vmem:[#allocation5 + $0x1c8] sm:$0xff] %v4193_v53  ;;  %3153 = vst [vmem:[#allocation5 + $0x1d0] sm:$0xff] %v4194_v54  ;;  %v4199_v1 = vclamps-f32 %v86_v62, 1.0  ;;  %v4200_v2 = vclamps-f32 %v87_v63, 1.0  ;;  %v89_v4 = vld [vmem:[#allocation2 + $0x210] sm:$0xff] }
  0x34   :  { %3154 = vst [vmem:[#allocation5 + $0x1d8] sm:$0xff] %v4195_v55  ;;  %v4201_v3 = vclamps-f32 %v88_v0, 1.0  ;;  %v90_v5 = vld [vmem:[#allocation2 + $0x218] sm:$0xff]  ;;  %v91_v6 = vld [vmem:[#allocation2 + $0x220] sm:$0xff]  ;;  %3155 = vst [vmem:[#allocation5 + $0x1e0] sm:$0xff] %v4196_v59  ;;  %v4202_v7 = vclamps-f32 %v89_v4, 1.0 }
  0x35   :  { %3156 = vst [vmem:[#allocation5 + $0x1e8] sm:$0xff] %v4197_v60  ;;  %3157 = vst [vmem:[#allocation5 + $0x1f0] sm:$0xff] %v4198_v61  ;;  %v4203_v8 = vclamps-f32 %v90_v5, 1.0  ;;  %v4204_v9 = vclamps-f32 %v91_v6, 1.0  ;;  %v92_v10 = vld [vmem:[#allocation2 + $0x228] sm:$0xff]  ;;  %v93_v11 = vld [vmem:[#allocation2 + $0x230] sm:$0xff] }
  0x36   :  { %v94_v12 = vld [vmem:[#allocation2 + $0x238] sm:$0xff]  ;;  %3158 = vst [vmem:[#allocation5 + $0x1f8] sm:$0xff] %v4199_v1  ;;  %3159 = vst [vmem:[#allocation5 + $0x200] sm:$0xff] %v4200_v2  ;;  %v4205_v13 = vclamps-f32 %v92_v10, 1.0  ;;  %v4206_v14 = vclamps-f32 %v93_v11, 1.0  ;;  %v95_v16 = vld [vmem:[#allocation2 + $0x240] sm:$0xff] }
  0x37   :  { %3160 = vst [vmem:[#allocation5 + $0x208] sm:$0xff] %v4201_v3  ;;  %v4207_v15 = vclamps-f32 %v94_v12, 1.0  ;;  %v96_v17 = vld [vmem:[#allocation2 + $0x248] sm:$0xff]  ;;  %v97_v18 = vld [vmem:[#allocation2 + $0x250] sm:$0xff]  ;;  %3161 = vst [vmem:[#allocation5 + $0x210] sm:$0xff] %v4202_v7  ;;  %v4208_v19 = vclamps-f32 %v95_v16, 1.0 }
  0x38   :  { %3162 = vst [vmem:[#allocation5 + $0x218] sm:$0xff] %v4203_v8  ;;  %3163 = vst [vmem:[#allocation5 + $0x220] sm:$0xff] %v4204_v9  ;;  %v4209_v20 = vclamps-f32 %v96_v17, 1.0  ;;  %v4210_v21 = vclamps-f32 %v97_v18, 1.0  ;;  %v98_v22 = vld [vmem:[#allocation2 + $0x258] sm:$0xff]  ;;  %v99_v23 = vld [vmem:[#allocation2 + $0x260] sm:$0xff] }
  0x39   :  { %v100_v24 = vld [vmem:[#allocation2 + $0x268] sm:$0xff]  ;;  %3164 = vst [vmem:[#allocation5 + $0x228] sm:$0xff] %v4205_v13  ;;  %3165 = vst [vmem:[#allocation5 + $0x230] sm:$0xff] %v4206_v14  ;;  %v4211_v25 = vclamps-f32 %v98_v22, 1.0  ;;  %v4212_v26 = vclamps-f32 %v99_v23, 1.0  ;;  %v101_v28 = vld [vmem:[#allocation2 + $0x270] sm:$0xff] }
  0x3a   :  { %3166 = vst [vmem:[#allocation5 + $0x238] sm:$0xff] %v4207_v15  ;;  %v4213_v27 = vclamps-f32 %v100_v24, 1.0  ;;  %v102_v29 = vld [vmem:[#allocation2 + $0x278] sm:$0xff]  ;;  %v103_v30 = vld [vmem:[#allocation2 + $0x280] sm:$0xff]  ;;  %3167 = vst [vmem:[#allocation5 + $0x240] sm:$0xff] %v4208_v19  ;;  %v4214_v31 = vclamps-f32 %v101_v28, 1.0 }
  0x3b   :  { %3168 = vst [vmem:[#allocation5 + $0x248] sm:$0xff] %v4209_v20  ;;  %3169 = vst [vmem:[#allocation5 + $0x250] sm:$0xff] %v4210_v21  ;;  %v4215_v32 = vclamps-f32 %v102_v29, 1.0  ;;  %v4216_v33 = vclamps-f32 %v103_v30, 1.0  ;;  %v104_v34 = vld [vmem:[#allocation2 + $0x288] sm:$0xff]  ;;  %v105_v35 = vld [vmem:[#allocation2 + $0x290] sm:$0xff] }
  0x3c   :  { %v106_v36 = vld [vmem:[#allocation2 + $0x298] sm:$0xff]  ;;  %3170 = vst [vmem:[#allocation5 + $0x258] sm:$0xff] %v4211_v25  ;;  %3171 = vst [vmem:[#allocation5 + $0x260] sm:$0xff] %v4212_v26  ;;  %v4217_v37 = vclamps-f32 %v104_v34, 1.0  ;;  %v4218_v38 = vclamps-f32 %v105_v35, 1.0  ;;  %v107_v40 = vld [vmem:[#allocation2 + $0x2a0] sm:$0xff] }
  0x3d   :  { %3172 = vst [vmem:[#allocation5 + $0x268] sm:$0xff] %v4213_v27  ;;  %v4219_v39 = vclamps-f32 %v106_v36, 1.0  ;;  %v108_v41 = vld [vmem:[#allocation2 + $0x2a8] sm:$0xff]  ;;  %v109_v42 = vld [vmem:[#allocation2 + $0x2b0] sm:$0xff]  ;;  %3173 = vst [vmem:[#allocation5 + $0x270] sm:$0xff] %v4214_v31  ;;  %v4220_v43 = vclamps-f32 %v107_v40, 1.0 }
  0x3e   :  { %3174 = vst [vmem:[#allocation5 + $0x278] sm:$0xff] %v4215_v32  ;;  %3175 = vst [vmem:[#allocation5 + $0x280] sm:$0xff] %v4216_v33  ;;  %v4221_v44 = vclamps-f32 %v108_v41, 1.0  ;;  %v4222_v45 = vclamps-f32 %v109_v42, 1.0  ;;  %v110_v46 = vld [vmem:[#allocation2 + $0x2b8] sm:$0xff]  ;;  %v111_v47 = vld [vmem:[#allocation2 + $0x2c0] sm:$0xff] }
  0x3f   :  { %v112_v48 = vld [vmem:[#allocation2 + $0x2c8] sm:$0xff]  ;;  %3176 = vst [vmem:[#allocation5 + $0x288] sm:$0xff] %v4217_v37  ;;  %3177 = vst [vmem:[#allocation5 + $0x290] sm:$0xff] %v4218_v38  ;;  %v4223_v49 = vclamps-f32 %v110_v46, 1.0  ;;  %v4224_v50 = vclamps-f32 %v111_v47, 1.0  ;;  %v113_v52 = vld [vmem:[#allocation2 + $0x2d0] sm:$0xff] }
  0x40   :  { %3178 = vst [vmem:[#allocation5 + $0x298] sm:$0xff] %v4219_v39  ;;  %v4225_v51 = vclamps-f32 %v112_v48, 1.0  ;;  %v114_v53 = vld [vmem:[#allocation2 + $0x2d8] sm:$0xff]  ;;  %v115_v54 = vld [vmem:[#allocation2 + $0x2e0] sm:$0xff]  ;;  %3179 = vst [vmem:[#allocation5 + $0x2a0] sm:$0xff] %v4220_v43  ;;  %v4226_v55 = vclamps-f32 %v113_v52, 1.0 }
  0x41   :  { %3180 = vst [vmem:[#allocation5 + $0x2a8] sm:$0xff] %v4221_v44  ;;  %3181 = vst [vmem:[#allocation5 + $0x2b0] sm:$0xff] %v4222_v45  ;;  %v4227_v56 = vclamps-f32 %v114_v53, 1.0  ;;  %v4228_v57 = vclamps-f32 %v115_v54, 1.0  ;;  %v116_v58 = vld [vmem:[#allocation2 + $0x2e8] sm:$0xff]  ;;  %v117_v59 = vld [vmem:[#allocation2 + $0x2f0] sm:$0xff] }
  0x42   :  { %v118_v60 = vld [vmem:[#allocation2 + $0x2f8] sm:$0xff]  ;;  %3182 = vst [vmem:[#allocation5 + $0x2b8] sm:$0xff] %v4223_v49  ;;  %3183 = vst [vmem:[#allocation5 + $0x2c0] sm:$0xff] %v4224_v50  ;;  %v4229_v61 = vclamps-f32 %v116_v58, 1.0  ;;  %v4230_v62 = vclamps-f32 %v117_v59, 1.0  ;;  %v119_v0 = vld [vmem:[#allocation2 + $0x300] sm:$0xff] }
  0x43   :  { %3184 = vst [vmem:[#allocation5 + $0x2c8] sm:$0xff] %v4225_v51  ;;  %v4231_v63 = vclamps-f32 %v118_v60, 1.0  ;;  %v120_v1 = vld [vmem:[#allocation2 + $0x308] sm:$0xff]  ;;  %v121_v2 = vld [vmem:[#allocation2 + $0x310] sm:$0xff]  ;;  %3185 = vst [vmem:[#allocation5 + $0x2d0] sm:$0xff] %v4226_v55  ;;  %v4232_v3 = vclamps-f32 %v119_v0, 1.0 }
  0x44   :  { %3186 = vst [vmem:[#allocation5 + $0x2d8] sm:$0xff] %v4227_v56  ;;  %3187 = vst [vmem:[#allocation5 + $0x2e0] sm:$0xff] %v4228_v57  ;;  %v4233_v4 = vclamps-f32 %v120_v1, 1.0  ;;  %v4234_v5 = vclamps-f32 %v121_v2, 1.0  ;;  %v122_v6 = vld [vmem:[#allocation2 + $0x318] sm:$0xff]  ;;  %v123_v7 = vld [vmem:[#allocation2 + $0x320] sm:$0xff] }
  0x45   :  { %v124_v8 = vld [vmem:[#allocation2 + $0x328] sm:$0xff]  ;;  %3188 = vst [vmem:[#allocation5 + $0x2e8] sm:$0xff] %v4229_v61  ;;  %3189 = vst [vmem:[#allocation5 + $0x2f0] sm:$0xff] %v4230_v62  ;;  %v4235_v9 = vclamps-f32 %v122_v6, 1.0  ;;  %v4236_v10 = vclamps-f32 %v123_v7, 1.0  ;;  %v125_v12 = vld [vmem:[#allocation2 + $0x330] sm:$0xff] }
  0x46   :  { %3190 = vst [vmem:[#allocation5 + $0x2f8] sm:$0xff] %v4231_v63  ;;  %v4237_v11 = vclamps-f32 %v124_v8, 1.0  ;;  %v126_v13 = vld [vmem:[#allocation2 + $0x338] sm:$0xff]  ;;  %v127_v14 = vld [vmem:[#allocation2 + $0x340] sm:$0xff]  ;;  %3191 = vst [vmem:[#allocation5 + $0x300] sm:$0xff] %v4232_v3  ;;  %v4238_v15 = vclamps-f32 %v125_v12, 1.0 }
  0x47   :  { %3192 = vst [vmem:[#allocation5 + $0x308] sm:$0xff] %v4233_v4  ;;  %3193 = vst [vmem:[#allocation5 + $0x310] sm:$0xff] %v4234_v5  ;;  %v4239_v16 = vclamps-f32 %v126_v13, 1.0  ;;  %v4240_v17 = vclamps-f32 %v127_v14, 1.0  ;;  %v128_v18 = vld [vmem:[#allocation2 + $0x348] sm:$0xff]  ;;  %v129_v19 = vld [vmem:[#allocation2 + $0x350] sm:$0xff] }
  0x48   :  { %v130_v20 = vld [vmem:[#allocation2 + $0x358] sm:$0xff]  ;;  %3194 = vst [vmem:[#allocation5 + $0x318] sm:$0xff] %v4235_v9  ;;  %3195 = vst [vmem:[#allocation5 + $0x320] sm:$0xff] %v4236_v10  ;;  %v4241_v21 = vclamps-f32 %v128_v18, 1.0  ;;  %v4242_v22 = vclamps-f32 %v129_v19, 1.0  ;;  %v131_v24 = vld [vmem:[#allocation2 + $0x360] sm:$0xff] }
  0x49   :  { %3196 = vst [vmem:[#allocation5 + $0x328] sm:$0xff] %v4237_v11  ;;  %v4243_v23 = vclamps-f32 %v130_v20, 1.0  ;;  %v132_v25 = vld [vmem:[#allocation2 + $0x368] sm:$0xff]  ;;  %v133_v26 = vld [vmem:[#allocation2 + $0x370] sm:$0xff]  ;;  %3197 = vst [vmem:[#allocation5 + $0x330] sm:$0xff] %v4238_v15  ;;  %v4244_v27 = vclamps-f32 %v131_v24, 1.0 }
  0x4a   :  { %3198 = vst [vmem:[#allocation5 + $0x338] sm:$0xff] %v4239_v16  ;;  %3199 = vst [vmem:[#allocation5 + $0x340] sm:$0xff] %v4240_v17  ;;  %v4245_v28 = vclamps-f32 %v132_v25, 1.0  ;;  %v4246_v29 = vclamps-f32 %v133_v26, 1.0  ;;  %v134_v30 = vld [vmem:[#allocation2 + $0x378] sm:$0xff]  ;;  %v135_v31 = vld [vmem:[#allocation2 + $0x380] sm:$0xff] }
  0x4b   :  { %v136_v32 = vld [vmem:[#allocation2 + $0x388] sm:$0xff]  ;;  %3200 = vst [vmem:[#allocation5 + $0x348] sm:$0xff] %v4241_v21  ;;  %3201 = vst [vmem:[#allocation5 + $0x350] sm:$0xff] %v4242_v22  ;;  %v4247_v33 = vclamps-f32 %v134_v30, 1.0  ;;  %v4248_v34 = vclamps-f32 %v135_v31, 1.0  ;;  %v137_v36 = vld [vmem:[#allocation2 + $0x390] sm:$0xff] }
  0x4c   :  { %3202 = vst [vmem:[#allocation5 + $0x358] sm:$0xff] %v4243_v23  ;;  %v4249_v35 = vclamps-f32 %v136_v32, 1.0  ;;  %v138_v37 = vld [vmem:[#allocation2 + $0x398] sm:$0xff]  ;;  %v139_v38 = vld [vmem:[#allocation2 + $0x3a0] sm:$0xff]  ;;  %3203 = vst [vmem:[#allocation5 + $0x360] sm:$0xff] %v4244_v27  ;;  %v4250_v39 = vclamps-f32 %v137_v36, 1.0 }
  0x4d   :  { %3204 = vst [vmem:[#allocation5 + $0x368] sm:$0xff] %v4245_v28  ;;  %3205 = vst [vmem:[#allocation5 + $0x370] sm:$0xff] %v4246_v29  ;;  %v4251_v40 = vclamps-f32 %v138_v37, 1.0  ;;  %v4252_v41 = vclamps-f32 %v139_v38, 1.0  ;;  %v140_v42 = vld [vmem:[#allocation2 + $0x3a8] sm:$0xff]  ;;  %v141_v43 = vld [vmem:[#allocation2 + $0x3b0] sm:$0xff] }
  0x4e   :  { %v142_v44 = vld [vmem:[#allocation2 + $0x3b8] sm:$0xff]  ;;  %3206 = vst [vmem:[#allocation5 + $0x378] sm:$0xff] %v4247_v33  ;;  %3207 = vst [vmem:[#allocation5 + $0x380] sm:$0xff] %v4248_v34  ;;  %v4253_v45 = vclamps-f32 %v140_v42, 1.0  ;;  %v4254_v46 = vclamps-f32 %v141_v43, 1.0  ;;  %v143_v48 = vld [vmem:[#allocation2 + $0x3c0] sm:$0xff] }
  0x4f   :  { %3208 = vst [vmem:[#allocation5 + $0x388] sm:$0xff] %v4249_v35  ;;  %v4255_v47 = vclamps-f32 %v142_v44, 1.0  ;;  %v144_v49 = vld [vmem:[#allocation2 + $0x3c8] sm:$0xff]  ;;  %v145_v50 = vld [vmem:[#allocation2 + $0x3d0] sm:$0xff]  ;;  %3209 = vst [vmem:[#allocation5 + $0x390] sm:$0xff] %v4250_v39  ;;  %v4256_v51 = vclamps-f32 %v143_v48, 1.0 }
  0x50   :  { %3210 = vst [vmem:[#allocation5 + $0x398] sm:$0xff] %v4251_v40  ;;  %3211 = vst [vmem:[#allocation5 + $0x3a0] sm:$0xff] %v4252_v41  ;;  %v4257_v52 = vclamps-f32 %v144_v49, 1.0  ;;  %v4258_v53 = vclamps-f32 %v145_v50, 1.0  ;;  %v146_v54 = vld [vmem:[#allocation2 + $0x3d8] sm:$0xff]  ;;  %v147_v55 = vld [vmem:[#allocation2 + $0x3e0] sm:$0xff] }
  0x51   :  { %v148_v56 = vld [vmem:[#allocation2 + $0x3e8] sm:$0xff]  ;;  %3212 = vst [vmem:[#allocation5 + $0x3a8] sm:$0xff] %v4253_v45  ;;  %3213 = vst [vmem:[#allocation5 + $0x3b0] sm:$0xff] %v4254_v46  ;;  %v4259_v57 = vclamps-f32 %v146_v54, 1.0  ;;  %v4260_v58 = vclamps-f32 %v147_v55, 1.0  ;;  %v149_v60 = vld [vmem:[#allocation2 + $0x3f0] sm:$0xff] }
  0x52   :  { %3214 = vst [vmem:[#allocation5 + $0x3b8] sm:$0xff] %v4255_v47  ;;  %v4261_v59 = vclamps-f32 %v148_v56, 1.0  ;;  %v150_v61 = vld [vmem:[#allocation2 + $0x3f8] sm:$0xff]  ;;  %v151_v62 = vld [vmem:[#allocation2 + $0x400] sm:$0xff]  ;;  %3215 = vst [vmem:[#allocation5 + $0x3c0] sm:$0xff] %v4256_v51  ;;  %v4262_v63 = vclamps-f32 %v149_v60, 1.0 }
  0x53   :  { %3216 = vst [vmem:[#allocation5 + $0x3c8] sm:$0xff] %v4257_v52  ;;  %3217 = vst [vmem:[#allocation5 + $0x3d0] sm:$0xff] %v4258_v53  ;;  %v4263_v0 = vclamps-f32 %v150_v61, 1.0  ;;  %v4264_v1 = vclamps-f32 %v151_v62, 1.0  ;;  %v152_v2 = vld [vmem:[#allocation2 + $0x408] sm:$0xff]  ;;  %v153_v3 = vld [vmem:[#allocation2 + $0x410] sm:$0xff] }
  0x54   :  { %v154_v4 = vld [vmem:[#allocation2 + $0x418] sm:$0xff]  ;;  %3218 = vst [vmem:[#allocation5 + $0x3d8] sm:$0xff] %v4259_v57  ;;  %3219 = vst [vmem:[#allocation5 + $0x3e0] sm:$0xff] %v4260_v58  ;;  %v4265_v5 = vclamps-f32 %v152_v2, 1.0  ;;  %v4266_v6 = vclamps-f32 %v153_v3, 1.0  ;;  %v155_v8 = vld [vmem:[#allocation2 + $0x420] sm:$0xff] }
  0x55   :  { %3220 = vst [vmem:[#allocation5 + $0x3e8] sm:$0xff] %v4261_v59  ;;  %v4267_v7 = vclamps-f32 %v154_v4, 1.0  ;;  %v156_v9 = vld [vmem:[#allocation2 + $0x428] sm:$0xff]  ;;  %v157_v10 = vld [vmem:[#allocation2 + $0x430] sm:$0xff]  ;;  %3221 = vst [vmem:[#allocation5 + $0x3f0] sm:$0xff] %v4262_v63  ;;  %v4268_v11 = vclamps-f32 %v155_v8, 1.0 }
  0x56   :  { %3222 = vst [vmem:[#allocation5 + $0x3f8] sm:$0xff] %v4263_v0  ;;  %3223 = vst [vmem:[#allocation5 + $0x400] sm:$0xff] %v4264_v1  ;;  %v4269_v12 = vclamps-f32 %v156_v9, 1.0  ;;  %v4270_v13 = vclamps-f32 %v157_v10, 1.0  ;;  %v158_v14 = vld [vmem:[#allocation2 + $0x438] sm:$0xff]  ;;  %v159_v15 = vld [vmem:[#allocation2 + $0x440] sm:$0xff] }
  0x57   :  { %v160_v16 = vld [vmem:[#allocation2 + $0x448] sm:$0xff]  ;;  %3224 = vst [vmem:[#allocation5 + $0x408] sm:$0xff] %v4265_v5  ;;  %3225 = vst [vmem:[#allocation5 + $0x410] sm:$0xff] %v4266_v6  ;;  %v4271_v17 = vclamps-f32 %v158_v14, 1.0  ;;  %v4272_v18 = vclamps-f32 %v159_v15, 1.0  ;;  %v161_v20 = vld [vmem:[#allocation2 + $0x450] sm:$0xff] }
  0x58   :  { %3226 = vst [vmem:[#allocation5 + $0x418] sm:$0xff] %v4267_v7  ;;  %v4273_v19 = vclamps-f32 %v160_v16, 1.0  ;;  %v162_v21 = vld [vmem:[#allocation2 + $0x458] sm:$0xff]  ;;  %v163_v22 = vld [vmem:[#allocation2 + $0x460] sm:$0xff]  ;;  %3227 = vst [vmem:[#allocation5 + $0x420] sm:$0xff] %v4268_v11  ;;  %v4274_v23 = vclamps-f32 %v161_v20, 1.0 }
  0x59   :  { %3228 = vst [vmem:[#allocation5 + $0x428] sm:$0xff] %v4269_v12  ;;  %3229 = vst [vmem:[#allocation5 + $0x430] sm:$0xff] %v4270_v13  ;;  %v4275_v24 = vclamps-f32 %v162_v21, 1.0  ;;  %v4276_v25 = vclamps-f32 %v163_v22, 1.0  ;;  %v164_v26 = vld [vmem:[#allocation2 + $0x468] sm:$0xff]  ;;  %v165_v27 = vld [vmem:[#allocation2 + $0x470] sm:$0xff] }
  0x5a   :  { %v166_v28 = vld [vmem:[#allocation2 + $0x478] sm:$0xff]  ;;  %3230 = vst [vmem:[#allocation5 + $0x438] sm:$0xff] %v4271_v17  ;;  %3231 = vst [vmem:[#allocation5 + $0x440] sm:$0xff] %v4272_v18  ;;  %v4277_v29 = vclamps-f32 %v164_v26, 1.0  ;;  %v4278_v30 = vclamps-f32 %v165_v27, 1.0  ;;  %v167_v32 = vld [vmem:[#allocation2 + $0x480] sm:$0xff] }
  0x5b   :  { %3232 = vst [vmem:[#allocation5 + $0x448] sm:$0xff] %v4273_v19  ;;  %v4279_v31 = vclamps-f32 %v166_v28, 1.0  ;;  %v168_v33 = vld [vmem:[#allocation2 + $0x488] sm:$0xff]  ;;  %v169_v34 = vld [vmem:[#allocation2 + $0x490] sm:$0xff]  ;;  %3233 = vst [vmem:[#allocation5 + $0x450] sm:$0xff] %v4274_v23  ;;  %v4280_v35 = vclamps-f32 %v167_v32, 1.0 }
  0x5c   :  { %3234 = vst [vmem:[#allocation5 + $0x458] sm:$0xff] %v4275_v24  ;;  %3235 = vst [vmem:[#allocation5 + $0x460] sm:$0xff] %v4276_v25  ;;  %v4281_v36 = vclamps-f32 %v168_v33, 1.0  ;;  %v4282_v37 = vclamps-f32 %v169_v34, 1.0  ;;  %v170_v38 = vld [vmem:[#allocation2 + $0x498] sm:$0xff]  ;;  %v171_v39 = vld [vmem:[#allocation2 + $0x4a0] sm:$0xff] }
  0x5d   :  { %v172_v40 = vld [vmem:[#allocation2 + $0x4a8] sm:$0xff]  ;;  %3236 = vst [vmem:[#allocation5 + $0x468] sm:$0xff] %v4277_v29  ;;  %3237 = vst [vmem:[#allocation5 + $0x470] sm:$0xff] %v4278_v30  ;;  %v4283_v41 = vclamps-f32 %v170_v38, 1.0  ;;  %v4284_v42 = vclamps-f32 %v171_v39, 1.0  ;;  %v173_v44 = vld [vmem:[#allocation2 + $0x4b0] sm:$0xff] }
  0x5e   :  { %3238 = vst [vmem:[#allocation5 + $0x478] sm:$0xff] %v4279_v31  ;;  %v4285_v43 = vclamps-f32 %v172_v40, 1.0  ;;  %v174_v45 = vld [vmem:[#allocation2 + $0x4b8] sm:$0xff]  ;;  %v175_v46 = vld [vmem:[#allocation2 + $0x4c0] sm:$0xff]  ;;  %3239 = vst [vmem:[#allocation5 + $0x480] sm:$0xff] %v4280_v35  ;;  %v4286_v47 = vclamps-f32 %v173_v44, 1.0 }
  0x5f   :  { %3240 = vst [vmem:[#allocation5 + $0x488] sm:$0xff] %v4281_v36  ;;  %3241 = vst [vmem:[#allocation5 + $0x490] sm:$0xff] %v4282_v37  ;;  %v4287_v48 = vclamps-f32 %v174_v45, 1.0  ;;  %v4288_v49 = vclamps-f32 %v175_v46, 1.0  ;;  %v176_v50 = vld [vmem:[#allocation2 + $0x4c8] sm:$0xff]  ;;  %v177_v51 = vld [vmem:[#allocation2 + $0x4d0] sm:$0xff] }
  0x60   :  { %v178_v52 = vld [vmem:[#allocation2 + $0x4d8] sm:$0xff]  ;;  %3242 = vst [vmem:[#allocation5 + $0x498] sm:$0xff] %v4283_v41  ;;  %3243 = vst [vmem:[#allocation5 + $0x4a0] sm:$0xff] %v4284_v42  ;;  %v4289_v53 = vclamps-f32 %v176_v50, 1.0  ;;  %v4290_v54 = vclamps-f32 %v177_v51, 1.0  ;;  %v179_v56 = vld [vmem:[#allocation2 + $0x4e0] sm:$0xff] }
  0x61   :  { %3244 = vst [vmem:[#allocation5 + $0x4a8] sm:$0xff] %v4285_v43  ;;  %v4291_v55 = vclamps-f32 %v178_v52, 1.0  ;;  %v180_v57 = vld [vmem:[#allocation2 + $0x4e8] sm:$0xff]  ;;  %v181_v58 = vld [vmem:[#allocation2 + $0x4f0] sm:$0xff]  ;;  %3245 = vst [vmem:[#allocation5 + $0x4b0] sm:$0xff] %v4286_v47  ;;  %v4292_v59 = vclamps-f32 %v179_v56, 1.0 }
  0x62   :  { %3246 = vst [vmem:[#allocation5 + $0x4b8] sm:$0xff] %v4287_v48  ;;  %3247 = vst [vmem:[#allocation5 + $0x4c0] sm:$0xff] %v4288_v49  ;;  %v4293_v60 = vclamps-f32 %v180_v57, 1.0  ;;  %v4294_v61 = vclamps-f32 %v181_v58, 1.0  ;;  %v182_v62 = vld [vmem:[#allocation2 + $0x4f8] sm:$0xff]  ;;  %v183_v63 = vld [vmem:[#allocation2 + $0x500] sm:$0xff] }
  0x63   :  { %v184_v0 = vld [vmem:[#allocation2 + $0x508] sm:$0xff]  ;;  %3248 = vst [vmem:[#allocation5 + $0x4c8] sm:$0xff] %v4289_v53  ;;  %3249 = vst [vmem:[#allocation5 + $0x4d0] sm:$0xff] %v4290_v54  ;;  %v4295_v1 = vclamps-f32 %v182_v62, 1.0  ;;  %v4296_v2 = vclamps-f32 %v183_v63, 1.0  ;;  %v185_v4 = vld [vmem:[#allocation2 + $0x510] sm:$0xff] }
  0x64   :  { %3250 = vst [vmem:[#allocation5 + $0x4d8] sm:$0xff] %v4291_v55  ;;  %v4297_v3 = vclamps-f32 %v184_v0, 1.0  ;;  %v186_v5 = vld [vmem:[#allocation2 + $0x518] sm:$0xff]  ;;  %v187_v6 = vld [vmem:[#allocation2 + $0x520] sm:$0xff]  ;;  %3251 = vst [vmem:[#allocation5 + $0x4e0] sm:$0xff] %v4292_v59  ;;  %v4298_v7 = vclamps-f32 %v185_v4, 1.0 }
  0x65   :  { %3252 = vst [vmem:[#allocation5 + $0x4e8] sm:$0xff] %v4293_v60  ;;  %3253 = vst [vmem:[#allocation5 + $0x4f0] sm:$0xff] %v4294_v61  ;;  %v4299_v8 = vclamps-f32 %v186_v5, 1.0  ;;  %v4300_v9 = vclamps-f32 %v187_v6, 1.0  ;;  %v188_v10 = vld [vmem:[#allocation2 + $0x528] sm:$0xff]  ;;  %v189_v11 = vld [vmem:[#allocation2 + $0x530] sm:$0xff] }
  0x66   :  { %v190_v12 = vld [vmem:[#allocation2 + $0x538] sm:$0xff]  ;;  %3254 = vst [vmem:[#allocation5 + $0x4f8] sm:$0xff] %v4295_v1  ;;  %3255 = vst [vmem:[#allocation5 + $0x500] sm:$0xff] %v4296_v2  ;;  %v4301_v13 = vclamps-f32 %v188_v10, 1.0  ;;  %v4302_v14 = vclamps-f32 %v189_v11, 1.0  ;;  %v191_v16 = vld [vmem:[#allocation2 + $0x540] sm:$0xff] }
  0x67   :  { %3256 = vst [vmem:[#allocation5 + $0x508] sm:$0xff] %v4297_v3  ;;  %v4303_v15 = vclamps-f32 %v190_v12, 1.0  ;;  %v192_v17 = vld [vmem:[#allocation2 + $0x548] sm:$0xff]  ;;  %v193_v18 = vld [vmem:[#allocation2 + $0x550] sm:$0xff]  ;;  %3257 = vst [vmem:[#allocation5 + $0x510] sm:$0xff] %v4298_v7  ;;  %v4304_v19 = vclamps-f32 %v191_v16, 1.0 }
  0x68   :  { %3258 = vst [vmem:[#allocation5 + $0x518] sm:$0xff] %v4299_v8  ;;  %3259 = vst [vmem:[#allocation5 + $0x520] sm:$0xff] %v4300_v9  ;;  %v4305_v20 = vclamps-f32 %v192_v17, 1.0  ;;  %v4306_v21 = vclamps-f32 %v193_v18, 1.0  ;;  %v194_v22 = vld [vmem:[#allocation2 + $0x558] sm:$0xff]  ;;  %v195_v23 = vld [vmem:[#allocation2 + $0x560] sm:$0xff] }
  0x69   :  { %v196_v24 = vld [vmem:[#allocation2 + $0x568] sm:$0xff]  ;;  %3260 = vst [vmem:[#allocation5 + $0x528] sm:$0xff] %v4301_v13  ;;  %3261 = vst [vmem:[#allocation5 + $0x530] sm:$0xff] %v4302_v14  ;;  %v4307_v25 = vclamps-f32 %v194_v22, 1.0  ;;  %v4308_v26 = vclamps-f32 %v195_v23, 1.0  ;;  %v197_v28 = vld [vmem:[#allocation2 + $0x570] sm:$0xff] }
  0x6a   :  { %3262 = vst [vmem:[#allocation5 + $0x538] sm:$0xff] %v4303_v15  ;;  %v4309_v27 = vclamps-f32 %v196_v24, 1.0  ;;  %v198_v29 = vld [vmem:[#allocation2 + $0x578] sm:$0xff]  ;;  %v199_v30 = vld [vmem:[#allocation2 + $0x580] sm:$0xff]  ;;  %3263 = vst [vmem:[#allocation5 + $0x540] sm:$0xff] %v4304_v19  ;;  %v4310_v31 = vclamps-f32 %v197_v28, 1.0 }
  0x6b   :  { %3264 = vst [vmem:[#allocation5 + $0x548] sm:$0xff] %v4305_v20  ;;  %3265 = vst [vmem:[#allocation5 + $0x550] sm:$0xff] %v4306_v21  ;;  %v4311_v32 = vclamps-f32 %v198_v29, 1.0  ;;  %v4312_v33 = vclamps-f32 %v199_v30, 1.0  ;;  %v200_v34 = vld [vmem:[#allocation2 + $0x588] sm:$0xff]  ;;  %v201_v35 = vld [vmem:[#allocation2 + $0x590] sm:$0xff] }
  0x6c   :  { %v202_v36 = vld [vmem:[#allocation2 + $0x598] sm:$0xff]  ;;  %3266 = vst [vmem:[#allocation5 + $0x558] sm:$0xff] %v4307_v25  ;;  %3267 = vst [vmem:[#allocation5 + $0x560] sm:$0xff] %v4308_v26  ;;  %v4313_v37 = vclamps-f32 %v200_v34, 1.0  ;;  %v4314_v38 = vclamps-f32 %v201_v35, 1.0  ;;  %v203_v40 = vld [vmem:[#allocation2 + $0x5a0] sm:$0xff] }
  0x6d   :  { %3268 = vst [vmem:[#allocation5 + $0x568] sm:$0xff] %v4309_v27  ;;  %v4315_v39 = vclamps-f32 %v202_v36, 1.0  ;;  %v204_v41 = vld [vmem:[#allocation2 + $0x5a8] sm:$0xff]  ;;  %v205_v42 = vld [vmem:[#allocation2 + $0x5b0] sm:$0xff]  ;;  %3269 = vst [vmem:[#allocation5 + $0x570] sm:$0xff] %v4310_v31  ;;  %v4316_v43 = vclamps-f32 %v203_v40, 1.0 }
  0x6e   :  { %3270 = vst [vmem:[#allocation5 + $0x578] sm:$0xff] %v4311_v32  ;;  %3271 = vst [vmem:[#allocation5 + $0x580] sm:$0xff] %v4312_v33  ;;  %v4317_v44 = vclamps-f32 %v204_v41, 1.0  ;;  %v4318_v45 = vclamps-f32 %v205_v42, 1.0  ;;  %v206_v46 = vld [vmem:[#allocation2 + $0x5b8] sm:$0xff]  ;;  %v207_v47 = vld [vmem:[#allocation2 + $0x5c0] sm:$0xff] }
  0x6f   :  { %v208_v48 = vld [vmem:[#allocation2 + $0x5c8] sm:$0xff]  ;;  %3272 = vst [vmem:[#allocation5 + $0x588] sm:$0xff] %v4313_v37  ;;  %3273 = vst [vmem:[#allocation5 + $0x590] sm:$0xff] %v4314_v38  ;;  %v4319_v49 = vclamps-f32 %v206_v46, 1.0  ;;  %v4320_v50 = vclamps-f32 %v207_v47, 1.0  ;;  %v209_v52 = vld [vmem:[#allocation2 + $0x5d0] sm:$0xff] }
  0x70   :  { %3274 = vst [vmem:[#allocation5 + $0x598] sm:$0xff] %v4315_v39  ;;  %v4321_v51 = vclamps-f32 %v208_v48, 1.0  ;;  %v210_v53 = vld [vmem:[#allocation2 + $0x5d8] sm:$0xff]  ;;  %v211_v54 = vld [vmem:[#allocation2 + $0x5e0] sm:$0xff]  ;;  %3275 = vst [vmem:[#allocation5 + $0x5a0] sm:$0xff] %v4316_v43  ;;  %v4322_v55 = vclamps-f32 %v209_v52, 1.0 }
  0x71   :  { %3276 = vst [vmem:[#allocation5 + $0x5a8] sm:$0xff] %v4317_v44  ;;  %3277 = vst [vmem:[#allocation5 + $0x5b0] sm:$0xff] %v4318_v45  ;;  %v4323_v56 = vclamps-f32 %v210_v53, 1.0  ;;  %v4324_v57 = vclamps-f32 %v211_v54, 1.0  ;;  %v212_v58 = vld [vmem:[#allocation2 + $0x5e8] sm:$0xff]  ;;  %v213_v59 = vld [vmem:[#allocation2 + $0x5f0] sm:$0xff] }
  0x72   :  { %v214_v60 = vld [vmem:[#allocation2 + $0x5f8] sm:$0xff]  ;;  %3278 = vst [vmem:[#allocation5 + $0x5b8] sm:$0xff] %v4319_v49  ;;  %3279 = vst [vmem:[#allocation5 + $0x5c0] sm:$0xff] %v4320_v50  ;;  %v4325_v61 = vclamps-f32 %v212_v58, 1.0  ;;  %v4326_v62 = vclamps-f32 %v213_v59, 1.0  ;;  %v215_v0 = vld [vmem:[#allocation2 + $0x600] sm:$0xff] }
  0x73   :  { %3280 = vst [vmem:[#allocation5 + $0x5c8] sm:$0xff] %v4321_v51  ;;  %v4327_v63 = vclamps-f32 %v214_v60, 1.0  ;;  %v216_v1 = vld [vmem:[#allocation2 + $0x608] sm:$0xff]  ;;  %v217_v2 = vld [vmem:[#allocation2 + $0x610] sm:$0xff]  ;;  %3281 = vst [vmem:[#allocation5 + $0x5d0] sm:$0xff] %v4322_v55  ;;  %v4328_v3 = vclamps-f32 %v215_v0, 1.0 }
  0x74   :  { %3282 = vst [vmem:[#allocation5 + $0x5d8] sm:$0xff] %v4323_v56  ;;  %3283 = vst [vmem:[#allocation5 + $0x5e0] sm:$0xff] %v4324_v57  ;;  %v4329_v4 = vclamps-f32 %v216_v1, 1.0  ;;  %v4330_v5 = vclamps-f32 %v217_v2, 1.0  ;;  %v218_v6 = vld [vmem:[#allocation2 + $0x618] sm:$0xff]  ;;  %v219_v7 = vld [vmem:[#allocation2 + $0x620] sm:$0xff] }
  0x75   :  { %v220_v8 = vld [vmem:[#allocation2 + $0x628] sm:$0xff]  ;;  %3284 = vst [vmem:[#allocation5 + $0x5e8] sm:$0xff] %v4325_v61  ;;  %3285 = vst [vmem:[#allocation5 + $0x5f0] sm:$0xff] %v4326_v62  ;;  %v4331_v9 = vclamps-f32 %v218_v6, 1.0  ;;  %v4332_v10 = vclamps-f32 %v219_v7, 1.0  ;;  %v221_v12 = vld [vmem:[#allocation2 + $0x630] sm:$0xff] }
  0x76   :  { %3286 = vst [vmem:[#allocation5 + $0x5f8] sm:$0xff] %v4327_v63  ;;  %v4333_v11 = vclamps-f32 %v220_v8, 1.0  ;;  %v222_v13 = vld [vmem:[#allocation2 + $0x638] sm:$0xff]  ;;  %v223_v14 = vld [vmem:[#allocation2 + $0x640] sm:$0xff]  ;;  %3287 = vst [vmem:[#allocation5 + $0x600] sm:$0xff] %v4328_v3  ;;  %v4334_v15 = vclamps-f32 %v221_v12, 1.0 }
  0x77   :  { %3288 = vst [vmem:[#allocation5 + $0x608] sm:$0xff] %v4329_v4  ;;  %3289 = vst [vmem:[#allocation5 + $0x610] sm:$0xff] %v4330_v5  ;;  %v4335_v16 = vclamps-f32 %v222_v13, 1.0  ;;  %v4336_v17 = vclamps-f32 %v223_v14, 1.0  ;;  %v224_v18 = vld [vmem:[#allocation2 + $0x648] sm:$0xff]  ;;  %v225_v19 = vld [vmem:[#allocation2 + $0x650] sm:$0xff] }
  0x78   :  { %v226_v20 = vld [vmem:[#allocation2 + $0x658] sm:$0xff]  ;;  %3290 = vst [vmem:[#allocation5 + $0x618] sm:$0xff] %v4331_v9  ;;  %3291 = vst [vmem:[#allocation5 + $0x620] sm:$0xff] %v4332_v10  ;;  %v4337_v21 = vclamps-f32 %v224_v18, 1.0  ;;  %v4338_v22 = vclamps-f32 %v225_v19, 1.0  ;;  %v227_v24 = vld [vmem:[#allocation2 + $0x660] sm:$0xff] }
  0x79   :  { %3292 = vst [vmem:[#allocation5 + $0x628] sm:$0xff] %v4333_v11  ;;  %v4339_v23 = vclamps-f32 %v226_v20, 1.0  ;;  %v228_v25 = vld [vmem:[#allocation2 + $0x668] sm:$0xff]  ;;  %v229_v26 = vld [vmem:[#allocation2 + $0x670] sm:$0xff]  ;;  %3293 = vst [vmem:[#allocation5 + $0x630] sm:$0xff] %v4334_v15  ;;  %v4340_v27 = vclamps-f32 %v227_v24, 1.0 }
  0x7a   :  { %3294 = vst [vmem:[#allocation5 + $0x638] sm:$0xff] %v4335_v16  ;;  %3295 = vst [vmem:[#allocation5 + $0x640] sm:$0xff] %v4336_v17  ;;  %v4341_v28 = vclamps-f32 %v228_v25, 1.0  ;;  %v4342_v29 = vclamps-f32 %v229_v26, 1.0  ;;  %v230_v30 = vld [vmem:[#allocation2 + $0x678] sm:$0xff]  ;;  %v231_v31 = vld [vmem:[#allocation2 + $0x680] sm:$0xff] }
  0x7b   :  { %v232_v32 = vld [vmem:[#allocation2 + $0x688] sm:$0xff]  ;;  %3296 = vst [vmem:[#allocation5 + $0x648] sm:$0xff] %v4337_v21  ;;  %3297 = vst [vmem:[#allocation5 + $0x650] sm:$0xff] %v4338_v22  ;;  %v4343_v33 = vclamps-f32 %v230_v30, 1.0  ;;  %v4344_v34 = vclamps-f32 %v231_v31, 1.0  ;;  %v233_v36 = vld [vmem:[#allocation2 + $0x690] sm:$0xff] }
  0x7c   :  { %3298 = vst [vmem:[#allocation5 + $0x658] sm:$0xff] %v4339_v23  ;;  %v4345_v35 = vclamps-f32 %v232_v32, 1.0  ;;  %v234_v37 = vld [vmem:[#allocation2 + $0x698] sm:$0xff]  ;;  %v235_v38 = vld [vmem:[#allocation2 + $0x6a0] sm:$0xff]  ;;  %3299 = vst [vmem:[#allocation5 + $0x660] sm:$0xff] %v4340_v27  ;;  %v4346_v39 = vclamps-f32 %v233_v36, 1.0 }
  0x7d   :  { %3300 = vst [vmem:[#allocation5 + $0x668] sm:$0xff] %v4341_v28  ;;  %3301 = vst [vmem:[#allocation5 + $0x670] sm:$0xff] %v4342_v29  ;;  %v4347_v40 = vclamps-f32 %v234_v37, 1.0  ;;  %v4348_v41 = vclamps-f32 %v235_v38, 1.0  ;;  %v236_v42 = vld [vmem:[#allocation2 + $0x6a8] sm:$0xff]  ;;  %v237_v43 = vld [vmem:[#allocation2 + $0x6b0] sm:$0xff] }
  0x7e   :  { %v238_v44 = vld [vmem:[#allocation2 + $0x6b8] sm:$0xff]  ;;  %3302 = vst [vmem:[#allocation5 + $0x678] sm:$0xff] %v4343_v33  ;;  %3303 = vst [vmem:[#allocation5 + $0x680] sm:$0xff] %v4344_v34  ;;  %v4349_v45 = vclamps-f32 %v236_v42, 1.0  ;;  %v4350_v46 = vclamps-f32 %v237_v43, 1.0  ;;  %v239_v48 = vld [vmem:[#allocation2 + $0x6c0] sm:$0xff] }
  0x7f   :  { %3304 = vst [vmem:[#allocation5 + $0x688] sm:$0xff] %v4345_v35  ;;  %v4351_v47 = vclamps-f32 %v238_v44, 1.0  ;;  %v240_v49 = vld [vmem:[#allocation2 + $0x6c8] sm:$0xff]  ;;  %v241_v50 = vld [vmem:[#allocation2 + $0x6d0] sm:$0xff]  ;;  %3305 = vst [vmem:[#allocation5 + $0x690] sm:$0xff] %v4346_v39  ;;  %v4352_v51 = vclamps-f32 %v239_v48, 1.0 }
  0x80   :  { %3306 = vst [vmem:[#allocation5 + $0x698] sm:$0xff] %v4347_v40  ;;  %3307 = vst [vmem:[#allocation5 + $0x6a0] sm:$0xff] %v4348_v41  ;;  %v4353_v52 = vclamps-f32 %v240_v49, 1.0  ;;  %v4354_v53 = vclamps-f32 %v241_v50, 1.0  ;;  %v242_v54 = vld [vmem:[#allocation2 + $0x6d8] sm:$0xff]  ;;  %v243_v55 = vld [vmem:[#allocation2 + $0x6e0] sm:$0xff] }
  0x81   :  { %v244_v56 = vld [vmem:[#allocation2 + $0x6e8] sm:$0xff]  ;;  %3308 = vst [vmem:[#allocation5 + $0x6a8] sm:$0xff] %v4349_v45  ;;  %3309 = vst [vmem:[#allocation5 + $0x6b0] sm:$0xff] %v4350_v46  ;;  %v4355_v57 = vclamps-f32 %v242_v54, 1.0  ;;  %v4356_v58 = vclamps-f32 %v243_v55, 1.0  ;;  %v245_v60 = vld [vmem:[#allocation2 + $0x6f0] sm:$0xff] }
  0x82   :  { %3310 = vst [vmem:[#allocation5 + $0x6b8] sm:$0xff] %v4351_v47  ;;  %v4357_v59 = vclamps-f32 %v244_v56, 1.0  ;;  %v246_v61 = vld [vmem:[#allocation2 + $0x6f8] sm:$0xff]  ;;  %v247_v62 = vld [vmem:[#allocation2 + $0x700] sm:$0xff]  ;;  %3311 = vst [vmem:[#allocation5 + $0x6c0] sm:$0xff] %v4352_v51  ;;  %v4358_v63 = vclamps-f32 %v245_v60, 1.0 }
  0x83   :  { %3312 = vst [vmem:[#allocation5 + $0x6c8] sm:$0xff] %v4353_v52  ;;  %3313 = vst [vmem:[#allocation5 + $0x6d0] sm:$0xff] %v4354_v53  ;;  %v4359_v0 = vclamps-f32 %v246_v61, 1.0  ;;  %v4360_v1 = vclamps-f32 %v247_v62, 1.0  ;;  %v248_v2 = vld [vmem:[#allocation2 + $0x708] sm:$0xff]  ;;  %v249_v3 = vld [vmem:[#allocation2 + $0x710] sm:$0xff] }
  0x84   :  { %v250_v4 = vld [vmem:[#allocation2 + $0x718] sm:$0xff]  ;;  %3314 = vst [vmem:[#allocation5 + $0x6d8] sm:$0xff] %v4355_v57  ;;  %3315 = vst [vmem:[#allocation5 + $0x6e0] sm:$0xff] %v4356_v58  ;;  %v4361_v5 = vclamps-f32 %v248_v2, 1.0  ;;  %v4362_v6 = vclamps-f32 %v249_v3, 1.0  ;;  %v251_v8 = vld [vmem:[#allocation2 + $0x720] sm:$0xff] }
  0x85   :  { %3316 = vst [vmem:[#allocation5 + $0x6e8] sm:$0xff] %v4357_v59  ;;  %v4363_v7 = vclamps-f32 %v250_v4, 1.0  ;;  %v252_v9 = vld [vmem:[#allocation2 + $0x728] sm:$0xff]  ;;  %v253_v10 = vld [vmem:[#allocation2 + $0x730] sm:$0xff]  ;;  %3317 = vst [vmem:[#allocation5 + $0x6f0] sm:$0xff] %v4358_v63  ;;  %v4364_v11 = vclamps-f32 %v251_v8, 1.0 }
  0x86   :  { %3318 = vst [vmem:[#allocation5 + $0x6f8] sm:$0xff] %v4359_v0  ;;  %3319 = vst [vmem:[#allocation5 + $0x700] sm:$0xff] %v4360_v1  ;;  %v4365_v12 = vclamps-f32 %v252_v9, 1.0  ;;  %v4366_v13 = vclamps-f32 %v253_v10, 1.0  ;;  %v254_v14 = vld [vmem:[#allocation2 + $0x738] sm:$0xff]  ;;  %v255_v15 = vld [vmem:[#allocation2 + $0x740] sm:$0xff] }
  0x87   :  { %v256_v16 = vld [vmem:[#allocation2 + $0x748] sm:$0xff]  ;;  %3320 = vst [vmem:[#allocation5 + $0x708] sm:$0xff] %v4361_v5  ;;  %3321 = vst [vmem:[#allocation5 + $0x710] sm:$0xff] %v4362_v6  ;;  %v4367_v17 = vclamps-f32 %v254_v14, 1.0  ;;  %v4368_v18 = vclamps-f32 %v255_v15, 1.0  ;;  %v257_v20 = vld [vmem:[#allocation2 + $0x750] sm:$0xff] }
  0x88   :  { %3322 = vst [vmem:[#allocation5 + $0x718] sm:$0xff] %v4363_v7  ;;  %v4369_v19 = vclamps-f32 %v256_v16, 1.0  ;;  %v258_v21 = vld [vmem:[#allocation2 + $0x758] sm:$0xff]  ;;  %v259_v22 = vld [vmem:[#allocation2 + $0x760] sm:$0xff]  ;;  %3323 = vst [vmem:[#allocation5 + $0x720] sm:$0xff] %v4364_v11  ;;  %v4370_v23 = vclamps-f32 %v257_v20, 1.0 }
  0x89   :  { %3324 = vst [vmem:[#allocation5 + $0x728] sm:$0xff] %v4365_v12  ;;  %3325 = vst [vmem:[#allocation5 + $0x730] sm:$0xff] %v4366_v13  ;;  %v4371_v24 = vclamps-f32 %v258_v21, 1.0  ;;  %v4372_v25 = vclamps-f32 %v259_v22, 1.0  ;;  %v260_v26 = vld [vmem:[#allocation2 + $0x768] sm:$0xff]  ;;  %v261_v27 = vld [vmem:[#allocation2 + $0x770] sm:$0xff] }
  0x8a   :  { %v262_v28 = vld [vmem:[#allocation2 + $0x778] sm:$0xff]  ;;  %3326 = vst [vmem:[#allocation5 + $0x738] sm:$0xff] %v4367_v17  ;;  %3327 = vst [vmem:[#allocation5 + $0x740] sm:$0xff] %v4368_v18  ;;  %v4373_v29 = vclamps-f32 %v260_v26, 1.0  ;;  %v4374_v30 = vclamps-f32 %v261_v27, 1.0  ;;  %v263_v32 = vld [vmem:[#allocation2 + $0x780] sm:$0xff] }
  0x8b   :  { %3328 = vst [vmem:[#allocation5 + $0x748] sm:$0xff] %v4369_v19  ;;  %v4375_v31 = vclamps-f32 %v262_v28, 1.0  ;;  %v264_v33 = vld [vmem:[#allocation2 + $0x788] sm:$0xff]  ;;  %v265_v34 = vld [vmem:[#allocation2 + $0x790] sm:$0xff]  ;;  %3329 = vst [vmem:[#allocation5 + $0x750] sm:$0xff] %v4370_v23  ;;  %v4376_v35 = vclamps-f32 %v263_v32, 1.0 }
  0x8c   :  { %3330 = vst [vmem:[#allocation5 + $0x758] sm:$0xff] %v4371_v24  ;;  %3331 = vst [vmem:[#allocation5 + $0x760] sm:$0xff] %v4372_v25  ;;  %v4377_v36 = vclamps-f32 %v264_v33, 1.0  ;;  %v4378_v37 = vclamps-f32 %v265_v34, 1.0  ;;  %v266_v38 = vld [vmem:[#allocation2 + $0x798] sm:$0xff]  ;;  %v267_v39 = vld [vmem:[#allocation2 + $0x7a0] sm:$0xff] }
  0x8d   :  { %v268_v40 = vld [vmem:[#allocation2 + $0x7a8] sm:$0xff]  ;;  %3332 = vst [vmem:[#allocation5 + $0x768] sm:$0xff] %v4373_v29  ;;  %3333 = vst [vmem:[#allocation5 + $0x770] sm:$0xff] %v4374_v30  ;;  %v4379_v41 = vclamps-f32 %v266_v38, 1.0  ;;  %v4380_v42 = vclamps-f32 %v267_v39, 1.0  ;;  %v269_v44 = vld [vmem:[#allocation2 + $0x7b0] sm:$0xff] }
  0x8e   :  { %3334 = vst [vmem:[#allocation5 + $0x778] sm:$0xff] %v4375_v31  ;;  %v4381_v43 = vclamps-f32 %v268_v40, 1.0  ;;  %v270_v45 = vld [vmem:[#allocation2 + $0x7b8] sm:$0xff]  ;;  %v271_v46 = vld [vmem:[#allocation2 + $0x7c0] sm:$0xff]  ;;  %3335 = vst [vmem:[#allocation5 + $0x780] sm:$0xff] %v4376_v35  ;;  %v4382_v47 = vclamps-f32 %v269_v44, 1.0 }
  0x8f   :  { %3336 = vst [vmem:[#allocation5 + $0x788] sm:$0xff] %v4377_v36  ;;  %3337 = vst [vmem:[#allocation5 + $0x790] sm:$0xff] %v4378_v37  ;;  %v4383_v48 = vclamps-f32 %v270_v45, 1.0  ;;  %v4384_v49 = vclamps-f32 %v271_v46, 1.0  ;;  %v272_v50 = vld [vmem:[#allocation2 + $0x7c8] sm:$0xff]  ;;  %v273_v51 = vld [vmem:[#allocation2 + $0x7d0] sm:$0xff] }
  0x90   :  { %v274_v52 = vld [vmem:[#allocation2 + $0x7d8] sm:$0xff]  ;;  %3338 = vst [vmem:[#allocation5 + $0x798] sm:$0xff] %v4379_v41  ;;  %3339 = vst [vmem:[#allocation5 + $0x7a0] sm:$0xff] %v4380_v42  ;;  %v4385_v53 = vclamps-f32 %v272_v50, 1.0  ;;  %v4386_v54 = vclamps-f32 %v273_v51, 1.0  ;;  %v275_v56 = vld [vmem:[#allocation2 + $0x7e0] sm:$0xff] }
  0x91   :  { %3340 = vst [vmem:[#allocation5 + $0x7a8] sm:$0xff] %v4381_v43  ;;  %v4387_v55 = vclamps-f32 %v274_v52, 1.0  ;;  %v276_v57 = vld [vmem:[#allocation2 + $0x7e8] sm:$0xff]  ;;  %v277_v58 = vld [vmem:[#allocation2 + $0x7f0] sm:$0xff]  ;;  %3341 = vst [vmem:[#allocation5 + $0x7b0] sm:$0xff] %v4382_v47  ;;  %v4388_v59 = vclamps-f32 %v275_v56, 1.0 }
  0x92   :  { %3342 = vst [vmem:[#allocation5 + $0x7b8] sm:$0xff] %v4383_v48  ;;  %3343 = vst [vmem:[#allocation5 + $0x7c0] sm:$0xff] %v4384_v49  ;;  %v4389_v60 = vclamps-f32 %v276_v57, 1.0  ;;  %v4390_v61 = vclamps-f32 %v277_v58, 1.0  ;;  %v278_v62 = vld [vmem:[#allocation2 + $0x7f8] sm:$0xff]  ;;  %v279_v63 = vld [vmem:[#allocation2 + $0x800] sm:$0xff] }
  0x93   :  { %v280_v0 = vld [vmem:[#allocation2 + $0x808] sm:$0xff]  ;;  %3344 = vst [vmem:[#allocation5 + $0x7c8] sm:$0xff] %v4385_v53  ;;  %3345 = vst [vmem:[#allocation5 + $0x7d0] sm:$0xff] %v4386_v54  ;;  %v4391_v1 = vclamps-f32 %v278_v62, 1.0  ;;  %v4392_v2 = vclamps-f32 %v279_v63, 1.0  ;;  %v281_v4 = vld [vmem:[#allocation2 + $0x810] sm:$0xff] }
  0x94   :  { %3346 = vst [vmem:[#allocation5 + $0x7d8] sm:$0xff] %v4387_v55  ;;  %v4393_v3 = vclamps-f32 %v280_v0, 1.0  ;;  %v282_v5 = vld [vmem:[#allocation2 + $0x818] sm:$0xff]  ;;  %v283_v6 = vld [vmem:[#allocation2 + $0x820] sm:$0xff]  ;;  %3347 = vst [vmem:[#allocation5 + $0x7e0] sm:$0xff] %v4388_v59  ;;  %v4394_v7 = vclamps-f32 %v281_v4, 1.0 }
  0x95   :  { %3348 = vst [vmem:[#allocation5 + $0x7e8] sm:$0xff] %v4389_v60  ;;  %3349 = vst [vmem:[#allocation5 + $0x7f0] sm:$0xff] %v4390_v61  ;;  %v4395_v8 = vclamps-f32 %v282_v5, 1.0  ;;  %v4396_v9 = vclamps-f32 %v283_v6, 1.0  ;;  %v284_v10 = vld [vmem:[#allocation2 + $0x828] sm:$0xff]  ;;  %v285_v11 = vld [vmem:[#allocation2 + $0x830] sm:$0xff] }
  0x96   :  { %v286_v12 = vld [vmem:[#allocation2 + $0x838] sm:$0xff]  ;;  %3350 = vst [vmem:[#allocation5 + $0x7f8] sm:$0xff] %v4391_v1  ;;  %3351 = vst [vmem:[#allocation5 + $0x800] sm:$0xff] %v4392_v2  ;;  %v4397_v13 = vclamps-f32 %v284_v10, 1.0  ;;  %v4398_v14 = vclamps-f32 %v285_v11, 1.0  ;;  %v287_v16 = vld [vmem:[#allocation2 + $0x840] sm:$0xff] }
  0x97   :  { %3352 = vst [vmem:[#allocation5 + $0x808] sm:$0xff] %v4393_v3  ;;  %v4399_v15 = vclamps-f32 %v286_v12, 1.0  ;;  %v288_v17 = vld [vmem:[#allocation2 + $0x848] sm:$0xff]  ;;  %v289_v18 = vld [vmem:[#allocation2 + $0x850] sm:$0xff]  ;;  %3353 = vst [vmem:[#allocation5 + $0x810] sm:$0xff] %v4394_v7  ;;  %v4400_v19 = vclamps-f32 %v287_v16, 1.0 }
  0x98   :  { %3354 = vst [vmem:[#allocation5 + $0x818] sm:$0xff] %v4395_v8  ;;  %3355 = vst [vmem:[#allocation5 + $0x820] sm:$0xff] %v4396_v9  ;;  %v4401_v20 = vclamps-f32 %v288_v17, 1.0  ;;  %v4402_v21 = vclamps-f32 %v289_v18, 1.0  ;;  %v290_v22 = vld [vmem:[#allocation2 + $0x858] sm:$0xff]  ;;  %v291_v23 = vld [vmem:[#allocation2 + $0x860] sm:$0xff] }
  0x99   :  { %v292_v24 = vld [vmem:[#allocation2 + $0x868] sm:$0xff]  ;;  %3356 = vst [vmem:[#allocation5 + $0x828] sm:$0xff] %v4397_v13  ;;  %3357 = vst [vmem:[#allocation5 + $0x830] sm:$0xff] %v4398_v14  ;;  %v4403_v25 = vclamps-f32 %v290_v22, 1.0  ;;  %v4404_v26 = vclamps-f32 %v291_v23, 1.0  ;;  %v293_v28 = vld [vmem:[#allocation2 + $0x870] sm:$0xff] }
  0x9a   :  { %3358 = vst [vmem:[#allocation5 + $0x838] sm:$0xff] %v4399_v15  ;;  %v4405_v27 = vclamps-f32 %v292_v24, 1.0  ;;  %v294_v29 = vld [vmem:[#allocation2 + $0x878] sm:$0xff]  ;;  %v295_v30 = vld [vmem:[#allocation2 + $0x880] sm:$0xff]  ;;  %3359 = vst [vmem:[#allocation5 + $0x840] sm:$0xff] %v4400_v19  ;;  %v4406_v31 = vclamps-f32 %v293_v28, 1.0 }
  0x9b   :  { %3360 = vst [vmem:[#allocation5 + $0x848] sm:$0xff] %v4401_v20  ;;  %3361 = vst [vmem:[#allocation5 + $0x850] sm:$0xff] %v4402_v21  ;;  %v4407_v32 = vclamps-f32 %v294_v29, 1.0  ;;  %v4408_v33 = vclamps-f32 %v295_v30, 1.0  ;;  %v296_v34 = vld [vmem:[#allocation2 + $0x888] sm:$0xff]  ;;  %v297_v35 = vld [vmem:[#allocation2 + $0x890] sm:$0xff] }
  0x9c   :  { %v298_v36 = vld [vmem:[#allocation2 + $0x898] sm:$0xff]  ;;  %3362 = vst [vmem:[#allocation5 + $0x858] sm:$0xff] %v4403_v25  ;;  %3363 = vst [vmem:[#allocation5 + $0x860] sm:$0xff] %v4404_v26  ;;  %v4409_v37 = vclamps-f32 %v296_v34, 1.0  ;;  %v4410_v38 = vclamps-f32 %v297_v35, 1.0  ;;  %v299_v40 = vld [vmem:[#allocation2 + $0x8a0] sm:$0xff] }
  0x9d   :  { %3364 = vst [vmem:[#allocation5 + $0x868] sm:$0xff] %v4405_v27  ;;  %v4411_v39 = vclamps-f32 %v298_v36, 1.0  ;;  %v300_v41 = vld [vmem:[#allocation2 + $0x8a8] sm:$0xff]  ;;  %v301_v42 = vld [vmem:[#allocation2 + $0x8b0] sm:$0xff]  ;;  %3365 = vst [vmem:[#allocation5 + $0x870] sm:$0xff] %v4406_v31  ;;  %v4412_v43 = vclamps-f32 %v299_v40, 1.0 }
  0x9e   :  { %3366 = vst [vmem:[#allocation5 + $0x878] sm:$0xff] %v4407_v32  ;;  %3367 = vst [vmem:[#allocation5 + $0x880] sm:$0xff] %v4408_v33  ;;  %v4413_v44 = vclamps-f32 %v300_v41, 1.0  ;;  %v4414_v45 = vclamps-f32 %v301_v42, 1.0  ;;  %v302_v46 = vld [vmem:[#allocation2 + $0x8b8] sm:$0xff]  ;;  %v303_v47 = vld [vmem:[#allocation2 + $0x8c0] sm:$0xff] }
  0x9f   :  { %v304_v48 = vld [vmem:[#allocation2 + $0x8c8] sm:$0xff]  ;;  %3368 = vst [vmem:[#allocation5 + $0x888] sm:$0xff] %v4409_v37  ;;  %3369 = vst [vmem:[#allocation5 + $0x890] sm:$0xff] %v4410_v38  ;;  %v4415_v49 = vclamps-f32 %v302_v46, 1.0  ;;  %v4416_v50 = vclamps-f32 %v303_v47, 1.0  ;;  %v305_v52 = vld [vmem:[#allocation2 + $0x8d0] sm:$0xff] }
  0xa0   :  { %3370 = vst [vmem:[#allocation5 + $0x898] sm:$0xff] %v4411_v39  ;;  %v4417_v51 = vclamps-f32 %v304_v48, 1.0  ;;  %v306_v53 = vld [vmem:[#allocation2 + $0x8d8] sm:$0xff]  ;;  %v307_v54 = vld [vmem:[#allocation2 + $0x8e0] sm:$0xff]  ;;  %3371 = vst [vmem:[#allocation5 + $0x8a0] sm:$0xff] %v4412_v43  ;;  %v4418_v55 = vclamps-f32 %v305_v52, 1.0 }
  0xa1   :  { %3372 = vst [vmem:[#allocation5 + $0x8a8] sm:$0xff] %v4413_v44  ;;  %3373 = vst [vmem:[#allocation5 + $0x8b0] sm:$0xff] %v4414_v45  ;;  %v4419_v56 = vclamps-f32 %v306_v53, 1.0  ;;  %v4420_v57 = vclamps-f32 %v307_v54, 1.0  ;;  %v308_v58 = vld [vmem:[#allocation2 + $0x8e8] sm:$0xff]  ;;  %v309_v59 = vld [vmem:[#allocation2 + $0x8f0] sm:$0xff] }
  0xa2   :  { %v310_v60 = vld [vmem:[#allocation2 + $0x8f8] sm:$0xff]  ;;  %3374 = vst [vmem:[#allocation5 + $0x8b8] sm:$0xff] %v4415_v49  ;;  %3375 = vst [vmem:[#allocation5 + $0x8c0] sm:$0xff] %v4416_v50  ;;  %v4421_v61 = vclamps-f32 %v308_v58, 1.0  ;;  %v4422_v62 = vclamps-f32 %v309_v59, 1.0  ;;  %v311_v0 = vld [vmem:[#allocation2 + $0x900] sm:$0xff] }
  0xa3   :  { %3376 = vst [vmem:[#allocation5 + $0x8c8] sm:$0xff] %v4417_v51  ;;  %v4423_v63 = vclamps-f32 %v310_v60, 1.0  ;;  %v312_v1 = vld [vmem:[#allocation2 + $0x908] sm:$0xff]  ;;  %v313_v2 = vld [vmem:[#allocation2 + $0x910] sm:$0xff]  ;;  %3377 = vst [vmem:[#allocation5 + $0x8d0] sm:$0xff] %v4418_v55  ;;  %v4424_v3 = vclamps-f32 %v311_v0, 1.0 }
  0xa4   :  { %3378 = vst [vmem:[#allocation5 + $0x8d8] sm:$0xff] %v4419_v56  ;;  %3379 = vst [vmem:[#allocation5 + $0x8e0] sm:$0xff] %v4420_v57  ;;  %v4425_v4 = vclamps-f32 %v312_v1, 1.0  ;;  %v4426_v5 = vclamps-f32 %v313_v2, 1.0  ;;  %v314_v6 = vld [vmem:[#allocation2 + $0x918] sm:$0xff]  ;;  %v315_v7 = vld [vmem:[#allocation2 + $0x920] sm:$0xff] }
  0xa5   :  { %v316_v8 = vld [vmem:[#allocation2 + $0x928] sm:$0xff]  ;;  %3380 = vst [vmem:[#allocation5 + $0x8e8] sm:$0xff] %v4421_v61  ;;  %3381 = vst [vmem:[#allocation5 + $0x8f0] sm:$0xff] %v4422_v62  ;;  %v4427_v9 = vclamps-f32 %v314_v6, 1.0  ;;  %v4428_v10 = vclamps-f32 %v315_v7, 1.0  ;;  %v317_v12 = vld [vmem:[#allocation2 + $0x930] sm:$0xff] }
  0xa6   :  { %3382 = vst [vmem:[#allocation5 + $0x8f8] sm:$0xff] %v4423_v63  ;;  %v4429_v11 = vclamps-f32 %v316_v8, 1.0  ;;  %v318_v13 = vld [vmem:[#allocation2 + $0x938] sm:$0xff]  ;;  %v319_v14 = vld [vmem:[#allocation2 + $0x940] sm:$0xff]  ;;  %3383 = vst [vmem:[#allocation5 + $0x900] sm:$0xff] %v4424_v3  ;;  %v4430_v15 = vclamps-f32 %v317_v12, 1.0 }
  0xa7   :  { %3384 = vst [vmem:[#allocation5 + $0x908] sm:$0xff] %v4425_v4  ;;  %3385 = vst [vmem:[#allocation5 + $0x910] sm:$0xff] %v4426_v5  ;;  %v4431_v16 = vclamps-f32 %v318_v13, 1.0  ;;  %v4432_v17 = vclamps-f32 %v319_v14, 1.0  ;;  %v320_v18 = vld [vmem:[#allocation2 + $0x948] sm:$0xff]  ;;  %v321_v19 = vld [vmem:[#allocation2 + $0x950] sm:$0xff] }
  0xa8   :  { %v322_v20 = vld [vmem:[#allocation2 + $0x958] sm:$0xff]  ;;  %3386 = vst [vmem:[#allocation5 + $0x918] sm:$0xff] %v4427_v9  ;;  %3387 = vst [vmem:[#allocation5 + $0x920] sm:$0xff] %v4428_v10  ;;  %v4433_v21 = vclamps-f32 %v320_v18, 1.0  ;;  %v4434_v22 = vclamps-f32 %v321_v19, 1.0  ;;  %v323_v24 = vld [vmem:[#allocation2 + $0x960] sm:$0xff] }
  0xa9   :  { %3388 = vst [vmem:[#allocation5 + $0x928] sm:$0xff] %v4429_v11  ;;  %v4435_v23 = vclamps-f32 %v322_v20, 1.0  ;;  %v324_v25 = vld [vmem:[#allocation2 + $0x968] sm:$0xff]  ;;  %v325_v26 = vld [vmem:[#allocation2 + $0x970] sm:$0xff]  ;;  %3389 = vst [vmem:[#allocation5 + $0x930] sm:$0xff] %v4430_v15  ;;  %v4436_v27 = vclamps-f32 %v323_v24, 1.0 }
  0xaa   :  { %3390 = vst [vmem:[#allocation5 + $0x938] sm:$0xff] %v4431_v16  ;;  %3391 = vst [vmem:[#allocation5 + $0x940] sm:$0xff] %v4432_v17  ;;  %v4437_v28 = vclamps-f32 %v324_v25, 1.0  ;;  %v4438_v29 = vclamps-f32 %v325_v26, 1.0  ;;  %v326_v30 = vld [vmem:[#allocation2 + $0x978] sm:$0xff]  ;;  %v327_v31 = vld [vmem:[#allocation2 + $0x980] sm:$0xff] }
  0xab   :  { %v328_v32 = vld [vmem:[#allocation2 + $0x988] sm:$0xff]  ;;  %3392 = vst [vmem:[#allocation5 + $0x948] sm:$0xff] %v4433_v21  ;;  %3393 = vst [vmem:[#allocation5 + $0x950] sm:$0xff] %v4434_v22  ;;  %v4439_v33 = vclamps-f32 %v326_v30, 1.0  ;;  %v4440_v34 = vclamps-f32 %v327_v31, 1.0  ;;  %v329_v36 = vld [vmem:[#allocation2 + $0x990] sm:$0xff] }
  0xac   :  { %3394 = vst [vmem:[#allocation5 + $0x958] sm:$0xff] %v4435_v23  ;;  %v4441_v35 = vclamps-f32 %v328_v32, 1.0  ;;  %v330_v37 = vld [vmem:[#allocation2 + $0x998] sm:$0xff]  ;;  %v331_v38 = vld [vmem:[#allocation2 + $0x9a0] sm:$0xff]  ;;  %3395 = vst [vmem:[#allocation5 + $0x960] sm:$0xff] %v4436_v27  ;;  %v4442_v39 = vclamps-f32 %v329_v36, 1.0 }
  0xad   :  { %3396 = vst [vmem:[#allocation5 + $0x968] sm:$0xff] %v4437_v28  ;;  %3397 = vst [vmem:[#allocation5 + $0x970] sm:$0xff] %v4438_v29  ;;  %v4443_v40 = vclamps-f32 %v330_v37, 1.0  ;;  %v4444_v41 = vclamps-f32 %v331_v38, 1.0  ;;  %v332_v42 = vld [vmem:[#allocation2 + $0x9a8] sm:$0xff]  ;;  %v333_v43 = vld [vmem:[#allocation2 + $0x9b0] sm:$0xff] }
  0xae   :  { %v334_v44 = vld [vmem:[#allocation2 + $0x9b8] sm:$0xff]  ;;  %3398 = vst [vmem:[#allocation5 + $0x978] sm:$0xff] %v4439_v33  ;;  %3399 = vst [vmem:[#allocation5 + $0x980] sm:$0xff] %v4440_v34  ;;  %v4445_v45 = vclamps-f32 %v332_v42, 1.0  ;;  %v4446_v46 = vclamps-f32 %v333_v43, 1.0  ;;  %v335_v48 = vld [vmem:[#allocation2 + $0x9c0] sm:$0xff] }
  0xaf   :  { %3400 = vst [vmem:[#allocation5 + $0x988] sm:$0xff] %v4441_v35  ;;  %v4447_v47 = vclamps-f32 %v334_v44, 1.0  ;;  %v336_v49 = vld [vmem:[#allocation2 + $0x9c8] sm:$0xff]  ;;  %v337_v50 = vld [vmem:[#allocation2 + $0x9d0] sm:$0xff]  ;;  %3401 = vst [vmem:[#allocation5 + $0x990] sm:$0xff] %v4442_v39  ;;  %v4448_v51 = vclamps-f32 %v335_v48, 1.0 }
  0xb0   :  { %3402 = vst [vmem:[#allocation5 + $0x998] sm:$0xff] %v4443_v40  ;;  %3403 = vst [vmem:[#allocation5 + $0x9a0] sm:$0xff] %v4444_v41  ;;  %v4449_v52 = vclamps-f32 %v336_v49, 1.0  ;;  %v4450_v53 = vclamps-f32 %v337_v50, 1.0  ;;  %v338_v54 = vld [vmem:[#allocation2 + $0x9d8] sm:$0xff]  ;;  %v339_v55 = vld [vmem:[#allocation2 + $0x9e0] sm:$0xff] }
  0xb1   :  { %v340_v56 = vld [vmem:[#allocation2 + $0x9e8] sm:$0xff]  ;;  %3404 = vst [vmem:[#allocation5 + $0x9a8] sm:$0xff] %v4445_v45  ;;  %3405 = vst [vmem:[#allocation5 + $0x9b0] sm:$0xff] %v4446_v46  ;;  %v4451_v57 = vclamps-f32 %v338_v54, 1.0  ;;  %v4452_v58 = vclamps-f32 %v339_v55, 1.0  ;;  %v341_v60 = vld [vmem:[#allocation2 + $0x9f0] sm:$0xff] }
  0xb2   :  { %3406 = vst [vmem:[#allocation5 + $0x9b8] sm:$0xff] %v4447_v47  ;;  %v4453_v59 = vclamps-f32 %v340_v56, 1.0  ;;  %v342_v61 = vld [vmem:[#allocation2 + $0x9f8] sm:$0xff]  ;;  %v343_v62 = vld [vmem:[#allocation2 + $0xa00] sm:$0xff]  ;;  %3407 = vst [vmem:[#allocation5 + $0x9c0] sm:$0xff] %v4448_v51  ;;  %v4454_v63 = vclamps-f32 %v341_v60, 1.0 }
  0xb3   :  { %3408 = vst [vmem:[#allocation5 + $0x9c8] sm:$0xff] %v4449_v52  ;;  %3409 = vst [vmem:[#allocation5 + $0x9d0] sm:$0xff] %v4450_v53  ;;  %v4455_v0 = vclamps-f32 %v342_v61, 1.0  ;;  %v4456_v1 = vclamps-f32 %v343_v62, 1.0  ;;  %v344_v2 = vld [vmem:[#allocation2 + $0xa08] sm:$0xff]  ;;  %v345_v3 = vld [vmem:[#allocation2 + $0xa10] sm:$0xff] }
  0xb4   :  { %v346_v4 = vld [vmem:[#allocation2 + $0xa18] sm:$0xff]  ;;  %3410 = vst [vmem:[#allocation5 + $0x9d8] sm:$0xff] %v4451_v57  ;;  %3411 = vst [vmem:[#allocation5 + $0x9e0] sm:$0xff] %v4452_v58  ;;  %v4457_v5 = vclamps-f32 %v344_v2, 1.0  ;;  %v4458_v6 = vclamps-f32 %v345_v3, 1.0  ;;  %v347_v8 = vld [vmem:[#allocation2 + $0xa20] sm:$0xff] }
  0xb5   :  { %3412 = vst [vmem:[#allocation5 + $0x9e8] sm:$0xff] %v4453_v59  ;;  %v4459_v7 = vclamps-f32 %v346_v4, 1.0  ;;  %v348_v9 = vld [vmem:[#allocation2 + $0xa28] sm:$0xff]  ;;  %v349_v10 = vld [vmem:[#allocation2 + $0xa30] sm:$0xff]  ;;  %3413 = vst [vmem:[#allocation5 + $0x9f0] sm:$0xff] %v4454_v63  ;;  %v4460_v11 = vclamps-f32 %v347_v8, 1.0 }
  0xb6   :  { %3414 = vst [vmem:[#allocation5 + $0x9f8] sm:$0xff] %v4455_v0  ;;  %3415 = vst [vmem:[#allocation5 + $0xa00] sm:$0xff] %v4456_v1  ;;  %v4461_v12 = vclamps-f32 %v348_v9, 1.0  ;;  %v4462_v13 = vclamps-f32 %v349_v10, 1.0  ;;  %v350_v14 = vld [vmem:[#allocation2 + $0xa38] sm:$0xff]  ;;  %v351_v15 = vld [vmem:[#allocation2 + $0xa40] sm:$0xff] }
  0xb7   :  { %v352_v16 = vld [vmem:[#allocation2 + $0xa48] sm:$0xff]  ;;  %3416 = vst [vmem:[#allocation5 + $0xa08] sm:$0xff] %v4457_v5  ;;  %3417 = vst [vmem:[#allocation5 + $0xa10] sm:$0xff] %v4458_v6  ;;  %v4463_v17 = vclamps-f32 %v350_v14, 1.0  ;;  %v4464_v18 = vclamps-f32 %v351_v15, 1.0  ;;  %v353_v20 = vld [vmem:[#allocation2 + $0xa50] sm:$0xff] }
  0xb8   :  { %3418 = vst [vmem:[#allocation5 + $0xa18] sm:$0xff] %v4459_v7  ;;  %v4465_v19 = vclamps-f32 %v352_v16, 1.0  ;;  %v354_v21 = vld [vmem:[#allocation2 + $0xa58] sm:$0xff]  ;;  %v355_v22 = vld [vmem:[#allocation2 + $0xa60] sm:$0xff]  ;;  %3419 = vst [vmem:[#allocation5 + $0xa20] sm:$0xff] %v4460_v11  ;;  %v4466_v23 = vclamps-f32 %v353_v20, 1.0 }
  0xb9   :  { %3420 = vst [vmem:[#allocation5 + $0xa28] sm:$0xff] %v4461_v12  ;;  %3421 = vst [vmem:[#allocation5 + $0xa30] sm:$0xff] %v4462_v13  ;;  %v4467_v24 = vclamps-f32 %v354_v21, 1.0  ;;  %v4468_v25 = vclamps-f32 %v355_v22, 1.0  ;;  %v356_v26 = vld [vmem:[#allocation2 + $0xa68] sm:$0xff]  ;;  %v357_v27 = vld [vmem:[#allocation2 + $0xa70] sm:$0xff] }
  0xba   :  { %v358_v28 = vld [vmem:[#allocation2 + $0xa78] sm:$0xff]  ;;  %3422 = vst [vmem:[#allocation5 + $0xa38] sm:$0xff] %v4463_v17  ;;  %3423 = vst [vmem:[#allocation5 + $0xa40] sm:$0xff] %v4464_v18  ;;  %v4469_v29 = vclamps-f32 %v356_v26, 1.0  ;;  %v4470_v30 = vclamps-f32 %v357_v27, 1.0  ;;  %v359_v32 = vld [vmem:[#allocation2 + $0xa80] sm:$0xff] }
  0xbb   :  { %3424 = vst [vmem:[#allocation5 + $0xa48] sm:$0xff] %v4465_v19  ;;  %v4471_v31 = vclamps-f32 %v358_v28, 1.0  ;;  %v360_v33 = vld [vmem:[#allocation2 + $0xa88] sm:$0xff]  ;;  %v361_v34 = vld [vmem:[#allocation2 + $0xa90] sm:$0xff]  ;;  %3425 = vst [vmem:[#allocation5 + $0xa50] sm:$0xff] %v4466_v23  ;;  %v4472_v35 = vclamps-f32 %v359_v32, 1.0 }
  0xbc   :  { %3426 = vst [vmem:[#allocation5 + $0xa58] sm:$0xff] %v4467_v24  ;;  %3427 = vst [vmem:[#allocation5 + $0xa60] sm:$0xff] %v4468_v25  ;;  %v4473_v36 = vclamps-f32 %v360_v33, 1.0  ;;  %v4474_v37 = vclamps-f32 %v361_v34, 1.0  ;;  %v362_v38 = vld [vmem:[#allocation2 + $0xa98] sm:$0xff]  ;;  %v363_v39 = vld [vmem:[#allocation2 + $0xaa0] sm:$0xff] }
  0xbd   :  { %v364_v40 = vld [vmem:[#allocation2 + $0xaa8] sm:$0xff]  ;;  %3428 = vst [vmem:[#allocation5 + $0xa68] sm:$0xff] %v4469_v29  ;;  %3429 = vst [vmem:[#allocation5 + $0xa70] sm:$0xff] %v4470_v30  ;;  %v4475_v41 = vclamps-f32 %v362_v38, 1.0  ;;  %v4476_v42 = vclamps-f32 %v363_v39, 1.0  ;;  %v365_v44 = vld [vmem:[#allocation2 + $0xab0] sm:$0xff] }
  0xbe   :  { %3430 = vst [vmem:[#allocation5 + $0xa78] sm:$0xff] %v4471_v31  ;;  %v4477_v43 = vclamps-f32 %v364_v40, 1.0  ;;  %v366_v45 = vld [vmem:[#allocation2 + $0xab8] sm:$0xff]  ;;  %v367_v46 = vld [vmem:[#allocation2 + $0xac0] sm:$0xff]  ;;  %3431 = vst [vmem:[#allocation5 + $0xa80] sm:$0xff] %v4472_v35  ;;  %v4478_v47 = vclamps-f32 %v365_v44, 1.0 }
  0xbf   :  { %3432 = vst [vmem:[#allocation5 + $0xa88] sm:$0xff] %v4473_v36  ;;  %3433 = vst [vmem:[#allocation5 + $0xa90] sm:$0xff] %v4474_v37  ;;  %v4479_v48 = vclamps-f32 %v366_v45, 1.0  ;;  %v4480_v49 = vclamps-f32 %v367_v46, 1.0  ;;  %v368_v50 = vld [vmem:[#allocation2 + $0xac8] sm:$0xff]  ;;  %v369_v51 = vld [vmem:[#allocation2 + $0xad0] sm:$0xff] }
  0xc0   :  { %v370_v52 = vld [vmem:[#allocation2 + $0xad8] sm:$0xff]  ;;  %3434 = vst [vmem:[#allocation5 + $0xa98] sm:$0xff] %v4475_v41  ;;  %3435 = vst [vmem:[#allocation5 + $0xaa0] sm:$0xff] %v4476_v42  ;;  %v4481_v53 = vclamps-f32 %v368_v50, 1.0  ;;  %v4482_v54 = vclamps-f32 %v369_v51, 1.0  ;;  %v371_v56 = vld [vmem:[#allocation2 + $0xae0] sm:$0xff] }
  0xc1   :  { %3436 = vst [vmem:[#allocation5 + $0xaa8] sm:$0xff] %v4477_v43  ;;  %v4483_v55 = vclamps-f32 %v370_v52, 1.0  ;;  %v372_v57 = vld [vmem:[#allocation2 + $0xae8] sm:$0xff]  ;;  %v373_v58 = vld [vmem:[#allocation2 + $0xaf0] sm:$0xff]  ;;  %3437 = vst [vmem:[#allocation5 + $0xab0] sm:$0xff] %v4478_v47  ;;  %v4484_v59 = vclamps-f32 %v371_v56, 1.0 }
  0xc2   :  { %3438 = vst [vmem:[#allocation5 + $0xab8] sm:$0xff] %v4479_v48  ;;  %3439 = vst [vmem:[#allocation5 + $0xac0] sm:$0xff] %v4480_v49  ;;  %v4485_v60 = vclamps-f32 %v372_v57, 1.0  ;;  %v4486_v61 = vclamps-f32 %v373_v58, 1.0  ;;  %v374_v62 = vld [vmem:[#allocation2 + $0xaf8] sm:$0xff]  ;;  %v375_v63 = vld [vmem:[#allocation2 + $0xb00] sm:$0xff] }
  0xc3   :  { %v376_v0 = vld [vmem:[#allocation2 + $0xb08] sm:$0xff]  ;;  %3440 = vst [vmem:[#allocation5 + $0xac8] sm:$0xff] %v4481_v53  ;;  %3441 = vst [vmem:[#allocation5 + $0xad0] sm:$0xff] %v4482_v54  ;;  %v4487_v1 = vclamps-f32 %v374_v62, 1.0  ;;  %v4488_v2 = vclamps-f32 %v375_v63, 1.0  ;;  %v377_v4 = vld [vmem:[#allocation2 + $0xb10] sm:$0xff] }
  0xc4   :  { %3442 = vst [vmem:[#allocation5 + $0xad8] sm:$0xff] %v4483_v55  ;;  %v4489_v3 = vclamps-f32 %v376_v0, 1.0  ;;  %v378_v5 = vld [vmem:[#allocation2 + $0xb18] sm:$0xff]  ;;  %v379_v6 = vld [vmem:[#allocation2 + $0xb20] sm:$0xff]  ;;  %3443 = vst [vmem:[#allocation5 + $0xae0] sm:$0xff] %v4484_v59  ;;  %v4490_v7 = vclamps-f32 %v377_v4, 1.0 }
  0xc5   :  { %3444 = vst [vmem:[#allocation5 + $0xae8] sm:$0xff] %v4485_v60  ;;  %3445 = vst [vmem:[#allocation5 + $0xaf0] sm:$0xff] %v4486_v61  ;;  %v4491_v8 = vclamps-f32 %v378_v5, 1.0  ;;  %v4492_v9 = vclamps-f32 %v379_v6, 1.0  ;;  %v380_v10 = vld [vmem:[#allocation2 + $0xb28] sm:$0xff]  ;;  %v381_v11 = vld [vmem:[#allocation2 + $0xb30] sm:$0xff] }
  0xc6   :  { %v382_v12 = vld [vmem:[#allocation2 + $0xb38] sm:$0xff]  ;;  %3446 = vst [vmem:[#allocation5 + $0xaf8] sm:$0xff] %v4487_v1  ;;  %3447 = vst [vmem:[#allocation5 + $0xb00] sm:$0xff] %v4488_v2  ;;  %v4493_v13 = vclamps-f32 %v380_v10, 1.0  ;;  %v4494_v14 = vclamps-f32 %v381_v11, 1.0  ;;  %v383_v16 = vld [vmem:[#allocation2 + $0xb40] sm:$0xff] }
  0xc7   :  { %3448 = vst [vmem:[#allocation5 + $0xb08] sm:$0xff] %v4489_v3  ;;  %v4495_v15 = vclamps-f32 %v382_v12, 1.0  ;;  %v384_v17 = vld [vmem:[#allocation2 + $0xb48] sm:$0xff]  ;;  %v385_v18 = vld [vmem:[#allocation2 + $0xb50] sm:$0xff]  ;;  %3449 = vst [vmem:[#allocation5 + $0xb10] sm:$0xff] %v4490_v7  ;;  %v4496_v19 = vclamps-f32 %v383_v16, 1.0 }
  0xc8   :  { %3450 = vst [vmem:[#allocation5 + $0xb18] sm:$0xff] %v4491_v8  ;;  %3451 = vst [vmem:[#allocation5 + $0xb20] sm:$0xff] %v4492_v9  ;;  %v4497_v20 = vclamps-f32 %v384_v17, 1.0  ;;  %v4498_v21 = vclamps-f32 %v385_v18, 1.0  ;;  %v386_v22 = vld [vmem:[#allocation2 + $0xb58] sm:$0xff]  ;;  %v387_v23 = vld [vmem:[#allocation2 + $0xb60] sm:$0xff] }
  0xc9   :  { %v388_v24 = vld [vmem:[#allocation2 + $0xb68] sm:$0xff]  ;;  %3452 = vst [vmem:[#allocation5 + $0xb28] sm:$0xff] %v4493_v13  ;;  %3453 = vst [vmem:[#allocation5 + $0xb30] sm:$0xff] %v4494_v14  ;;  %v4499_v25 = vclamps-f32 %v386_v22, 1.0  ;;  %v4500_v26 = vclamps-f32 %v387_v23, 1.0  ;;  %v389_v28 = vld [vmem:[#allocation2 + $0xb70] sm:$0xff] }
  0xca   :  { %3454 = vst [vmem:[#allocation5 + $0xb38] sm:$0xff] %v4495_v15  ;;  %v4501_v27 = vclamps-f32 %v388_v24, 1.0  ;;  %v390_v29 = vld [vmem:[#allocation2 + $0xb78] sm:$0xff]  ;;  %v391_v30 = vld [vmem:[#allocation2 + $0xb80] sm:$0xff]  ;;  %3455 = vst [vmem:[#allocation5 + $0xb40] sm:$0xff] %v4496_v19  ;;  %v4502_v31 = vclamps-f32 %v389_v28, 1.0 }
  0xcb   :  { %3456 = vst [vmem:[#allocation5 + $0xb48] sm:$0xff] %v4497_v20  ;;  %3457 = vst [vmem:[#allocation5 + $0xb50] sm:$0xff] %v4498_v21  ;;  %v4503_v32 = vclamps-f32 %v390_v29, 1.0  ;;  %v4504_v33 = vclamps-f32 %v391_v30, 1.0  ;;  %v392_v34 = vld [vmem:[#allocation2 + $0xb88] sm:$0xff]  ;;  %v393_v35 = vld [vmem:[#allocation2 + $0xb90] sm:$0xff] }
  0xcc   :  { %v394_v36 = vld [vmem:[#allocation2 + $0xb98] sm:$0xff]  ;;  %3458 = vst [vmem:[#allocation5 + $0xb58] sm:$0xff] %v4499_v25  ;;  %3459 = vst [vmem:[#allocation5 + $0xb60] sm:$0xff] %v4500_v26  ;;  %v4505_v37 = vclamps-f32 %v392_v34, 1.0  ;;  %v4506_v38 = vclamps-f32 %v393_v35, 1.0  ;;  %v395_v40 = vld [vmem:[#allocation2 + $0xba0] sm:$0xff] }
  0xcd   :  { %3460 = vst [vmem:[#allocation5 + $0xb68] sm:$0xff] %v4501_v27  ;;  %v4507_v39 = vclamps-f32 %v394_v36, 1.0  ;;  %v396_v41 = vld [vmem:[#allocation2 + $0xba8] sm:$0xff]  ;;  %v397_v42 = vld [vmem:[#allocation2 + $0xbb0] sm:$0xff]  ;;  %3461 = vst [vmem:[#allocation5 + $0xb70] sm:$0xff] %v4502_v31  ;;  %v4508_v43 = vclamps-f32 %v395_v40, 1.0 }
  0xce   :  { %3462 = vst [vmem:[#allocation5 + $0xb78] sm:$0xff] %v4503_v32  ;;  %3463 = vst [vmem:[#allocation5 + $0xb80] sm:$0xff] %v4504_v33  ;;  %v4509_v44 = vclamps-f32 %v396_v41, 1.0  ;;  %v4510_v45 = vclamps-f32 %v397_v42, 1.0  ;;  %v398_v46 = vld [vmem:[#allocation2 + $0xbb8] sm:$0xff]  ;;  %v399_v47 = vld [vmem:[#allocation2 + $0xbc0] sm:$0xff] }
  0xcf   :  { %v400_v48 = vld [vmem:[#allocation2 + $0xbc8] sm:$0xff]  ;;  %3464 = vst [vmem:[#allocation5 + $0xb88] sm:$0xff] %v4505_v37  ;;  %3465 = vst [vmem:[#allocation5 + $0xb90] sm:$0xff] %v4506_v38  ;;  %v4511_v49 = vclamps-f32 %v398_v46, 1.0  ;;  %v4512_v50 = vclamps-f32 %v399_v47, 1.0  ;;  %v401_v52 = vld [vmem:[#allocation2 + $0xbd0] sm:$0xff] }
  0xd0   :  { %3466 = vst [vmem:[#allocation5 + $0xb98] sm:$0xff] %v4507_v39  ;;  %v4513_v51 = vclamps-f32 %v400_v48, 1.0  ;;  %v402_v53 = vld [vmem:[#allocation2 + $0xbd8] sm:$0xff]  ;;  %v403_v54 = vld [vmem:[#allocation2 + $0xbe0] sm:$0xff]  ;;  %3467 = vst [vmem:[#allocation5 + $0xba0] sm:$0xff] %v4508_v43  ;;  %v4514_v55 = vclamps-f32 %v401_v52, 1.0 }
  0xd1   :  { %3468 = vst [vmem:[#allocation5 + $0xba8] sm:$0xff] %v4509_v44  ;;  %3469 = vst [vmem:[#allocation5 + $0xbb0] sm:$0xff] %v4510_v45  ;;  %v4515_v56 = vclamps-f32 %v402_v53, 1.0  ;;  %v4516_v57 = vclamps-f32 %v403_v54, 1.0  ;;  %v404_v58 = vld [vmem:[#allocation2 + $0xbe8] sm:$0xff]  ;;  %v405_v59 = vld [vmem:[#allocation2 + $0xbf0] sm:$0xff] }
  0xd2   :  { %v406_v60 = vld [vmem:[#allocation2 + $0xbf8] sm:$0xff]  ;;  %3470 = vst [vmem:[#allocation5 + $0xbb8] sm:$0xff] %v4511_v49  ;;  %3471 = vst [vmem:[#allocation5 + $0xbc0] sm:$0xff] %v4512_v50  ;;  %v4517_v61 = vclamps-f32 %v404_v58, 1.0  ;;  %v4518_v62 = vclamps-f32 %v405_v59, 1.0  ;;  %v407_v0 = vld [vmem:[#allocation2 + $0xc00] sm:$0xff] }
  0xd3   :  { %3472 = vst [vmem:[#allocation5 + $0xbc8] sm:$0xff] %v4513_v51  ;;  %v4519_v63 = vclamps-f32 %v406_v60, 1.0  ;;  %v408_v1 = vld [vmem:[#allocation2 + $0xc08] sm:$0xff]  ;;  %v409_v2 = vld [vmem:[#allocation2 + $0xc10] sm:$0xff]  ;;  %3473 = vst [vmem:[#allocation5 + $0xbd0] sm:$0xff] %v4514_v55  ;;  %v4520_v3 = vclamps-f32 %v407_v0, 1.0 }
  0xd4   :  { %3474 = vst [vmem:[#allocation5 + $0xbd8] sm:$0xff] %v4515_v56  ;;  %3475 = vst [vmem:[#allocation5 + $0xbe0] sm:$0xff] %v4516_v57  ;;  %v4521_v4 = vclamps-f32 %v408_v1, 1.0  ;;  %v4522_v5 = vclamps-f32 %v409_v2, 1.0  ;;  %v410_v6 = vld [vmem:[#allocation2 + $0xc18] sm:$0xff]  ;;  %v411_v7 = vld [vmem:[#allocation2 + $0xc20] sm:$0xff] }
  0xd5   :  { %v412_v8 = vld [vmem:[#allocation2 + $0xc28] sm:$0xff]  ;;  %3476 = vst [vmem:[#allocation5 + $0xbe8] sm:$0xff] %v4517_v61  ;;  %3477 = vst [vmem:[#allocation5 + $0xbf0] sm:$0xff] %v4518_v62  ;;  %v4523_v9 = vclamps-f32 %v410_v6, 1.0  ;;  %v4524_v10 = vclamps-f32 %v411_v7, 1.0  ;;  %v413_v12 = vld [vmem:[#allocation2 + $0xc30] sm:$0xff] }
  0xd6   :  { %3478 = vst [vmem:[#allocation5 + $0xbf8] sm:$0xff] %v4519_v63  ;;  %v4525_v11 = vclamps-f32 %v412_v8, 1.0  ;;  %v414_v13 = vld [vmem:[#allocation2 + $0xc38] sm:$0xff]  ;;  %v415_v14 = vld [vmem:[#allocation2 + $0xc40] sm:$0xff]  ;;  %3479 = vst [vmem:[#allocation5 + $0xc00] sm:$0xff] %v4520_v3  ;;  %v4526_v15 = vclamps-f32 %v413_v12, 1.0 }
  0xd7   :  { %3480 = vst [vmem:[#allocation5 + $0xc08] sm:$0xff] %v4521_v4  ;;  %3481 = vst [vmem:[#allocation5 + $0xc10] sm:$0xff] %v4522_v5  ;;  %v4527_v16 = vclamps-f32 %v414_v13, 1.0  ;;  %v4528_v17 = vclamps-f32 %v415_v14, 1.0  ;;  %v416_v18 = vld [vmem:[#allocation2 + $0xc48] sm:$0xff]  ;;  %v417_v19 = vld [vmem:[#allocation2 + $0xc50] sm:$0xff] }
  0xd8   :  { %v418_v20 = vld [vmem:[#allocation2 + $0xc58] sm:$0xff]  ;;  %3482 = vst [vmem:[#allocation5 + $0xc18] sm:$0xff] %v4523_v9  ;;  %3483 = vst [vmem:[#allocation5 + $0xc20] sm:$0xff] %v4524_v10  ;;  %v4529_v21 = vclamps-f32 %v416_v18, 1.0  ;;  %v4530_v22 = vclamps-f32 %v417_v19, 1.0  ;;  %v419_v24 = vld [vmem:[#allocation2 + $0xc60] sm:$0xff] }
  0xd9   :  { %3484 = vst [vmem:[#allocation5 + $0xc28] sm:$0xff] %v4525_v11  ;;  %v4531_v23 = vclamps-f32 %v418_v20, 1.0  ;;  %v420_v25 = vld [vmem:[#allocation2 + $0xc68] sm:$0xff]  ;;  %v421_v26 = vld [vmem:[#allocation2 + $0xc70] sm:$0xff]  ;;  %3485 = vst [vmem:[#allocation5 + $0xc30] sm:$0xff] %v4526_v15  ;;  %v4532_v27 = vclamps-f32 %v419_v24, 1.0 }
  0xda   :  { %3486 = vst [vmem:[#allocation5 + $0xc38] sm:$0xff] %v4527_v16  ;;  %3487 = vst [vmem:[#allocation5 + $0xc40] sm:$0xff] %v4528_v17  ;;  %v4533_v28 = vclamps-f32 %v420_v25, 1.0  ;;  %v4534_v29 = vclamps-f32 %v421_v26, 1.0  ;;  %v422_v30 = vld [vmem:[#allocation2 + $0xc78] sm:$0xff]  ;;  %v423_v31 = vld [vmem:[#allocation2 + $0xc80] sm:$0xff] }
  0xdb   :  { %v424_v32 = vld [vmem:[#allocation2 + $0xc88] sm:$0xff]  ;;  %3488 = vst [vmem:[#allocation5 + $0xc48] sm:$0xff] %v4529_v21  ;;  %3489 = vst [vmem:[#allocation5 + $0xc50] sm:$0xff] %v4530_v22  ;;  %v4535_v33 = vclamps-f32 %v422_v30, 1.0  ;;  %v4536_v34 = vclamps-f32 %v423_v31, 1.0  ;;  %v425_v36 = vld [vmem:[#allocation2 + $0xc90] sm:$0xff] }
  0xdc   :  { %3490 = vst [vmem:[#allocation5 + $0xc58] sm:$0xff] %v4531_v23  ;;  %v4537_v35 = vclamps-f32 %v424_v32, 1.0  ;;  %v426_v37 = vld [vmem:[#allocation2 + $0xc98] sm:$0xff]  ;;  %v427_v38 = vld [vmem:[#allocation2 + $0xca0] sm:$0xff]  ;;  %3491 = vst [vmem:[#allocation5 + $0xc60] sm:$0xff] %v4532_v27  ;;  %v4538_v39 = vclamps-f32 %v425_v36, 1.0 }
  0xdd   :  { %3492 = vst [vmem:[#allocation5 + $0xc68] sm:$0xff] %v4533_v28  ;;  %3493 = vst [vmem:[#allocation5 + $0xc70] sm:$0xff] %v4534_v29  ;;  %v4539_v40 = vclamps-f32 %v426_v37, 1.0  ;;  %v4540_v41 = vclamps-f32 %v427_v38, 1.0  ;;  %v428_v42 = vld [vmem:[#allocation2 + $0xca8] sm:$0xff]  ;;  %v429_v43 = vld [vmem:[#allocation2 + $0xcb0] sm:$0xff] }
  0xde   :  { %v430_v44 = vld [vmem:[#allocation2 + $0xcb8] sm:$0xff]  ;;  %3494 = vst [vmem:[#allocation5 + $0xc78] sm:$0xff] %v4535_v33  ;;  %3495 = vst [vmem:[#allocation5 + $0xc80] sm:$0xff] %v4536_v34  ;;  %v4541_v45 = vclamps-f32 %v428_v42, 1.0  ;;  %v4542_v46 = vclamps-f32 %v429_v43, 1.0  ;;  %v431_v48 = vld [vmem:[#allocation2 + $0xcc0] sm:$0xff] }
  0xdf   :  { %3496 = vst [vmem:[#allocation5 + $0xc88] sm:$0xff] %v4537_v35  ;;  %v4543_v47 = vclamps-f32 %v430_v44, 1.0  ;;  %v432_v49 = vld [vmem:[#allocation2 + $0xcc8] sm:$0xff]  ;;  %v433_v50 = vld [vmem:[#allocation2 + $0xcd0] sm:$0xff]  ;;  %3497 = vst [vmem:[#allocation5 + $0xc90] sm:$0xff] %v4538_v39  ;;  %v4544_v51 = vclamps-f32 %v431_v48, 1.0 }
  0xe0   :  { %3498 = vst [vmem:[#allocation5 + $0xc98] sm:$0xff] %v4539_v40  ;;  %3499 = vst [vmem:[#allocation5 + $0xca0] sm:$0xff] %v4540_v41  ;;  %v4545_v52 = vclamps-f32 %v432_v49, 1.0  ;;  %v4546_v53 = vclamps-f32 %v433_v50, 1.0  ;;  %v434_v54 = vld [vmem:[#allocation2 + $0xcd8] sm:$0xff]  ;;  %v435_v55 = vld [vmem:[#allocation2 + $0xce0] sm:$0xff] }
  0xe1   :  { %v436_v56 = vld [vmem:[#allocation2 + $0xce8] sm:$0xff]  ;;  %3500 = vst [vmem:[#allocation5 + $0xca8] sm:$0xff] %v4541_v45  ;;  %3501 = vst [vmem:[#allocation5 + $0xcb0] sm:$0xff] %v4542_v46  ;;  %v4547_v57 = vclamps-f32 %v434_v54, 1.0  ;;  %v4548_v58 = vclamps-f32 %v435_v55, 1.0  ;;  %v437_v60 = vld [vmem:[#allocation2 + $0xcf0] sm:$0xff] }
  0xe2   :  { %3502 = vst [vmem:[#allocation5 + $0xcb8] sm:$0xff] %v4543_v47  ;;  %v4549_v59 = vclamps-f32 %v436_v56, 1.0  ;;  %v438_v61 = vld [vmem:[#allocation2 + $0xcf8] sm:$0xff]  ;;  %v439_v62 = vld [vmem:[#allocation2 + $0xd00] sm:$0xff]  ;;  %3503 = vst [vmem:[#allocation5 + $0xcc0] sm:$0xff] %v4544_v51  ;;  %v4550_v63 = vclamps-f32 %v437_v60, 1.0 }
  0xe3   :  { %3504 = vst [vmem:[#allocation5 + $0xcc8] sm:$0xff] %v4545_v52  ;;  %3505 = vst [vmem:[#allocation5 + $0xcd0] sm:$0xff] %v4546_v53  ;;  %v4551_v0 = vclamps-f32 %v438_v61, 1.0  ;;  %v4552_v1 = vclamps-f32 %v439_v62, 1.0  ;;  %v440_v2 = vld [vmem:[#allocation2 + $0xd08] sm:$0xff]  ;;  %v441_v3 = vld [vmem:[#allocation2 + $0xd10] sm:$0xff] }
  0xe4   :  { %v442_v4 = vld [vmem:[#allocation2 + $0xd18] sm:$0xff]  ;;  %3506 = vst [vmem:[#allocation5 + $0xcd8] sm:$0xff] %v4547_v57  ;;  %3507 = vst [vmem:[#allocation5 + $0xce0] sm:$0xff] %v4548_v58  ;;  %v4553_v5 = vclamps-f32 %v440_v2, 1.0  ;;  %v4554_v6 = vclamps-f32 %v441_v3, 1.0  ;;  %v443_v8 = vld [vmem:[#allocation2 + $0xd20] sm:$0xff] }
  0xe5   :  { %3508 = vst [vmem:[#allocation5 + $0xce8] sm:$0xff] %v4549_v59  ;;  %v4555_v7 = vclamps-f32 %v442_v4, 1.0  ;;  %v444_v9 = vld [vmem:[#allocation2 + $0xd28] sm:$0xff]  ;;  %v445_v10 = vld [vmem:[#allocation2 + $0xd30] sm:$0xff]  ;;  %3509 = vst [vmem:[#allocation5 + $0xcf0] sm:$0xff] %v4550_v63  ;;  %v4556_v11 = vclamps-f32 %v443_v8, 1.0 }
  0xe6   :  { %3510 = vst [vmem:[#allocation5 + $0xcf8] sm:$0xff] %v4551_v0  ;;  %3511 = vst [vmem:[#allocation5 + $0xd00] sm:$0xff] %v4552_v1  ;;  %v4557_v12 = vclamps-f32 %v444_v9, 1.0  ;;  %v4558_v13 = vclamps-f32 %v445_v10, 1.0  ;;  %v446_v14 = vld [vmem:[#allocation2 + $0xd38] sm:$0xff]  ;;  %v447_v15 = vld [vmem:[#allocation2 + $0xd40] sm:$0xff] }
  0xe7   :  { %v448_v16 = vld [vmem:[#allocation2 + $0xd48] sm:$0xff]  ;;  %3512 = vst [vmem:[#allocation5 + $0xd08] sm:$0xff] %v4553_v5  ;;  %3513 = vst [vmem:[#allocation5 + $0xd10] sm:$0xff] %v4554_v6  ;;  %v4559_v17 = vclamps-f32 %v446_v14, 1.0  ;;  %v4560_v18 = vclamps-f32 %v447_v15, 1.0  ;;  %v449_v20 = vld [vmem:[#allocation2 + $0xd50] sm:$0xff] }
  0xe8   :  { %3514 = vst [vmem:[#allocation5 + $0xd18] sm:$0xff] %v4555_v7  ;;  %v4561_v19 = vclamps-f32 %v448_v16, 1.0  ;;  %v450_v21 = vld [vmem:[#allocation2 + $0xd58] sm:$0xff]  ;;  %v451_v22 = vld [vmem:[#allocation2 + $0xd60] sm:$0xff]  ;;  %3515 = vst [vmem:[#allocation5 + $0xd20] sm:$0xff] %v4556_v11  ;;  %v4562_v23 = vclamps-f32 %v449_v20, 1.0 }
  0xe9   :  { %3516 = vst [vmem:[#allocation5 + $0xd28] sm:$0xff] %v4557_v12  ;;  %3517 = vst [vmem:[#allocation5 + $0xd30] sm:$0xff] %v4558_v13  ;;  %v4563_v24 = vclamps-f32 %v450_v21, 1.0  ;;  %v4564_v25 = vclamps-f32 %v451_v22, 1.0  ;;  %v452_v26 = vld [vmem:[#allocation2 + $0xd68] sm:$0xff]  ;;  %v453_v27 = vld [vmem:[#allocation2 + $0xd70] sm:$0xff] }
  0xea   :  { %v454_v28 = vld [vmem:[#allocation2 + $0xd78] sm:$0xff]  ;;  %3518 = vst [vmem:[#allocation5 + $0xd38] sm:$0xff] %v4559_v17  ;;  %3519 = vst [vmem:[#allocation5 + $0xd40] sm:$0xff] %v4560_v18  ;;  %v4565_v29 = vclamps-f32 %v452_v26, 1.0  ;;  %v4566_v30 = vclamps-f32 %v453_v27, 1.0  ;;  %v455_v32 = vld [vmem:[#allocation2 + $0xd80] sm:$0xff] }
  0xeb   :  { %3520 = vst [vmem:[#allocation5 + $0xd48] sm:$0xff] %v4561_v19  ;;  %v4567_v31 = vclamps-f32 %v454_v28, 1.0  ;;  %v456_v33 = vld [vmem:[#allocation2 + $0xd88] sm:$0xff]  ;;  %v457_v34 = vld [vmem:[#allocation2 + $0xd90] sm:$0xff]  ;;  %3521 = vst [vmem:[#allocation5 + $0xd50] sm:$0xff] %v4562_v23  ;;  %v4568_v35 = vclamps-f32 %v455_v32, 1.0 }
  0xec   :  { %3522 = vst [vmem:[#allocation5 + $0xd58] sm:$0xff] %v4563_v24  ;;  %3523 = vst [vmem:[#allocation5 + $0xd60] sm:$0xff] %v4564_v25  ;;  %v4569_v36 = vclamps-f32 %v456_v33, 1.0  ;;  %v4570_v37 = vclamps-f32 %v457_v34, 1.0  ;;  %v458_v38 = vld [vmem:[#allocation2 + $0xd98] sm:$0xff]  ;;  %v459_v39 = vld [vmem:[#allocation2 + $0xda0] sm:$0xff] }
  0xed   :  { %v460_v40 = vld [vmem:[#allocation2 + $0xda8] sm:$0xff]  ;;  %3524 = vst [vmem:[#allocation5 + $0xd68] sm:$0xff] %v4565_v29  ;;  %3525 = vst [vmem:[#allocation5 + $0xd70] sm:$0xff] %v4566_v30  ;;  %v4571_v41 = vclamps-f32 %v458_v38, 1.0  ;;  %v4572_v42 = vclamps-f32 %v459_v39, 1.0  ;;  %v461_v44 = vld [vmem:[#allocation2 + $0xdb0] sm:$0xff] }
  0xee   :  { %3526 = vst [vmem:[#allocation5 + $0xd78] sm:$0xff] %v4567_v31  ;;  %v4573_v43 = vclamps-f32 %v460_v40, 1.0  ;;  %v462_v45 = vld [vmem:[#allocation2 + $0xdb8] sm:$0xff]  ;;  %v463_v46 = vld [vmem:[#allocation2 + $0xdc0] sm:$0xff]  ;;  %3527 = vst [vmem:[#allocation5 + $0xd80] sm:$0xff] %v4568_v35  ;;  %v4574_v47 = vclamps-f32 %v461_v44, 1.0 }
  0xef   :  { %3528 = vst [vmem:[#allocation5 + $0xd88] sm:$0xff] %v4569_v36  ;;  %3529 = vst [vmem:[#allocation5 + $0xd90] sm:$0xff] %v4570_v37  ;;  %v4575_v48 = vclamps-f32 %v462_v45, 1.0  ;;  %v4576_v49 = vclamps-f32 %v463_v46, 1.0  ;;  %v464_v50 = vld [vmem:[#allocation2 + $0xdc8] sm:$0xff]  ;;  %v465_v51 = vld [vmem:[#allocation2 + $0xdd0] sm:$0xff] }
  0xf0   :  { %v466_v52 = vld [vmem:[#allocation2 + $0xdd8] sm:$0xff]  ;;  %3530 = vst [vmem:[#allocation5 + $0xd98] sm:$0xff] %v4571_v41  ;;  %3531 = vst [vmem:[#allocation5 + $0xda0] sm:$0xff] %v4572_v42  ;;  %v4577_v53 = vclamps-f32 %v464_v50, 1.0  ;;  %v4578_v54 = vclamps-f32 %v465_v51, 1.0  ;;  %v467_v56 = vld [vmem:[#allocation2 + $0xde0] sm:$0xff] }
  0xf1   :  { %3532 = vst [vmem:[#allocation5 + $0xda8] sm:$0xff] %v4573_v43  ;;  %v4579_v55 = vclamps-f32 %v466_v52, 1.0  ;;  %v468_v57 = vld [vmem:[#allocation2 + $0xde8] sm:$0xff]  ;;  %v469_v58 = vld [vmem:[#allocation2 + $0xdf0] sm:$0xff]  ;;  %3533 = vst [vmem:[#allocation5 + $0xdb0] sm:$0xff] %v4574_v47  ;;  %v4580_v59 = vclamps-f32 %v467_v56, 1.0 }
  0xf2   :  { %3534 = vst [vmem:[#allocation5 + $0xdb8] sm:$0xff] %v4575_v48  ;;  %3535 = vst [vmem:[#allocation5 + $0xdc0] sm:$0xff] %v4576_v49  ;;  %v4581_v60 = vclamps-f32 %v468_v57, 1.0  ;;  %v4582_v61 = vclamps-f32 %v469_v58, 1.0  ;;  %v470_v62 = vld [vmem:[#allocation2 + $0xdf8] sm:$0xff]  ;;  %v471_v63 = vld [vmem:[#allocation2 + $0xe00] sm:$0xff] }
  0xf3   :  { %v472_v0 = vld [vmem:[#allocation2 + $0xe08] sm:$0xff]  ;;  %3536 = vst [vmem:[#allocation5 + $0xdc8] sm:$0xff] %v4577_v53  ;;  %3537 = vst [vmem:[#allocation5 + $0xdd0] sm:$0xff] %v4578_v54  ;;  %v4583_v1 = vclamps-f32 %v470_v62, 1.0  ;;  %v4584_v2 = vclamps-f32 %v471_v63, 1.0  ;;  %v473_v4 = vld [vmem:[#allocation2 + $0xe10] sm:$0xff] }
  0xf4   :  { %3538 = vst [vmem:[#allocation5 + $0xdd8] sm:$0xff] %v4579_v55  ;;  %v4585_v3 = vclamps-f32 %v472_v0, 1.0  ;;  %v474_v5 = vld [vmem:[#allocation2 + $0xe18] sm:$0xff]  ;;  %v475_v6 = vld [vmem:[#allocation2 + $0xe20] sm:$0xff]  ;;  %3539 = vst [vmem:[#allocation5 + $0xde0] sm:$0xff] %v4580_v59  ;;  %v4586_v7 = vclamps-f32 %v473_v4, 1.0 }
  0xf5   :  { %3540 = vst [vmem:[#allocation5 + $0xde8] sm:$0xff] %v4581_v60  ;;  %3541 = vst [vmem:[#allocation5 + $0xdf0] sm:$0xff] %v4582_v61  ;;  %v4587_v8 = vclamps-f32 %v474_v5, 1.0  ;;  %v4588_v9 = vclamps-f32 %v475_v6, 1.0  ;;  %v476_v10 = vld [vmem:[#allocation2 + $0xe28] sm:$0xff]  ;;  %v477_v11 = vld [vmem:[#allocation2 + $0xe30] sm:$0xff] }
  0xf6   :  { %v478_v12 = vld [vmem:[#allocation2 + $0xe38] sm:$0xff]  ;;  %3542 = vst [vmem:[#allocation5 + $0xdf8] sm:$0xff] %v4583_v1  ;;  %3543 = vst [vmem:[#allocation5 + $0xe00] sm:$0xff] %v4584_v2  ;;  %v4589_v13 = vclamps-f32 %v476_v10, 1.0  ;;  %v4590_v14 = vclamps-f32 %v477_v11, 1.0  ;;  %v479_v16 = vld [vmem:[#allocation2 + $0xe40] sm:$0xff] }
  0xf7   :  { %3544 = vst [vmem:[#allocation5 + $0xe08] sm:$0xff] %v4585_v3  ;;  %v4591_v15 = vclamps-f32 %v478_v12, 1.0  ;;  %v480_v17 = vld [vmem:[#allocation2 + $0xe48] sm:$0xff]  ;;  %v481_v18 = vld [vmem:[#allocation2 + $0xe50] sm:$0xff]  ;;  %3545 = vst [vmem:[#allocation5 + $0xe10] sm:$0xff] %v4586_v7  ;;  %v4592_v19 = vclamps-f32 %v479_v16, 1.0 }
  0xf8   :  { %3546 = vst [vmem:[#allocation5 + $0xe18] sm:$0xff] %v4587_v8  ;;  %3547 = vst [vmem:[#allocation5 + $0xe20] sm:$0xff] %v4588_v9  ;;  %v4593_v20 = vclamps-f32 %v480_v17, 1.0  ;;  %v4594_v21 = vclamps-f32 %v481_v18, 1.0  ;;  %v482_v22 = vld [vmem:[#allocation2 + $0xe58] sm:$0xff]  ;;  %v483_v23 = vld [vmem:[#allocation2 + $0xe60] sm:$0xff] }
  0xf9   :  { %v484_v24 = vld [vmem:[#allocation2 + $0xe68] sm:$0xff]  ;;  %3548 = vst [vmem:[#allocation5 + $0xe28] sm:$0xff] %v4589_v13  ;;  %3549 = vst [vmem:[#allocation5 + $0xe30] sm:$0xff] %v4590_v14  ;;  %v4595_v25 = vclamps-f32 %v482_v22, 1.0  ;;  %v4596_v26 = vclamps-f32 %v483_v23, 1.0  ;;  %v485_v28 = vld [vmem:[#allocation2 + $0xe70] sm:$0xff] }
  0xfa   :  { %3550 = vst [vmem:[#allocation5 + $0xe38] sm:$0xff] %v4591_v15  ;;  %v4597_v27 = vclamps-f32 %v484_v24, 1.0  ;;  %v486_v29 = vld [vmem:[#allocation2 + $0xe78] sm:$0xff]  ;;  %v487_v30 = vld [vmem:[#allocation2 + $0xe80] sm:$0xff]  ;;  %3551 = vst [vmem:[#allocation5 + $0xe40] sm:$0xff] %v4592_v19  ;;  %v4598_v31 = vclamps-f32 %v485_v28, 1.0 }
  0xfb   :  { %3552 = vst [vmem:[#allocation5 + $0xe48] sm:$0xff] %v4593_v20  ;;  %3553 = vst [vmem:[#allocation5 + $0xe50] sm:$0xff] %v4594_v21  ;;  %v4599_v32 = vclamps-f32 %v486_v29, 1.0  ;;  %v4600_v33 = vclamps-f32 %v487_v30, 1.0  ;;  %v488_v34 = vld [vmem:[#allocation2 + $0xe88] sm:$0xff]  ;;  %v489_v35 = vld [vmem:[#allocation2 + $0xe90] sm:$0xff] }
  0xfc   :  { %v490_v36 = vld [vmem:[#allocation2 + $0xe98] sm:$0xff]  ;;  %3554 = vst [vmem:[#allocation5 + $0xe58] sm:$0xff] %v4595_v25  ;;  %3555 = vst [vmem:[#allocation5 + $0xe60] sm:$0xff] %v4596_v26  ;;  %v4601_v37 = vclamps-f32 %v488_v34, 1.0  ;;  %v4602_v38 = vclamps-f32 %v489_v35, 1.0  ;;  %v491_v40 = vld [vmem:[#allocation2 + $0xea0] sm:$0xff] }
  0xfd   :  { %3556 = vst [vmem:[#allocation5 + $0xe68] sm:$0xff] %v4597_v27  ;;  %v4603_v39 = vclamps-f32 %v490_v36, 1.0  ;;  %v492_v41 = vld [vmem:[#allocation2 + $0xea8] sm:$0xff]  ;;  %v493_v42 = vld [vmem:[#allocation2 + $0xeb0] sm:$0xff]  ;;  %3557 = vst [vmem:[#allocation5 + $0xe70] sm:$0xff] %v4598_v31  ;;  %v4604_v43 = vclamps-f32 %v491_v40, 1.0 }
  0xfe   :  { %3558 = vst [vmem:[#allocation5 + $0xe78] sm:$0xff] %v4599_v32  ;;  %3559 = vst [vmem:[#allocation5 + $0xe80] sm:$0xff] %v4600_v33  ;;  %v4605_v44 = vclamps-f32 %v492_v41, 1.0  ;;  %v4606_v45 = vclamps-f32 %v493_v42, 1.0  ;;  %v494_v46 = vld [vmem:[#allocation2 + $0xeb8] sm:$0xff]  ;;  %v495_v47 = vld [vmem:[#allocation2 + $0xec0] sm:$0xff] }
  0xff   :  { %v496_v48 = vld [vmem:[#allocation2 + $0xec8] sm:$0xff]  ;;  %3560 = vst [vmem:[#allocation5 + $0xe88] sm:$0xff] %v4601_v37  ;;  %3561 = vst [vmem:[#allocation5 + $0xe90] sm:$0xff] %v4602_v38  ;;  %v4607_v49 = vclamps-f32 %v494_v46, 1.0  ;;  %v4608_v50 = vclamps-f32 %v495_v47, 1.0  ;;  %v497_v52 = vld [vmem:[#allocation2 + $0xed0] sm:$0xff] }
 0x100   :  { %3562 = vst [vmem:[#allocation5 + $0xe98] sm:$0xff] %v4603_v39  ;;  %v4609_v51 = vclamps-f32 %v496_v48, 1.0  ;;  %v498_v53 = vld [vmem:[#allocation2 + $0xed8] sm:$0xff]  ;;  %v499_v54 = vld [vmem:[#allocation2 + $0xee0] sm:$0xff]  ;;  %3563 = vst [vmem:[#allocation5 + $0xea0] sm:$0xff] %v4604_v43  ;;  %v4610_v55 = vclamps-f32 %v497_v52, 1.0 }
 0x101   :  { %3564 = vst [vmem:[#allocation5 + $0xea8] sm:$0xff] %v4605_v44  ;;  %3565 = vst [vmem:[#allocation5 + $0xeb0] sm:$0xff] %v4606_v45  ;;  %v4611_v56 = vclamps-f32 %v498_v53, 1.0  ;;  %v4612_v57 = vclamps-f32 %v499_v54, 1.0  ;;  %v500_v58 = vld [vmem:[#allocation2 + $0xee8] sm:$0xff]  ;;  %v501_v59 = vld [vmem:[#allocation2 + $0xef0] sm:$0xff] }
 0x102   :  { %v502_v60 = vld [vmem:[#allocation2 + $0xef8] sm:$0xff]  ;;  %3566 = vst [vmem:[#allocation5 + $0xeb8] sm:$0xff] %v4607_v49  ;;  %3567 = vst [vmem:[#allocation5 + $0xec0] sm:$0xff] %v4608_v50  ;;  %v4613_v61 = vclamps-f32 %v500_v58, 1.0  ;;  %v4614_v62 = vclamps-f32 %v501_v59, 1.0  ;;  %v503_v0 = vld [vmem:[#allocation2 + $0xf00] sm:$0xff] }
 0x103   :  { %3568 = vst [vmem:[#allocation5 + $0xec8] sm:$0xff] %v4609_v51  ;;  %v4615_v63 = vclamps-f32 %v502_v60, 1.0  ;;  %v504_v1 = vld [vmem:[#allocation2 + $0xf08] sm:$0xff]  ;;  %v505_v2 = vld [vmem:[#allocation2 + $0xf10] sm:$0xff]  ;;  %3569 = vst [vmem:[#allocation5 + $0xed0] sm:$0xff] %v4610_v55  ;;  %v4616_v3 = vclamps-f32 %v503_v0, 1.0 }
 0x104   :  { %3570 = vst [vmem:[#allocation5 + $0xed8] sm:$0xff] %v4611_v56  ;;  %3571 = vst [vmem:[#allocation5 + $0xee0] sm:$0xff] %v4612_v57  ;;  %v4617_v4 = vclamps-f32 %v504_v1, 1.0  ;;  %v4618_v5 = vclamps-f32 %v505_v2, 1.0  ;;  %v506_v6 = vld [vmem:[#allocation2 + $0xf18] sm:$0xff]  ;;  %v507_v7 = vld [vmem:[#allocation2 + $0xf20] sm:$0xff] }
 0x105   :  { %v508_v8 = vld [vmem:[#allocation2 + $0xf28] sm:$0xff]  ;;  %3572 = vst [vmem:[#allocation5 + $0xee8] sm:$0xff] %v4613_v61  ;;  %3573 = vst [vmem:[#allocation5 + $0xef0] sm:$0xff] %v4614_v62  ;;  %v4619_v9 = vclamps-f32 %v506_v6, 1.0  ;;  %v4620_v10 = vclamps-f32 %v507_v7, 1.0  ;;  %v509_v12 = vld [vmem:[#allocation2 + $0xf30] sm:$0xff] }
 0x106   :  { %3574 = vst [vmem:[#allocation5 + $0xef8] sm:$0xff] %v4615_v63  ;;  %v4621_v11 = vclamps-f32 %v508_v8, 1.0  ;;  %v510_v13 = vld [vmem:[#allocation2 + $0xf38] sm:$0xff]  ;;  %v511_v14 = vld [vmem:[#allocation2 + $0xf40] sm:$0xff]  ;;  %3575 = vst [vmem:[#allocation5 + $0xf00] sm:$0xff] %v4616_v3  ;;  %v4622_v15 = vclamps-f32 %v509_v12, 1.0 }
 0x107   :  { %3576 = vst [vmem:[#allocation5 + $0xf08] sm:$0xff] %v4617_v4  ;;  %3577 = vst [vmem:[#allocation5 + $0xf10] sm:$0xff] %v4618_v5  ;;  %v4623_v16 = vclamps-f32 %v510_v13, 1.0  ;;  %v4624_v17 = vclamps-f32 %v511_v14, 1.0  ;;  %v512_v18 = vld [vmem:[#allocation2 + $0xf48] sm:$0xff]  ;;  %v513_v19 = vld [vmem:[#allocation2 + $0xf50] sm:$0xff] }
 0x108   :  { %v514_v20 = vld [vmem:[#allocation2 + $0xf58] sm:$0xff]  ;;  %3578 = vst [vmem:[#allocation5 + $0xf18] sm:$0xff] %v4619_v9  ;;  %3579 = vst [vmem:[#allocation5 + $0xf20] sm:$0xff] %v4620_v10  ;;  %v4625_v21 = vclamps-f32 %v512_v18, 1.0  ;;  %v4626_v22 = vclamps-f32 %v513_v19, 1.0  ;;  %v515_v24 = vld [vmem:[#allocation2 + $0xf60] sm:$0xff] }
 0x109   :  { %3580 = vst [vmem:[#allocation5 + $0xf28] sm:$0xff] %v4621_v11  ;;  %v4627_v23 = vclamps-f32 %v514_v20, 1.0  ;;  %v516_v25 = vld [vmem:[#allocation2 + $0xf68] sm:$0xff]  ;;  %v517_v26 = vld [vmem:[#allocation2 + $0xf70] sm:$0xff]  ;;  %3581 = vst [vmem:[#allocation5 + $0xf30] sm:$0xff] %v4622_v15  ;;  %v4628_v27 = vclamps-f32 %v515_v24, 1.0 }
 0x10a   :  { %3582 = vst [vmem:[#allocation5 + $0xf38] sm:$0xff] %v4623_v16  ;;  %3583 = vst [vmem:[#allocation5 + $0xf40] sm:$0xff] %v4624_v17  ;;  %v4629_v28 = vclamps-f32 %v516_v25, 1.0  ;;  %v4630_v29 = vclamps-f32 %v517_v26, 1.0  ;;  %v518_v30 = vld [vmem:[#allocation2 + $0xf78] sm:$0xff]  ;;  %v519_v31 = vld [vmem:[#allocation2 + $0xf80] sm:$0xff] }
 0x10b   :  { %v520_v32 = vld [vmem:[#allocation2 + $0xf88] sm:$0xff]  ;;  %3584 = vst [vmem:[#allocation5 + $0xf48] sm:$0xff] %v4625_v21  ;;  %3585 = vst [vmem:[#allocation5 + $0xf50] sm:$0xff] %v4626_v22  ;;  %v4631_v33 = vclamps-f32 %v518_v30, 1.0  ;;  %v4632_v34 = vclamps-f32 %v519_v31, 1.0  ;;  %v521_v36 = vld [vmem:[#allocation2 + $0xf90] sm:$0xff] }
 0x10c   :  { %3586 = vst [vmem:[#allocation5 + $0xf58] sm:$0xff] %v4627_v23  ;;  %v4633_v35 = vclamps-f32 %v520_v32, 1.0  ;;  %v522_v37 = vld [vmem:[#allocation2 + $0xf98] sm:$0xff]  ;;  %v523_v38 = vld [vmem:[#allocation2 + $0xfa0] sm:$0xff]  ;;  %3587 = vst [vmem:[#allocation5 + $0xf60] sm:$0xff] %v4628_v27  ;;  %v4634_v39 = vclamps-f32 %v521_v36, 1.0 }
 0x10d   :  { %3588 = vst [vmem:[#allocation5 + $0xf68] sm:$0xff] %v4629_v28  ;;  %3589 = vst [vmem:[#allocation5 + $0xf70] sm:$0xff] %v4630_v29  ;;  %v4635_v40 = vclamps-f32 %v522_v37, 1.0  ;;  %v4636_v41 = vclamps-f32 %v523_v38, 1.0  ;;  %v524_v42 = vld [vmem:[#allocation2 + $0xfa8] sm:$0xff]  ;;  %v525_v43 = vld [vmem:[#allocation2 + $0xfb0] sm:$0xff] }
 0x10e   :  { %v526_v44 = vld [vmem:[#allocation2 + $0xfb8] sm:$0xff]  ;;  %3590 = vst [vmem:[#allocation5 + $0xf78] sm:$0xff] %v4631_v33  ;;  %3591 = vst [vmem:[#allocation5 + $0xf80] sm:$0xff] %v4632_v34  ;;  %v4637_v45 = vclamps-f32 %v524_v42, 1.0  ;;  %v4638_v46 = vclamps-f32 %v525_v43, 1.0  ;;  %v527_v48 = vld [vmem:[#allocation2 + $0xfc0] sm:$0xff] }
 0x10f   :  { %3592 = vst [vmem:[#allocation5 + $0xf88] sm:$0xff] %v4633_v35  ;;  %v4639_v47 = vclamps-f32 %v526_v44, 1.0  ;;  %v528_v49 = vld [vmem:[#allocation2 + $0xfc8] sm:$0xff]  ;;  %v529_v50 = vld [vmem:[#allocation2 + $0xfd0] sm:$0xff]  ;;  %3593 = vst [vmem:[#allocation5 + $0xf90] sm:$0xff] %v4634_v39  ;;  %v4640_v51 = vclamps-f32 %v527_v48, 1.0 }
 0x110   :  { %3594 = vst [vmem:[#allocation5 + $0xf98] sm:$0xff] %v4635_v40  ;;  %3595 = vst [vmem:[#allocation5 + $0xfa0] sm:$0xff] %v4636_v41  ;;  %v4641_v52 = vclamps-f32 %v528_v49, 1.0  ;;  %v4642_v53 = vclamps-f32 %v529_v50, 1.0  ;;  %v530_v54 = vld [vmem:[#allocation2 + $0xfd8] sm:$0xff]  ;;  %v531_v55 = vld [vmem:[#allocation2 + $0xfe0] sm:$0xff] }
 0x111   :  { %v532_v56 = vld [vmem:[#allocation2 + $0xfe8] sm:$0xff]  ;;  %3596 = vst [vmem:[#allocation5 + $0xfa8] sm:$0xff] %v4637_v45  ;;  %3597 = vst [vmem:[#allocation5 + $0xfb0] sm:$0xff] %v4638_v46  ;;  %v4643_v57 = vclamps-f32 %v530_v54, 1.0  ;;  %v4644_v58 = vclamps-f32 %v531_v55, 1.0  ;;  %v533_v60 = vld [vmem:[#allocation2 + $0xff0] sm:$0xff] }
 0x112   :  { %3598 = vst [vmem:[#allocation5 + $0xfb8] sm:$0xff] %v4639_v47  ;;  %v4645_v59 = vclamps-f32 %v532_v56, 1.0  ;;  %v534_v61 = vld [vmem:[#allocation2 + $0xff8] sm:$0xff]  ;;  %v535_v62 = vld [vmem:[#allocation2 + $0x1000] sm:$0xff]  ;;  %3599 = vst [vmem:[#allocation5 + $0xfc0] sm:$0xff] %v4640_v51  ;;  %v4646_v63 = vclamps-f32 %v533_v60, 1.0 }
 0x113   :  { %3600 = vst [vmem:[#allocation5 + $0xfc8] sm:$0xff] %v4641_v52  ;;  %3601 = vst [vmem:[#allocation5 + $0xfd0] sm:$0xff] %v4642_v53  ;;  %v4647_v0 = vclamps-f32 %v534_v61, 1.0  ;;  %v4648_v1 = vclamps-f32 %v535_v62, 1.0  ;;  %v536_v2 = vld [vmem:[#allocation2 + $0x1008] sm:$0xff]  ;;  %v537_v3 = vld [vmem:[#allocation2 + $0x1010] sm:$0xff] }
 0x114   :  { %v538_v4 = vld [vmem:[#allocation2 + $0x1018] sm:$0xff]  ;;  %3602 = vst [vmem:[#allocation5 + $0xfd8] sm:$0xff] %v4643_v57  ;;  %3603 = vst [vmem:[#allocation5 + $0xfe0] sm:$0xff] %v4644_v58  ;;  %v4649_v5 = vclamps-f32 %v536_v2, 1.0  ;;  %v4650_v6 = vclamps-f32 %v537_v3, 1.0  ;;  %v539_v8 = vld [vmem:[#allocation2 + $0x1020] sm:$0xff] }
 0x115   :  { %3604 = vst [vmem:[#allocation5 + $0xfe8] sm:$0xff] %v4645_v59  ;;  %v4651_v7 = vclamps-f32 %v538_v4, 1.0  ;;  %v540_v9 = vld [vmem:[#allocation2 + $0x1028] sm:$0xff]  ;;  %v541_v10 = vld [vmem:[#allocation2 + $0x1030] sm:$0xff]  ;;  %3605 = vst [vmem:[#allocation5 + $0xff0] sm:$0xff] %v4646_v63  ;;  %v4652_v11 = vclamps-f32 %v539_v8, 1.0 }
 0x116   :  { %3606 = vst [vmem:[#allocation5 + $0xff8] sm:$0xff] %v4647_v0  ;;  %3607 = vst [vmem:[#allocation5 + $0x1000] sm:$0xff] %v4648_v1  ;;  %v4653_v12 = vclamps-f32 %v540_v9, 1.0  ;;  %v4654_v13 = vclamps-f32 %v541_v10, 1.0  ;;  %v542_v14 = vld [vmem:[#allocation2 + $0x1038] sm:$0xff]  ;;  %v543_v15 = vld [vmem:[#allocation2 + $0x1040] sm:$0xff] }
 0x117   :  { %v544_v16 = vld [vmem:[#allocation2 + $0x1048] sm:$0xff]  ;;  %3608 = vst [vmem:[#allocation5 + $0x1008] sm:$0xff] %v4649_v5  ;;  %3609 = vst [vmem:[#allocation5 + $0x1010] sm:$0xff] %v4650_v6  ;;  %v4655_v17 = vclamps-f32 %v542_v14, 1.0  ;;  %v4656_v18 = vclamps-f32 %v543_v15, 1.0  ;;  %v545_v20 = vld [vmem:[#allocation2 + $0x1050] sm:$0xff] }
 0x118   :  { %3610 = vst [vmem:[#allocation5 + $0x1018] sm:$0xff] %v4651_v7  ;;  %v4657_v19 = vclamps-f32 %v544_v16, 1.0  ;;  %v546_v21 = vld [vmem:[#allocation2 + $0x1058] sm:$0xff]  ;;  %v547_v22 = vld [vmem:[#allocation2 + $0x1060] sm:$0xff]  ;;  %3611 = vst [vmem:[#allocation5 + $0x1020] sm:$0xff] %v4652_v11  ;;  %v4658_v23 = vclamps-f32 %v545_v20, 1.0 }
 0x119   :  { %3612 = vst [vmem:[#allocation5 + $0x1028] sm:$0xff] %v4653_v12  ;;  %3613 = vst [vmem:[#allocation5 + $0x1030] sm:$0xff] %v4654_v13  ;;  %v4659_v24 = vclamps-f32 %v546_v21, 1.0  ;;  %v4660_v25 = vclamps-f32 %v547_v22, 1.0  ;;  %v548_v26 = vld [vmem:[#allocation2 + $0x1068] sm:$0xff]  ;;  %v549_v27 = vld [vmem:[#allocation2 + $0x1070] sm:$0xff] }
 0x11a   :  { %v550_v28 = vld [vmem:[#allocation2 + $0x1078] sm:$0xff]  ;;  %3614 = vst [vmem:[#allocation5 + $0x1038] sm:$0xff] %v4655_v17  ;;  %3615 = vst [vmem:[#allocation5 + $0x1040] sm:$0xff] %v4656_v18  ;;  %v4661_v29 = vclamps-f32 %v548_v26, 1.0  ;;  %v4662_v30 = vclamps-f32 %v549_v27, 1.0  ;;  %v551_v32 = vld [vmem:[#allocation2 + $0x1080] sm:$0xff] }
 0x11b   :  { %3616 = vst [vmem:[#allocation5 + $0x1048] sm:$0xff] %v4657_v19  ;;  %v4663_v31 = vclamps-f32 %v550_v28, 1.0  ;;  %v552_v33 = vld [vmem:[#allocation2 + $0x1088] sm:$0xff]  ;;  %v553_v34 = vld [vmem:[#allocation2 + $0x1090] sm:$0xff]  ;;  %3617 = vst [vmem:[#allocation5 + $0x1050] sm:$0xff] %v4658_v23  ;;  %v4664_v35 = vclamps-f32 %v551_v32, 1.0 }
 0x11c   :  { %3618 = vst [vmem:[#allocation5 + $0x1058] sm:$0xff] %v4659_v24  ;;  %3619 = vst [vmem:[#allocation5 + $0x1060] sm:$0xff] %v4660_v25  ;;  %v4665_v36 = vclamps-f32 %v552_v33, 1.0  ;;  %v4666_v37 = vclamps-f32 %v553_v34, 1.0  ;;  %v554_v38 = vld [vmem:[#allocation2 + $0x1098] sm:$0xff]  ;;  %v555_v39 = vld [vmem:[#allocation2 + $0x10a0] sm:$0xff] }
 0x11d   :  { %v556_v40 = vld [vmem:[#allocation2 + $0x10a8] sm:$0xff]  ;;  %3620 = vst [vmem:[#allocation5 + $0x1068] sm:$0xff] %v4661_v29  ;;  %3621 = vst [vmem:[#allocation5 + $0x1070] sm:$0xff] %v4662_v30  ;;  %v4667_v41 = vclamps-f32 %v554_v38, 1.0  ;;  %v4668_v42 = vclamps-f32 %v555_v39, 1.0  ;;  %v557_v44 = vld [vmem:[#allocation2 + $0x10b0] sm:$0xff] }
 0x11e   :  { %3622 = vst [vmem:[#allocation5 + $0x1078] sm:$0xff] %v4663_v31  ;;  %v4669_v43 = vclamps-f32 %v556_v40, 1.0  ;;  %v558_v45 = vld [vmem:[#allocation2 + $0x10b8] sm:$0xff]  ;;  %v559_v46 = vld [vmem:[#allocation2 + $0x10c0] sm:$0xff]  ;;  %3623 = vst [vmem:[#allocation5 + $0x1080] sm:$0xff] %v4664_v35  ;;  %v4670_v47 = vclamps-f32 %v557_v44, 1.0 }
 0x11f   :  { %3624 = vst [vmem:[#allocation5 + $0x1088] sm:$0xff] %v4665_v36  ;;  %3625 = vst [vmem:[#allocation5 + $0x1090] sm:$0xff] %v4666_v37  ;;  %v4671_v48 = vclamps-f32 %v558_v45, 1.0  ;;  %v4672_v49 = vclamps-f32 %v559_v46, 1.0  ;;  %v560_v50 = vld [vmem:[#allocation2 + $0x10c8] sm:$0xff]  ;;  %v561_v51 = vld [vmem:[#allocation2 + $0x10d0] sm:$0xff] }
 0x120   :  { %v562_v52 = vld [vmem:[#allocation2 + $0x10d8] sm:$0xff]  ;;  %3626 = vst [vmem:[#allocation5 + $0x1098] sm:$0xff] %v4667_v41  ;;  %3627 = vst [vmem:[#allocation5 + $0x10a0] sm:$0xff] %v4668_v42  ;;  %v4673_v53 = vclamps-f32 %v560_v50, 1.0  ;;  %v4674_v54 = vclamps-f32 %v561_v51, 1.0  ;;  %v563_v56 = vld [vmem:[#allocation2 + $0x10e0] sm:$0xff] }
 0x121   :  { %3628 = vst [vmem:[#allocation5 + $0x10a8] sm:$0xff] %v4669_v43  ;;  %v4675_v55 = vclamps-f32 %v562_v52, 1.0  ;;  %v564_v57 = vld [vmem:[#allocation2 + $0x10e8] sm:$0xff]  ;;  %v565_v58 = vld [vmem:[#allocation2 + $0x10f0] sm:$0xff]  ;;  %3629 = vst [vmem:[#allocation5 + $0x10b0] sm:$0xff] %v4670_v47  ;;  %v4676_v59 = vclamps-f32 %v563_v56, 1.0 }
 0x122   :  { %3630 = vst [vmem:[#allocation5 + $0x10b8] sm:$0xff] %v4671_v48  ;;  %3631 = vst [vmem:[#allocation5 + $0x10c0] sm:$0xff] %v4672_v49  ;;  %v4677_v60 = vclamps-f32 %v564_v57, 1.0  ;;  %v4678_v61 = vclamps-f32 %v565_v58, 1.0  ;;  %v566_v62 = vld [vmem:[#allocation2 + $0x10f8] sm:$0xff]  ;;  %v567_v63 = vld [vmem:[#allocation2 + $0x1100] sm:$0xff] }
 0x123   :  { %v568_v0 = vld [vmem:[#allocation2 + $0x1108] sm:$0xff]  ;;  %3632 = vst [vmem:[#allocation5 + $0x10c8] sm:$0xff] %v4673_v53  ;;  %3633 = vst [vmem:[#allocation5 + $0x10d0] sm:$0xff] %v4674_v54  ;;  %v4679_v1 = vclamps-f32 %v566_v62, 1.0  ;;  %v4680_v2 = vclamps-f32 %v567_v63, 1.0  ;;  %v569_v4 = vld [vmem:[#allocation2 + $0x1110] sm:$0xff] }
 0x124   :  { %3634 = vst [vmem:[#allocation5 + $0x10d8] sm:$0xff] %v4675_v55  ;;  %v4681_v3 = vclamps-f32 %v568_v0, 1.0  ;;  %v570_v5 = vld [vmem:[#allocation2 + $0x1118] sm:$0xff]  ;;  %v571_v6 = vld [vmem:[#allocation2 + $0x1120] sm:$0xff]  ;;  %3635 = vst [vmem:[#allocation5 + $0x10e0] sm:$0xff] %v4676_v59  ;;  %v4682_v7 = vclamps-f32 %v569_v4, 1.0 }
 0x125   :  { %3636 = vst [vmem:[#allocation5 + $0x10e8] sm:$0xff] %v4677_v60  ;;  %3637 = vst [vmem:[#allocation5 + $0x10f0] sm:$0xff] %v4678_v61  ;;  %v4683_v8 = vclamps-f32 %v570_v5, 1.0  ;;  %v4684_v9 = vclamps-f32 %v571_v6, 1.0  ;;  %v572_v10 = vld [vmem:[#allocation2 + $0x1128] sm:$0xff]  ;;  %v573_v11 = vld [vmem:[#allocation2 + $0x1130] sm:$0xff] }
 0x126   :  { %v574_v12 = vld [vmem:[#allocation2 + $0x1138] sm:$0xff]  ;;  %3638 = vst [vmem:[#allocation5 + $0x10f8] sm:$0xff] %v4679_v1  ;;  %3639 = vst [vmem:[#allocation5 + $0x1100] sm:$0xff] %v4680_v2  ;;  %v4685_v13 = vclamps-f32 %v572_v10, 1.0  ;;  %v4686_v14 = vclamps-f32 %v573_v11, 1.0  ;;  %v575_v16 = vld [vmem:[#allocation2 + $0x1140] sm:$0xff] }
 0x127   :  { %3640 = vst [vmem:[#allocation5 + $0x1108] sm:$0xff] %v4681_v3  ;;  %v4687_v15 = vclamps-f32 %v574_v12, 1.0  ;;  %v576_v17 = vld [vmem:[#allocation2 + $0x1148] sm:$0xff]  ;;  %v577_v18 = vld [vmem:[#allocation2 + $0x1150] sm:$0xff]  ;;  %3641 = vst [vmem:[#allocation5 + $0x1110] sm:$0xff] %v4682_v7  ;;  %v4688_v19 = vclamps-f32 %v575_v16, 1.0 }
 0x128   :  { %3642 = vst [vmem:[#allocation5 + $0x1118] sm:$0xff] %v4683_v8  ;;  %3643 = vst [vmem:[#allocation5 + $0x1120] sm:$0xff] %v4684_v9  ;;  %v4689_v20 = vclamps-f32 %v576_v17, 1.0  ;;  %v4690_v21 = vclamps-f32 %v577_v18, 1.0  ;;  %v578_v22 = vld [vmem:[#allocation2 + $0x1158] sm:$0xff]  ;;  %v579_v23 = vld [vmem:[#allocation2 + $0x1160] sm:$0xff] }
 0x129   :  { %v580_v24 = vld [vmem:[#allocation2 + $0x1168] sm:$0xff]  ;;  %3644 = vst [vmem:[#allocation5 + $0x1128] sm:$0xff] %v4685_v13  ;;  %3645 = vst [vmem:[#allocation5 + $0x1130] sm:$0xff] %v4686_v14  ;;  %v4691_v25 = vclamps-f32 %v578_v22, 1.0  ;;  %v4692_v26 = vclamps-f32 %v579_v23, 1.0  ;;  %v581_v28 = vld [vmem:[#allocation2 + $0x1170] sm:$0xff] }
 0x12a   :  { %3646 = vst [vmem:[#allocation5 + $0x1138] sm:$0xff] %v4687_v15  ;;  %v4693_v27 = vclamps-f32 %v580_v24, 1.0  ;;  %v582_v29 = vld [vmem:[#allocation2 + $0x1178] sm:$0xff]  ;;  %v583_v30 = vld [vmem:[#allocation2 + $0x1180] sm:$0xff]  ;;  %3647 = vst [vmem:[#allocation5 + $0x1140] sm:$0xff] %v4688_v19  ;;  %v4694_v31 = vclamps-f32 %v581_v28, 1.0 }
 0x12b   :  { %3648 = vst [vmem:[#allocation5 + $0x1148] sm:$0xff] %v4689_v20  ;;  %3649 = vst [vmem:[#allocation5 + $0x1150] sm:$0xff] %v4690_v21  ;;  %v4695_v32 = vclamps-f32 %v582_v29, 1.0  ;;  %v4696_v33 = vclamps-f32 %v583_v30, 1.0  ;;  %v584_v34 = vld [vmem:[#allocation2 + $0x1188] sm:$0xff]  ;;  %v585_v35 = vld [vmem:[#allocation2 + $0x1190] sm:$0xff] }
 0x12c   :  { %v586_v36 = vld [vmem:[#allocation2 + $0x1198] sm:$0xff]  ;;  %3650 = vst [vmem:[#allocation5 + $0x1158] sm:$0xff] %v4691_v25  ;;  %3651 = vst [vmem:[#allocation5 + $0x1160] sm:$0xff] %v4692_v26  ;;  %v4697_v37 = vclamps-f32 %v584_v34, 1.0  ;;  %v4698_v38 = vclamps-f32 %v585_v35, 1.0  ;;  %v587_v40 = vld [vmem:[#allocation2 + $0x11a0] sm:$0xff] }
 0x12d   :  { %3652 = vst [vmem:[#allocation5 + $0x1168] sm:$0xff] %v4693_v27  ;;  %v4699_v39 = vclamps-f32 %v586_v36, 1.0  ;;  %v588_v41 = vld [vmem:[#allocation2 + $0x11a8] sm:$0xff]  ;;  %v589_v42 = vld [vmem:[#allocation2 + $0x11b0] sm:$0xff]  ;;  %3653 = vst [vmem:[#allocation5 + $0x1170] sm:$0xff] %v4694_v31  ;;  %v4700_v43 = vclamps-f32 %v587_v40, 1.0 }
 0x12e   :  { %3654 = vst [vmem:[#allocation5 + $0x1178] sm:$0xff] %v4695_v32  ;;  %3655 = vst [vmem:[#allocation5 + $0x1180] sm:$0xff] %v4696_v33  ;;  %v4701_v44 = vclamps-f32 %v588_v41, 1.0  ;;  %v4702_v45 = vclamps-f32 %v589_v42, 1.0  ;;  %v590_v46 = vld [vmem:[#allocation2 + $0x11b8] sm:$0xff]  ;;  %v591_v47 = vld [vmem:[#allocation2 + $0x11c0] sm:$0xff] }
 0x12f   :  { %v592_v48 = vld [vmem:[#allocation2 + $0x11c8] sm:$0xff]  ;;  %3656 = vst [vmem:[#allocation5 + $0x1188] sm:$0xff] %v4697_v37  ;;  %3657 = vst [vmem:[#allocation5 + $0x1190] sm:$0xff] %v4698_v38  ;;  %v4703_v49 = vclamps-f32 %v590_v46, 1.0  ;;  %v4704_v50 = vclamps-f32 %v591_v47, 1.0  ;;  %v593_v52 = vld [vmem:[#allocation2 + $0x11d0] sm:$0xff] }
 0x130   :  { %3658 = vst [vmem:[#allocation5 + $0x1198] sm:$0xff] %v4699_v39  ;;  %v4705_v51 = vclamps-f32 %v592_v48, 1.0  ;;  %v594_v53 = vld [vmem:[#allocation2 + $0x11d8] sm:$0xff]  ;;  %v595_v54 = vld [vmem:[#allocation2 + $0x11e0] sm:$0xff]  ;;  %3659 = vst [vmem:[#allocation5 + $0x11a0] sm:$0xff] %v4700_v43  ;;  %v4706_v55 = vclamps-f32 %v593_v52, 1.0 }
 0x131   :  { %3660 = vst [vmem:[#allocation5 + $0x11a8] sm:$0xff] %v4701_v44  ;;  %3661 = vst [vmem:[#allocation5 + $0x11b0] sm:$0xff] %v4702_v45  ;;  %v4707_v56 = vclamps-f32 %v594_v53, 1.0  ;;  %v4708_v57 = vclamps-f32 %v595_v54, 1.0  ;;  %v596_v58 = vld [vmem:[#allocation2 + $0x11e8] sm:$0xff]  ;;  %v597_v59 = vld [vmem:[#allocation2 + $0x11f0] sm:$0xff] }
 0x132   :  { %v598_v60 = vld [vmem:[#allocation2 + $0x11f8] sm:$0xff]  ;;  %3662 = vst [vmem:[#allocation5 + $0x11b8] sm:$0xff] %v4703_v49  ;;  %3663 = vst [vmem:[#allocation5 + $0x11c0] sm:$0xff] %v4704_v50  ;;  %v4709_v61 = vclamps-f32 %v596_v58, 1.0  ;;  %v4710_v62 = vclamps-f32 %v597_v59, 1.0  ;;  %v599_v0 = vld [vmem:[#allocation2 + $0x1200] sm:$0xff] }
 0x133   :  { %3664 = vst [vmem:[#allocation5 + $0x11c8] sm:$0xff] %v4705_v51  ;;  %v4711_v63 = vclamps-f32 %v598_v60, 1.0  ;;  %v600_v1 = vld [vmem:[#allocation2 + $0x1208] sm:$0xff]  ;;  %v601_v2 = vld [vmem:[#allocation2 + $0x1210] sm:$0xff]  ;;  %3665 = vst [vmem:[#allocation5 + $0x11d0] sm:$0xff] %v4706_v55  ;;  %v4712_v3 = vclamps-f32 %v599_v0, 1.0 }
 0x134   :  { %3666 = vst [vmem:[#allocation5 + $0x11d8] sm:$0xff] %v4707_v56  ;;  %3667 = vst [vmem:[#allocation5 + $0x11e0] sm:$0xff] %v4708_v57  ;;  %v4713_v4 = vclamps-f32 %v600_v1, 1.0  ;;  %v4714_v5 = vclamps-f32 %v601_v2, 1.0  ;;  %v602_v6 = vld [vmem:[#allocation2 + $0x1218] sm:$0xff]  ;;  %v603_v7 = vld [vmem:[#allocation2 + $0x1220] sm:$0xff] }
 0x135   :  { %v604_v8 = vld [vmem:[#allocation2 + $0x1228] sm:$0xff]  ;;  %3668 = vst [vmem:[#allocation5 + $0x11e8] sm:$0xff] %v4709_v61  ;;  %3669 = vst [vmem:[#allocation5 + $0x11f0] sm:$0xff] %v4710_v62  ;;  %v4715_v9 = vclamps-f32 %v602_v6, 1.0  ;;  %v4716_v10 = vclamps-f32 %v603_v7, 1.0  ;;  %v605_v12 = vld [vmem:[#allocation2 + $0x1230] sm:$0xff] }
 0x136   :  { %3670 = vst [vmem:[#allocation5 + $0x11f8] sm:$0xff] %v4711_v63  ;;  %v4717_v11 = vclamps-f32 %v604_v8, 1.0  ;;  %v606_v13 = vld [vmem:[#allocation2 + $0x1238] sm:$0xff]  ;;  %v607_v14 = vld [vmem:[#allocation2 + $0x1240] sm:$0xff]  ;;  %3671 = vst [vmem:[#allocation5 + $0x1200] sm:$0xff] %v4712_v3  ;;  %v4718_v15 = vclamps-f32 %v605_v12, 1.0 }
 0x137   :  { %3672 = vst [vmem:[#allocation5 + $0x1208] sm:$0xff] %v4713_v4  ;;  %3673 = vst [vmem:[#allocation5 + $0x1210] sm:$0xff] %v4714_v5  ;;  %v4719_v16 = vclamps-f32 %v606_v13, 1.0  ;;  %v4720_v17 = vclamps-f32 %v607_v14, 1.0  ;;  %v608_v18 = vld [vmem:[#allocation2 + $0x1248] sm:$0xff]  ;;  %v609_v19 = vld [vmem:[#allocation2 + $0x1250] sm:$0xff] }
 0x138   :  { %v610_v20 = vld [vmem:[#allocation2 + $0x1258] sm:$0xff]  ;;  %3674 = vst [vmem:[#allocation5 + $0x1218] sm:$0xff] %v4715_v9  ;;  %3675 = vst [vmem:[#allocation5 + $0x1220] sm:$0xff] %v4716_v10  ;;  %v4721_v21 = vclamps-f32 %v608_v18, 1.0  ;;  %v4722_v22 = vclamps-f32 %v609_v19, 1.0  ;;  %v611_v24 = vld [vmem:[#allocation2 + $0x1260] sm:$0xff] }
 0x139   :  { %3676 = vst [vmem:[#allocation5 + $0x1228] sm:$0xff] %v4717_v11  ;;  %v4723_v23 = vclamps-f32 %v610_v20, 1.0  ;;  %v612_v25 = vld [vmem:[#allocation2 + $0x1268] sm:$0xff]  ;;  %v613_v26 = vld [vmem:[#allocation2 + $0x1270] sm:$0xff]  ;;  %3677 = vst [vmem:[#allocation5 + $0x1230] sm:$0xff] %v4718_v15  ;;  %v4724_v27 = vclamps-f32 %v611_v24, 1.0 }
 0x13a   :  { %3678 = vst [vmem:[#allocation5 + $0x1238] sm:$0xff] %v4719_v16  ;;  %3679 = vst [vmem:[#allocation5 + $0x1240] sm:$0xff] %v4720_v17  ;;  %v4725_v28 = vclamps-f32 %v612_v25, 1.0  ;;  %v4726_v29 = vclamps-f32 %v613_v26, 1.0  ;;  %v614_v30 = vld [vmem:[#allocation2 + $0x1278] sm:$0xff]  ;;  %v615_v31 = vld [vmem:[#allocation2 + $0x1280] sm:$0xff] }
 0x13b   :  { %v616_v32 = vld [vmem:[#allocation2 + $0x1288] sm:$0xff]  ;;  %3680 = vst [vmem:[#allocation5 + $0x1248] sm:$0xff] %v4721_v21  ;;  %3681 = vst [vmem:[#allocation5 + $0x1250] sm:$0xff] %v4722_v22  ;;  %v4727_v33 = vclamps-f32 %v614_v30, 1.0  ;;  %v4728_v34 = vclamps-f32 %v615_v31, 1.0  ;;  %v617_v36 = vld [vmem:[#allocation2 + $0x1290] sm:$0xff] }
 0x13c   :  { %3682 = vst [vmem:[#allocation5 + $0x1258] sm:$0xff] %v4723_v23  ;;  %v4729_v35 = vclamps-f32 %v616_v32, 1.0  ;;  %v618_v37 = vld [vmem:[#allocation2 + $0x1298] sm:$0xff]  ;;  %v619_v38 = vld [vmem:[#allocation2 + $0x12a0] sm:$0xff]  ;;  %3683 = vst [vmem:[#allocation5 + $0x1260] sm:$0xff] %v4724_v27  ;;  %v4730_v39 = vclamps-f32 %v617_v36, 1.0 }
 0x13d   :  { %3684 = vst [vmem:[#allocation5 + $0x1268] sm:$0xff] %v4725_v28  ;;  %3685 = vst [vmem:[#allocation5 + $0x1270] sm:$0xff] %v4726_v29  ;;  %v4731_v40 = vclamps-f32 %v618_v37, 1.0  ;;  %v4732_v41 = vclamps-f32 %v619_v38, 1.0  ;;  %v620_v42 = vld [vmem:[#allocation2 + $0x12a8] sm:$0xff]  ;;  %v621_v43 = vld [vmem:[#allocation2 + $0x12b0] sm:$0xff] }
 0x13e   :  { %v622_v44 = vld [vmem:[#allocation2 + $0x12b8] sm:$0xff]  ;;  %3686 = vst [vmem:[#allocation5 + $0x1278] sm:$0xff] %v4727_v33  ;;  %3687 = vst [vmem:[#allocation5 + $0x1280] sm:$0xff] %v4728_v34  ;;  %v4733_v45 = vclamps-f32 %v620_v42, 1.0  ;;  %v4734_v46 = vclamps-f32 %v621_v43, 1.0  ;;  %v623_v48 = vld [vmem:[#allocation2 + $0x12c0] sm:$0xff] }
 0x13f   :  { %3688 = vst [vmem:[#allocation5 + $0x1288] sm:$0xff] %v4729_v35  ;;  %v4735_v47 = vclamps-f32 %v622_v44, 1.0  ;;  %v624_v49 = vld [vmem:[#allocation2 + $0x12c8] sm:$0xff]  ;;  %v625_v50 = vld [vmem:[#allocation2 + $0x12d0] sm:$0xff]  ;;  %3689 = vst [vmem:[#allocation5 + $0x1290] sm:$0xff] %v4730_v39  ;;  %v4736_v51 = vclamps-f32 %v623_v48, 1.0 }
 0x140   :  { %3690 = vst [vmem:[#allocation5 + $0x1298] sm:$0xff] %v4731_v40  ;;  %3691 = vst [vmem:[#allocation5 + $0x12a0] sm:$0xff] %v4732_v41  ;;  %v4737_v52 = vclamps-f32 %v624_v49, 1.0  ;;  %v4738_v53 = vclamps-f32 %v625_v50, 1.0  ;;  %v626_v54 = vld [vmem:[#allocation2 + $0x12d8] sm:$0xff]  ;;  %v627_v55 = vld [vmem:[#allocation2 + $0x12e0] sm:$0xff] }
 0x141   :  { %v628_v56 = vld [vmem:[#allocation2 + $0x12e8] sm:$0xff]  ;;  %3692 = vst [vmem:[#allocation5 + $0x12a8] sm:$0xff] %v4733_v45  ;;  %3693 = vst [vmem:[#allocation5 + $0x12b0] sm:$0xff] %v4734_v46  ;;  %v4739_v57 = vclamps-f32 %v626_v54, 1.0  ;;  %v4740_v58 = vclamps-f32 %v627_v55, 1.0  ;;  %v629_v60 = vld [vmem:[#allocation2 + $0x12f0] sm:$0xff] }
 0x142   :  { %3694 = vst [vmem:[#allocation5 + $0x12b8] sm:$0xff] %v4735_v47  ;;  %v4741_v59 = vclamps-f32 %v628_v56, 1.0  ;;  %v630_v61 = vld [vmem:[#allocation2 + $0x12f8] sm:$0xff]  ;;  %v631_v62 = vld [vmem:[#allocation2 + $0x1300] sm:$0xff]  ;;  %3695 = vst [vmem:[#allocation5 + $0x12c0] sm:$0xff] %v4736_v51  ;;  %v4742_v63 = vclamps-f32 %v629_v60, 1.0 }
 0x143   :  { %3696 = vst [vmem:[#allocation5 + $0x12c8] sm:$0xff] %v4737_v52  ;;  %3697 = vst [vmem:[#allocation5 + $0x12d0] sm:$0xff] %v4738_v53  ;;  %v4743_v0 = vclamps-f32 %v630_v61, 1.0  ;;  %v4744_v1 = vclamps-f32 %v631_v62, 1.0  ;;  %v632_v2 = vld [vmem:[#allocation2 + $0x1308] sm:$0xff]  ;;  %v633_v3 = vld [vmem:[#allocation2 + $0x1310] sm:$0xff] }
 0x144   :  { %v634_v4 = vld [vmem:[#allocation2 + $0x1318] sm:$0xff]  ;;  %3698 = vst [vmem:[#allocation5 + $0x12d8] sm:$0xff] %v4739_v57  ;;  %3699 = vst [vmem:[#allocation5 + $0x12e0] sm:$0xff] %v4740_v58  ;;  %v4745_v5 = vclamps-f32 %v632_v2, 1.0  ;;  %v4746_v6 = vclamps-f32 %v633_v3, 1.0  ;;  %v635_v8 = vld [vmem:[#allocation2 + $0x1320] sm:$0xff] }
 0x145   :  { %3700 = vst [vmem:[#allocation5 + $0x12e8] sm:$0xff] %v4741_v59  ;;  %v4747_v7 = vclamps-f32 %v634_v4, 1.0  ;;  %v636_v9 = vld [vmem:[#allocation2 + $0x1328] sm:$0xff]  ;;  %v637_v10 = vld [vmem:[#allocation2 + $0x1330] sm:$0xff]  ;;  %3701 = vst [vmem:[#allocation5 + $0x12f0] sm:$0xff] %v4742_v63  ;;  %v4748_v11 = vclamps-f32 %v635_v8, 1.0 }
 0x146   :  { %3702 = vst [vmem:[#allocation5 + $0x12f8] sm:$0xff] %v4743_v0  ;;  %3703 = vst [vmem:[#allocation5 + $0x1300] sm:$0xff] %v4744_v1  ;;  %v4749_v12 = vclamps-f32 %v636_v9, 1.0  ;;  %v4750_v13 = vclamps-f32 %v637_v10, 1.0  ;;  %v638_v14 = vld [vmem:[#allocation2 + $0x1338] sm:$0xff]  ;;  %v639_v15 = vld [vmem:[#allocation2 + $0x1340] sm:$0xff] }
 0x147   :  { %v640_v16 = vld [vmem:[#allocation2 + $0x1348] sm:$0xff]  ;;  %3704 = vst [vmem:[#allocation5 + $0x1308] sm:$0xff] %v4745_v5  ;;  %3705 = vst [vmem:[#allocation5 + $0x1310] sm:$0xff] %v4746_v6  ;;  %v4751_v17 = vclamps-f32 %v638_v14, 1.0  ;;  %v4752_v18 = vclamps-f32 %v639_v15, 1.0  ;;  %v641_v20 = vld [vmem:[#allocation2 + $0x1350] sm:$0xff] }
 0x148   :  { %3706 = vst [vmem:[#allocation5 + $0x1318] sm:$0xff] %v4747_v7  ;;  %v4753_v19 = vclamps-f32 %v640_v16, 1.0  ;;  %v642_v21 = vld [vmem:[#allocation2 + $0x1358] sm:$0xff]  ;;  %v643_v22 = vld [vmem:[#allocation2 + $0x1360] sm:$0xff]  ;;  %3707 = vst [vmem:[#allocation5 + $0x1320] sm:$0xff] %v4748_v11  ;;  %v4754_v23 = vclamps-f32 %v641_v20, 1.0 }
 0x149   :  { %3708 = vst [vmem:[#allocation5 + $0x1328] sm:$0xff] %v4749_v12  ;;  %3709 = vst [vmem:[#allocation5 + $0x1330] sm:$0xff] %v4750_v13  ;;  %v4755_v24 = vclamps-f32 %v642_v21, 1.0  ;;  %v4756_v25 = vclamps-f32 %v643_v22, 1.0  ;;  %v644_v26 = vld [vmem:[#allocation2 + $0x1368] sm:$0xff]  ;;  %v645_v27 = vld [vmem:[#allocation2 + $0x1370] sm:$0xff] }
 0x14a   :  { %v646_v28 = vld [vmem:[#allocation2 + $0x1378] sm:$0xff]  ;;  %3710 = vst [vmem:[#allocation5 + $0x1338] sm:$0xff] %v4751_v17  ;;  %3711 = vst [vmem:[#allocation5 + $0x1340] sm:$0xff] %v4752_v18  ;;  %v4757_v29 = vclamps-f32 %v644_v26, 1.0  ;;  %v4758_v30 = vclamps-f32 %v645_v27, 1.0  ;;  %v647_v32 = vld [vmem:[#allocation2 + $0x1380] sm:$0xff] }
 0x14b   :  { %3712 = vst [vmem:[#allocation5 + $0x1348] sm:$0xff] %v4753_v19  ;;  %v4759_v31 = vclamps-f32 %v646_v28, 1.0  ;;  %v648_v33 = vld [vmem:[#allocation2 + $0x1388] sm:$0xff]  ;;  %v649_v34 = vld [vmem:[#allocation2 + $0x1390] sm:$0xff]  ;;  %3713 = vst [vmem:[#allocation5 + $0x1350] sm:$0xff] %v4754_v23  ;;  %v4760_v35 = vclamps-f32 %v647_v32, 1.0 }
 0x14c   :  { %3714 = vst [vmem:[#allocation5 + $0x1358] sm:$0xff] %v4755_v24  ;;  %3715 = vst [vmem:[#allocation5 + $0x1360] sm:$0xff] %v4756_v25  ;;  %v4761_v36 = vclamps-f32 %v648_v33, 1.0  ;;  %v4762_v37 = vclamps-f32 %v649_v34, 1.0  ;;  %v650_v38 = vld [vmem:[#allocation2 + $0x1398] sm:$0xff]  ;;  %v651_v39 = vld [vmem:[#allocation2 + $0x13a0] sm:$0xff] }
 0x14d   :  { %v652_v40 = vld [vmem:[#allocation2 + $0x13a8] sm:$0xff]  ;;  %3716 = vst [vmem:[#allocation5 + $0x1368] sm:$0xff] %v4757_v29  ;;  %3717 = vst [vmem:[#allocation5 + $0x1370] sm:$0xff] %v4758_v30  ;;  %v4763_v41 = vclamps-f32 %v650_v38, 1.0  ;;  %v4764_v42 = vclamps-f32 %v651_v39, 1.0  ;;  %v653_v44 = vld [vmem:[#allocation2 + $0x13b0] sm:$0xff] }
 0x14e   :  { %3718 = vst [vmem:[#allocation5 + $0x1378] sm:$0xff] %v4759_v31  ;;  %v4765_v43 = vclamps-f32 %v652_v40, 1.0  ;;  %v654_v45 = vld [vmem:[#allocation2 + $0x13b8] sm:$0xff]  ;;  %v655_v46 = vld [vmem:[#allocation2 + $0x13c0] sm:$0xff]  ;;  %3719 = vst [vmem:[#allocation5 + $0x1380] sm:$0xff] %v4760_v35  ;;  %v4766_v47 = vclamps-f32 %v653_v44, 1.0 }
 0x14f   :  { %3720 = vst [vmem:[#allocation5 + $0x1388] sm:$0xff] %v4761_v36  ;;  %3721 = vst [vmem:[#allocation5 + $0x1390] sm:$0xff] %v4762_v37  ;;  %v4767_v48 = vclamps-f32 %v654_v45, 1.0  ;;  %v4768_v49 = vclamps-f32 %v655_v46, 1.0  ;;  %v656_v50 = vld [vmem:[#allocation2 + $0x13c8] sm:$0xff]  ;;  %v657_v51 = vld [vmem:[#allocation2 + $0x13d0] sm:$0xff] }
 0x150   :  { %v658_v52 = vld [vmem:[#allocation2 + $0x13d8] sm:$0xff]  ;;  %3722 = vst [vmem:[#allocation5 + $0x1398] sm:$0xff] %v4763_v41  ;;  %3723 = vst [vmem:[#allocation5 + $0x13a0] sm:$0xff] %v4764_v42  ;;  %v4769_v53 = vclamps-f32 %v656_v50, 1.0  ;;  %v4770_v54 = vclamps-f32 %v657_v51, 1.0  ;;  %v659_v56 = vld [vmem:[#allocation2 + $0x13e0] sm:$0xff] }
 0x151   :  { %3724 = vst [vmem:[#allocation5 + $0x13a8] sm:$0xff] %v4765_v43  ;;  %v4771_v55 = vclamps-f32 %v658_v52, 1.0  ;;  %v660_v57 = vld [vmem:[#allocation2 + $0x13e8] sm:$0xff]  ;;  %v661_v58 = vld [vmem:[#allocation2 + $0x13f0] sm:$0xff]  ;;  %3725 = vst [vmem:[#allocation5 + $0x13b0] sm:$0xff] %v4766_v47  ;;  %v4772_v59 = vclamps-f32 %v659_v56, 1.0 }
 0x152   :  { %3726 = vst [vmem:[#allocation5 + $0x13b8] sm:$0xff] %v4767_v48  ;;  %3727 = vst [vmem:[#allocation5 + $0x13c0] sm:$0xff] %v4768_v49  ;;  %v4773_v60 = vclamps-f32 %v660_v57, 1.0  ;;  %v4774_v61 = vclamps-f32 %v661_v58, 1.0  ;;  %v662_v62 = vld [vmem:[#allocation2 + $0x13f8] sm:$0xff]  ;;  %v663_v63 = vld [vmem:[#allocation2 + $0x1400] sm:$0xff] }
 0x153   :  { %v664_v0 = vld [vmem:[#allocation2 + $0x1408] sm:$0xff]  ;;  %3728 = vst [vmem:[#allocation5 + $0x13c8] sm:$0xff] %v4769_v53  ;;  %3729 = vst [vmem:[#allocation5 + $0x13d0] sm:$0xff] %v4770_v54  ;;  %v4775_v1 = vclamps-f32 %v662_v62, 1.0  ;;  %v4776_v2 = vclamps-f32 %v663_v63, 1.0  ;;  %v665_v4 = vld [vmem:[#allocation2 + $0x1410] sm:$0xff] }
 0x154   :  { %3730 = vst [vmem:[#allocation5 + $0x13d8] sm:$0xff] %v4771_v55  ;;  %v4777_v3 = vclamps-f32 %v664_v0, 1.0  ;;  %v666_v5 = vld [vmem:[#allocation2 + $0x1418] sm:$0xff]  ;;  %v667_v6 = vld [vmem:[#allocation2 + $0x1420] sm:$0xff]  ;;  %3731 = vst [vmem:[#allocation5 + $0x13e0] sm:$0xff] %v4772_v59  ;;  %v4778_v7 = vclamps-f32 %v665_v4, 1.0 }
 0x155   :  { %3732 = vst [vmem:[#allocation5 + $0x13e8] sm:$0xff] %v4773_v60  ;;  %3733 = vst [vmem:[#allocation5 + $0x13f0] sm:$0xff] %v4774_v61  ;;  %v4779_v8 = vclamps-f32 %v666_v5, 1.0  ;;  %v4780_v9 = vclamps-f32 %v667_v6, 1.0  ;;  %v668_v10 = vld [vmem:[#allocation2 + $0x1428] sm:$0xff]  ;;  %v669_v11 = vld [vmem:[#allocation2 + $0x1430] sm:$0xff] }
 0x156   :  { %v670_v12 = vld [vmem:[#allocation2 + $0x1438] sm:$0xff]  ;;  %3734 = vst [vmem:[#allocation5 + $0x13f8] sm:$0xff] %v4775_v1  ;;  %3735 = vst [vmem:[#allocation5 + $0x1400] sm:$0xff] %v4776_v2  ;;  %v4781_v13 = vclamps-f32 %v668_v10, 1.0  ;;  %v4782_v14 = vclamps-f32 %v669_v11, 1.0  ;;  %v671_v16 = vld [vmem:[#allocation2 + $0x1440] sm:$0xff] }
 0x157   :  { %3736 = vst [vmem:[#allocation5 + $0x1408] sm:$0xff] %v4777_v3  ;;  %v4783_v15 = vclamps-f32 %v670_v12, 1.0  ;;  %v672_v17 = vld [vmem:[#allocation2 + $0x1448] sm:$0xff]  ;;  %v673_v18 = vld [vmem:[#allocation2 + $0x1450] sm:$0xff]  ;;  %3737 = vst [vmem:[#allocation5 + $0x1410] sm:$0xff] %v4778_v7  ;;  %v4784_v19 = vclamps-f32 %v671_v16, 1.0 }
 0x158   :  { %3738 = vst [vmem:[#allocation5 + $0x1418] sm:$0xff] %v4779_v8  ;;  %3739 = vst [vmem:[#allocation5 + $0x1420] sm:$0xff] %v4780_v9  ;;  %v4785_v20 = vclamps-f32 %v672_v17, 1.0  ;;  %v4786_v21 = vclamps-f32 %v673_v18, 1.0  ;;  %v674_v22 = vld [vmem:[#allocation2 + $0x1458] sm:$0xff]  ;;  %v675_v23 = vld [vmem:[#allocation2 + $0x1460] sm:$0xff] }
 0x159   :  { %v676_v24 = vld [vmem:[#allocation2 + $0x1468] sm:$0xff]  ;;  %3740 = vst [vmem:[#allocation5 + $0x1428] sm:$0xff] %v4781_v13  ;;  %3741 = vst [vmem:[#allocation5 + $0x1430] sm:$0xff] %v4782_v14  ;;  %v4787_v25 = vclamps-f32 %v674_v22, 1.0  ;;  %v4788_v26 = vclamps-f32 %v675_v23, 1.0  ;;  %v677_v28 = vld [vmem:[#allocation2 + $0x1470] sm:$0xff] }
 0x15a   :  { %3742 = vst [vmem:[#allocation5 + $0x1438] sm:$0xff] %v4783_v15  ;;  %v4789_v27 = vclamps-f32 %v676_v24, 1.0  ;;  %v678_v29 = vld [vmem:[#allocation2 + $0x1478] sm:$0xff]  ;;  %v679_v30 = vld [vmem:[#allocation2 + $0x1480] sm:$0xff]  ;;  %3743 = vst [vmem:[#allocation5 + $0x1440] sm:$0xff] %v4784_v19  ;;  %v4790_v31 = vclamps-f32 %v677_v28, 1.0 }
 0x15b   :  { %3744 = vst [vmem:[#allocation5 + $0x1448] sm:$0xff] %v4785_v20  ;;  %3745 = vst [vmem:[#allocation5 + $0x1450] sm:$0xff] %v4786_v21  ;;  %v4791_v32 = vclamps-f32 %v678_v29, 1.0  ;;  %v4792_v33 = vclamps-f32 %v679_v30, 1.0  ;;  %v680_v34 = vld [vmem:[#allocation2 + $0x1488] sm:$0xff]  ;;  %v681_v35 = vld [vmem:[#allocation2 + $0x1490] sm:$0xff] }
 0x15c   :  { %v682_v36 = vld [vmem:[#allocation2 + $0x1498] sm:$0xff]  ;;  %3746 = vst [vmem:[#allocation5 + $0x1458] sm:$0xff] %v4787_v25  ;;  %3747 = vst [vmem:[#allocation5 + $0x1460] sm:$0xff] %v4788_v26  ;;  %v4793_v37 = vclamps-f32 %v680_v34, 1.0  ;;  %v4794_v38 = vclamps-f32 %v681_v35, 1.0  ;;  %v683_v40 = vld [vmem:[#allocation2 + $0x14a0] sm:$0xff] }
 0x15d   :  { %3748 = vst [vmem:[#allocation5 + $0x1468] sm:$0xff] %v4789_v27  ;;  %v4795_v39 = vclamps-f32 %v682_v36, 1.0  ;;  %v684_v41 = vld [vmem:[#allocation2 + $0x14a8] sm:$0xff]  ;;  %v685_v42 = vld [vmem:[#allocation2 + $0x14b0] sm:$0xff]  ;;  %3749 = vst [vmem:[#allocation5 + $0x1470] sm:$0xff] %v4790_v31  ;;  %v4796_v43 = vclamps-f32 %v683_v40, 1.0 }
 0x15e   :  { %3750 = vst [vmem:[#allocation5 + $0x1478] sm:$0xff] %v4791_v32  ;;  %3751 = vst [vmem:[#allocation5 + $0x1480] sm:$0xff] %v4792_v33  ;;  %v4797_v44 = vclamps-f32 %v684_v41, 1.0  ;;  %v4798_v45 = vclamps-f32 %v685_v42, 1.0  ;;  %v686_v46 = vld [vmem:[#allocation2 + $0x14b8] sm:$0xff]  ;;  %v687_v47 = vld [vmem:[#allocation2 + $0x14c0] sm:$0xff] }
 0x15f   :  { %v688_v48 = vld [vmem:[#allocation2 + $0x14c8] sm:$0xff]  ;;  %3752 = vst [vmem:[#allocation5 + $0x1488] sm:$0xff] %v4793_v37  ;;  %3753 = vst [vmem:[#allocation5 + $0x1490] sm:$0xff] %v4794_v38  ;;  %v4799_v49 = vclamps-f32 %v686_v46, 1.0  ;;  %v4800_v50 = vclamps-f32 %v687_v47, 1.0  ;;  %v689_v52 = vld [vmem:[#allocation2 + $0x14d0] sm:$0xff] }
 0x160   :  { %3754 = vst [vmem:[#allocation5 + $0x1498] sm:$0xff] %v4795_v39  ;;  %v4801_v51 = vclamps-f32 %v688_v48, 1.0  ;;  %v690_v53 = vld [vmem:[#allocation2 + $0x14d8] sm:$0xff]  ;;  %v691_v54 = vld [vmem:[#allocation2 + $0x14e0] sm:$0xff]  ;;  %3755 = vst [vmem:[#allocation5 + $0x14a0] sm:$0xff] %v4796_v43  ;;  %v4802_v55 = vclamps-f32 %v689_v52, 1.0 }
 0x161   :  { %3756 = vst [vmem:[#allocation5 + $0x14a8] sm:$0xff] %v4797_v44  ;;  %3757 = vst [vmem:[#allocation5 + $0x14b0] sm:$0xff] %v4798_v45  ;;  %v4803_v56 = vclamps-f32 %v690_v53, 1.0  ;;  %v4804_v57 = vclamps-f32 %v691_v54, 1.0  ;;  %v692_v58 = vld [vmem:[#allocation2 + $0x14e8] sm:$0xff]  ;;  %v693_v59 = vld [vmem:[#allocation2 + $0x14f0] sm:$0xff] }
 0x162   :  { %v694_v60 = vld [vmem:[#allocation2 + $0x14f8] sm:$0xff]  ;;  %3758 = vst [vmem:[#allocation5 + $0x14b8] sm:$0xff] %v4799_v49  ;;  %3759 = vst [vmem:[#allocation5 + $0x14c0] sm:$0xff] %v4800_v50  ;;  %v4805_v61 = vclamps-f32 %v692_v58, 1.0  ;;  %v4806_v62 = vclamps-f32 %v693_v59, 1.0  ;;  %v695_v0 = vld [vmem:[#allocation2 + $0x1500] sm:$0xff] }
 0x163   :  { %3760 = vst [vmem:[#allocation5 + $0x14c8] sm:$0xff] %v4801_v51  ;;  %v4807_v63 = vclamps-f32 %v694_v60, 1.0  ;;  %v696_v1 = vld [vmem:[#allocation2 + $0x1508] sm:$0xff]  ;;  %v697_v2 = vld [vmem:[#allocation2 + $0x1510] sm:$0xff]  ;;  %3761 = vst [vmem:[#allocation5 + $0x14d0] sm:$0xff] %v4802_v55  ;;  %v4808_v3 = vclamps-f32 %v695_v0, 1.0 }
 0x164   :  { %3762 = vst [vmem:[#allocation5 + $0x14d8] sm:$0xff] %v4803_v56  ;;  %3763 = vst [vmem:[#allocation5 + $0x14e0] sm:$0xff] %v4804_v57  ;;  %v4809_v4 = vclamps-f32 %v696_v1, 1.0  ;;  %v4810_v5 = vclamps-f32 %v697_v2, 1.0  ;;  %v698_v6 = vld [vmem:[#allocation2 + $0x1518] sm:$0xff]  ;;  %v699_v7 = vld [vmem:[#allocation2 + $0x1520] sm:$0xff] }
 0x165   :  { %v700_v8 = vld [vmem:[#allocation2 + $0x1528] sm:$0xff]  ;;  %3764 = vst [vmem:[#allocation5 + $0x14e8] sm:$0xff] %v4805_v61  ;;  %3765 = vst [vmem:[#allocation5 + $0x14f0] sm:$0xff] %v4806_v62  ;;  %v4811_v9 = vclamps-f32 %v698_v6, 1.0  ;;  %v4812_v10 = vclamps-f32 %v699_v7, 1.0  ;;  %v701_v12 = vld [vmem:[#allocation2 + $0x1530] sm:$0xff] }
 0x166   :  { %3766 = vst [vmem:[#allocation5 + $0x14f8] sm:$0xff] %v4807_v63  ;;  %v4813_v11 = vclamps-f32 %v700_v8, 1.0  ;;  %v702_v13 = vld [vmem:[#allocation2 + $0x1538] sm:$0xff]  ;;  %v703_v14 = vld [vmem:[#allocation2 + $0x1540] sm:$0xff]  ;;  %3767 = vst [vmem:[#allocation5 + $0x1500] sm:$0xff] %v4808_v3  ;;  %v4814_v15 = vclamps-f32 %v701_v12, 1.0 }
 0x167   :  { %3768 = vst [vmem:[#allocation5 + $0x1508] sm:$0xff] %v4809_v4  ;;  %3769 = vst [vmem:[#allocation5 + $0x1510] sm:$0xff] %v4810_v5  ;;  %v4815_v16 = vclamps-f32 %v702_v13, 1.0  ;;  %v4816_v17 = vclamps-f32 %v703_v14, 1.0  ;;  %v704_v18 = vld [vmem:[#allocation2 + $0x1548] sm:$0xff]  ;;  %v705_v19 = vld [vmem:[#allocation2 + $0x1550] sm:$0xff] }
 0x168   :  { %v706_v20 = vld [vmem:[#allocation2 + $0x1558] sm:$0xff]  ;;  %3770 = vst [vmem:[#allocation5 + $0x1518] sm:$0xff] %v4811_v9  ;;  %3771 = vst [vmem:[#allocation5 + $0x1520] sm:$0xff] %v4812_v10  ;;  %v4817_v21 = vclamps-f32 %v704_v18, 1.0  ;;  %v4818_v22 = vclamps-f32 %v705_v19, 1.0  ;;  %v707_v24 = vld [vmem:[#allocation2 + $0x1560] sm:$0xff] }
 0x169   :  { %3772 = vst [vmem:[#allocation5 + $0x1528] sm:$0xff] %v4813_v11  ;;  %v4819_v23 = vclamps-f32 %v706_v20, 1.0  ;;  %v708_v25 = vld [vmem:[#allocation2 + $0x1568] sm:$0xff]  ;;  %v709_v26 = vld [vmem:[#allocation2 + $0x1570] sm:$0xff]  ;;  %3773 = vst [vmem:[#allocation5 + $0x1530] sm:$0xff] %v4814_v15  ;;  %v4820_v27 = vclamps-f32 %v707_v24, 1.0 }
 0x16a   :  { %3774 = vst [vmem:[#allocation5 + $0x1538] sm:$0xff] %v4815_v16  ;;  %3775 = vst [vmem:[#allocation5 + $0x1540] sm:$0xff] %v4816_v17  ;;  %v4821_v28 = vclamps-f32 %v708_v25, 1.0  ;;  %v4822_v29 = vclamps-f32 %v709_v26, 1.0  ;;  %v710_v30 = vld [vmem:[#allocation2 + $0x1578] sm:$0xff]  ;;  %v711_v31 = vld [vmem:[#allocation2 + $0x1580] sm:$0xff] }
 0x16b   :  { %v712_v32 = vld [vmem:[#allocation2 + $0x1588] sm:$0xff]  ;;  %3776 = vst [vmem:[#allocation5 + $0x1548] sm:$0xff] %v4817_v21  ;;  %3777 = vst [vmem:[#allocation5 + $0x1550] sm:$0xff] %v4818_v22  ;;  %v4823_v33 = vclamps-f32 %v710_v30, 1.0  ;;  %v4824_v34 = vclamps-f32 %v711_v31, 1.0  ;;  %v713_v36 = vld [vmem:[#allocation2 + $0x1590] sm:$0xff] }
 0x16c   :  { %3778 = vst [vmem:[#allocation5 + $0x1558] sm:$0xff] %v4819_v23  ;;  %v4825_v35 = vclamps-f32 %v712_v32, 1.0  ;;  %v714_v37 = vld [vmem:[#allocation2 + $0x1598] sm:$0xff]  ;;  %v715_v38 = vld [vmem:[#allocation2 + $0x15a0] sm:$0xff]  ;;  %3779 = vst [vmem:[#allocation5 + $0x1560] sm:$0xff] %v4820_v27  ;;  %v4826_v39 = vclamps-f32 %v713_v36, 1.0 }
 0x16d   :  { %3780 = vst [vmem:[#allocation5 + $0x1568] sm:$0xff] %v4821_v28  ;;  %3781 = vst [vmem:[#allocation5 + $0x1570] sm:$0xff] %v4822_v29  ;;  %v4827_v40 = vclamps-f32 %v714_v37, 1.0  ;;  %v4828_v41 = vclamps-f32 %v715_v38, 1.0  ;;  %v716_v42 = vld [vmem:[#allocation2 + $0x15a8] sm:$0xff]  ;;  %v717_v43 = vld [vmem:[#allocation2 + $0x15b0] sm:$0xff] }
 0x16e   :  { %v718_v44 = vld [vmem:[#allocation2 + $0x15b8] sm:$0xff]  ;;  %3782 = vst [vmem:[#allocation5 + $0x1578] sm:$0xff] %v4823_v33  ;;  %3783 = vst [vmem:[#allocation5 + $0x1580] sm:$0xff] %v4824_v34  ;;  %v4829_v45 = vclamps-f32 %v716_v42, 1.0  ;;  %v4830_v46 = vclamps-f32 %v717_v43, 1.0  ;;  %v719_v48 = vld [vmem:[#allocation2 + $0x15c0] sm:$0xff] }
 0x16f   :  { %3784 = vst [vmem:[#allocation5 + $0x1588] sm:$0xff] %v4825_v35  ;;  %v4831_v47 = vclamps-f32 %v718_v44, 1.0  ;;  %v720_v49 = vld [vmem:[#allocation2 + $0x15c8] sm:$0xff]  ;;  %v721_v50 = vld [vmem:[#allocation2 + $0x15d0] sm:$0xff]  ;;  %3785 = vst [vmem:[#allocation5 + $0x1590] sm:$0xff] %v4826_v39  ;;  %v4832_v51 = vclamps-f32 %v719_v48, 1.0 }
 0x170   :  { %3786 = vst [vmem:[#allocation5 + $0x1598] sm:$0xff] %v4827_v40  ;;  %3787 = vst [vmem:[#allocation5 + $0x15a0] sm:$0xff] %v4828_v41  ;;  %v4833_v52 = vclamps-f32 %v720_v49, 1.0  ;;  %v4834_v53 = vclamps-f32 %v721_v50, 1.0  ;;  %v722_v54 = vld [vmem:[#allocation2 + $0x15d8] sm:$0xff]  ;;  %v723_v55 = vld [vmem:[#allocation2 + $0x15e0] sm:$0xff] }
 0x171   :  { %v724_v56 = vld [vmem:[#allocation2 + $0x15e8] sm:$0xff]  ;;  %3788 = vst [vmem:[#allocation5 + $0x15a8] sm:$0xff] %v4829_v45  ;;  %3789 = vst [vmem:[#allocation5 + $0x15b0] sm:$0xff] %v4830_v46  ;;  %v4835_v57 = vclamps-f32 %v722_v54, 1.0  ;;  %v4836_v58 = vclamps-f32 %v723_v55, 1.0  ;;  %v725_v60 = vld [vmem:[#allocation2 + $0x15f0] sm:$0xff] }
 0x172   :  { %3790 = vst [vmem:[#allocation5 + $0x15b8] sm:$0xff] %v4831_v47  ;;  %v4837_v59 = vclamps-f32 %v724_v56, 1.0  ;;  %v726_v61 = vld [vmem:[#allocation2 + $0x15f8] sm:$0xff]  ;;  %v727_v62 = vld [vmem:[#allocation2 + $0x1600] sm:$0xff]  ;;  %3791 = vst [vmem:[#allocation5 + $0x15c0] sm:$0xff] %v4832_v51  ;;  %v4838_v63 = vclamps-f32 %v725_v60, 1.0 }
 0x173   :  { %3792 = vst [vmem:[#allocation5 + $0x15c8] sm:$0xff] %v4833_v52  ;;  %3793 = vst [vmem:[#allocation5 + $0x15d0] sm:$0xff] %v4834_v53  ;;  %v4839_v0 = vclamps-f32 %v726_v61, 1.0  ;;  %v4840_v1 = vclamps-f32 %v727_v62, 1.0  ;;  %v728_v2 = vld [vmem:[#allocation2 + $0x1608] sm:$0xff]  ;;  %v729_v3 = vld [vmem:[#allocation2 + $0x1610] sm:$0xff] }
 0x174   :  { %v730_v4 = vld [vmem:[#allocation2 + $0x1618] sm:$0xff]  ;;  %3794 = vst [vmem:[#allocation5 + $0x15d8] sm:$0xff] %v4835_v57  ;;  %3795 = vst [vmem:[#allocation5 + $0x15e0] sm:$0xff] %v4836_v58  ;;  %v4841_v5 = vclamps-f32 %v728_v2, 1.0  ;;  %v4842_v6 = vclamps-f32 %v729_v3, 1.0  ;;  %v731_v8 = vld [vmem:[#allocation2 + $0x1620] sm:$0xff] }
 0x175   :  { %3796 = vst [vmem:[#allocation5 + $0x15e8] sm:$0xff] %v4837_v59  ;;  %v4843_v7 = vclamps-f32 %v730_v4, 1.0  ;;  %v732_v9 = vld [vmem:[#allocation2 + $0x1628] sm:$0xff]  ;;  %v733_v10 = vld [vmem:[#allocation2 + $0x1630] sm:$0xff]  ;;  %3797 = vst [vmem:[#allocation5 + $0x15f0] sm:$0xff] %v4838_v63  ;;  %v4844_v11 = vclamps-f32 %v731_v8, 1.0 }
 0x176   :  { %3798 = vst [vmem:[#allocation5 + $0x15f8] sm:$0xff] %v4839_v0  ;;  %3799 = vst [vmem:[#allocation5 + $0x1600] sm:$0xff] %v4840_v1  ;;  %v4845_v12 = vclamps-f32 %v732_v9, 1.0  ;;  %v4846_v13 = vclamps-f32 %v733_v10, 1.0  ;;  %v734_v14 = vld [vmem:[#allocation2 + $0x1638] sm:$0xff]  ;;  %v735_v15 = vld [vmem:[#allocation2 + $0x1640] sm:$0xff] }
 0x177   :  { %v736_v16 = vld [vmem:[#allocation2 + $0x1648] sm:$0xff]  ;;  %3800 = vst [vmem:[#allocation5 + $0x1608] sm:$0xff] %v4841_v5  ;;  %3801 = vst [vmem:[#allocation5 + $0x1610] sm:$0xff] %v4842_v6  ;;  %v4847_v17 = vclamps-f32 %v734_v14, 1.0  ;;  %v4848_v18 = vclamps-f32 %v735_v15, 1.0  ;;  %v737_v20 = vld [vmem:[#allocation2 + $0x1650] sm:$0xff] }
 0x178   :  { %3802 = vst [vmem:[#allocation5 + $0x1618] sm:$0xff] %v4843_v7  ;;  %v4849_v19 = vclamps-f32 %v736_v16, 1.0  ;;  %v738_v21 = vld [vmem:[#allocation2 + $0x1658] sm:$0xff]  ;;  %v739_v22 = vld [vmem:[#allocation2 + $0x1660] sm:$0xff]  ;;  %3803 = vst [vmem:[#allocation5 + $0x1620] sm:$0xff] %v4844_v11  ;;  %v4850_v23 = vclamps-f32 %v737_v20, 1.0 }
 0x179   :  { %3804 = vst [vmem:[#allocation5 + $0x1628] sm:$0xff] %v4845_v12  ;;  %3805 = vst [vmem:[#allocation5 + $0x1630] sm:$0xff] %v4846_v13  ;;  %v4851_v24 = vclamps-f32 %v738_v21, 1.0  ;;  %v4852_v25 = vclamps-f32 %v739_v22, 1.0  ;;  %v740_v26 = vld [vmem:[#allocation2 + $0x1668] sm:$0xff]  ;;  %v741_v27 = vld [vmem:[#allocation2 + $0x1670] sm:$0xff] }
 0x17a   :  { %v742_v28 = vld [vmem:[#allocation2 + $0x1678] sm:$0xff]  ;;  %3806 = vst [vmem:[#allocation5 + $0x1638] sm:$0xff] %v4847_v17  ;;  %3807 = vst [vmem:[#allocation5 + $0x1640] sm:$0xff] %v4848_v18  ;;  %v4853_v29 = vclamps-f32 %v740_v26, 1.0  ;;  %v4854_v30 = vclamps-f32 %v741_v27, 1.0  ;;  %v743_v32 = vld [vmem:[#allocation2 + $0x1680] sm:$0xff] }
 0x17b   :  { %3808 = vst [vmem:[#allocation5 + $0x1648] sm:$0xff] %v4849_v19  ;;  %v4855_v31 = vclamps-f32 %v742_v28, 1.0  ;;  %v744_v33 = vld [vmem:[#allocation2 + $0x1688] sm:$0xff]  ;;  %v745_v34 = vld [vmem:[#allocation2 + $0x1690] sm:$0xff]  ;;  %3809 = vst [vmem:[#allocation5 + $0x1650] sm:$0xff] %v4850_v23  ;;  %v4856_v35 = vclamps-f32 %v743_v32, 1.0 }
 0x17c   :  { %3810 = vst [vmem:[#allocation5 + $0x1658] sm:$0xff] %v4851_v24  ;;  %3811 = vst [vmem:[#allocation5 + $0x1660] sm:$0xff] %v4852_v25  ;;  %v4857_v36 = vclamps-f32 %v744_v33, 1.0  ;;  %v4858_v37 = vclamps-f32 %v745_v34, 1.0  ;;  %v746_v38 = vld [vmem:[#allocation2 + $0x1698] sm:$0xff]  ;;  %v747_v39 = vld [vmem:[#allocation2 + $0x16a0] sm:$0xff] }
 0x17d   :  { %v748_v40 = vld [vmem:[#allocation2 + $0x16a8] sm:$0xff]  ;;  %3812 = vst [vmem:[#allocation5 + $0x1668] sm:$0xff] %v4853_v29  ;;  %3813 = vst [vmem:[#allocation5 + $0x1670] sm:$0xff] %v4854_v30  ;;  %v4859_v41 = vclamps-f32 %v746_v38, 1.0  ;;  %v4860_v42 = vclamps-f32 %v747_v39, 1.0  ;;  %v749_v44 = vld [vmem:[#allocation2 + $0x16b0] sm:$0xff] }
 0x17e   :  { %3814 = vst [vmem:[#allocation5 + $0x1678] sm:$0xff] %v4855_v31  ;;  %v4861_v43 = vclamps-f32 %v748_v40, 1.0  ;;  %v750_v45 = vld [vmem:[#allocation2 + $0x16b8] sm:$0xff]  ;;  %v751_v46 = vld [vmem:[#allocation2 + $0x16c0] sm:$0xff]  ;;  %3815 = vst [vmem:[#allocation5 + $0x1680] sm:$0xff] %v4856_v35  ;;  %v4862_v47 = vclamps-f32 %v749_v44, 1.0 }
 0x17f   :  { %3816 = vst [vmem:[#allocation5 + $0x1688] sm:$0xff] %v4857_v36  ;;  %3817 = vst [vmem:[#allocation5 + $0x1690] sm:$0xff] %v4858_v37  ;;  %v4863_v48 = vclamps-f32 %v750_v45, 1.0  ;;  %v4864_v49 = vclamps-f32 %v751_v46, 1.0  ;;  %v752_v50 = vld [vmem:[#allocation2 + $0x16c8] sm:$0xff]  ;;  %v753_v51 = vld [vmem:[#allocation2 + $0x16d0] sm:$0xff] }
 0x180   :  { %v754_v52 = vld [vmem:[#allocation2 + $0x16d8] sm:$0xff]  ;;  %3818 = vst [vmem:[#allocation5 + $0x1698] sm:$0xff] %v4859_v41  ;;  %3819 = vst [vmem:[#allocation5 + $0x16a0] sm:$0xff] %v4860_v42  ;;  %v4865_v53 = vclamps-f32 %v752_v50, 1.0  ;;  %v4866_v54 = vclamps-f32 %v753_v51, 1.0  ;;  %v755_v56 = vld [vmem:[#allocation2 + $0x16e0] sm:$0xff] }
 0x181   :  { %3820 = vst [vmem:[#allocation5 + $0x16a8] sm:$0xff] %v4861_v43  ;;  %v4867_v55 = vclamps-f32 %v754_v52, 1.0  ;;  %v756_v57 = vld [vmem:[#allocation2 + $0x16e8] sm:$0xff]  ;;  %v757_v58 = vld [vmem:[#allocation2 + $0x16f0] sm:$0xff]  ;;  %3821 = vst [vmem:[#allocation5 + $0x16b0] sm:$0xff] %v4862_v47  ;;  %v4868_v59 = vclamps-f32 %v755_v56, 1.0 }
 0x182   :  { %3822 = vst [vmem:[#allocation5 + $0x16b8] sm:$0xff] %v4863_v48  ;;  %3823 = vst [vmem:[#allocation5 + $0x16c0] sm:$0xff] %v4864_v49  ;;  %v4869_v60 = vclamps-f32 %v756_v57, 1.0  ;;  %v4870_v61 = vclamps-f32 %v757_v58, 1.0  ;;  %v758_v62 = vld [vmem:[#allocation2 + $0x16f8] sm:$0xff]  ;;  %v759_v63 = vld [vmem:[#allocation2 + $0x1700] sm:$0xff] }
 0x183   :  { %v760_v0 = vld [vmem:[#allocation2 + $0x1708] sm:$0xff]  ;;  %3824 = vst [vmem:[#allocation5 + $0x16c8] sm:$0xff] %v4865_v53  ;;  %3825 = vst [vmem:[#allocation5 + $0x16d0] sm:$0xff] %v4866_v54  ;;  %v4871_v1 = vclamps-f32 %v758_v62, 1.0  ;;  %v4872_v2 = vclamps-f32 %v759_v63, 1.0  ;;  %v761_v4 = vld [vmem:[#allocation2 + $0x1710] sm:$0xff] }
 0x184   :  { %3826 = vst [vmem:[#allocation5 + $0x16d8] sm:$0xff] %v4867_v55  ;;  %v4873_v3 = vclamps-f32 %v760_v0, 1.0  ;;  %v762_v5 = vld [vmem:[#allocation2 + $0x1718] sm:$0xff]  ;;  %v763_v6 = vld [vmem:[#allocation2 + $0x1720] sm:$0xff]  ;;  %3827 = vst [vmem:[#allocation5 + $0x16e0] sm:$0xff] %v4868_v59  ;;  %v4874_v7 = vclamps-f32 %v761_v4, 1.0 }
 0x185   :  { %3828 = vst [vmem:[#allocation5 + $0x16e8] sm:$0xff] %v4869_v60  ;;  %3829 = vst [vmem:[#allocation5 + $0x16f0] sm:$0xff] %v4870_v61  ;;  %v4875_v8 = vclamps-f32 %v762_v5, 1.0  ;;  %v4876_v9 = vclamps-f32 %v763_v6, 1.0  ;;  %v764_v10 = vld [vmem:[#allocation2 + $0x1728] sm:$0xff]  ;;  %v765_v11 = vld [vmem:[#allocation2 + $0x1730] sm:$0xff] }
 0x186   :  { %v766_v12 = vld [vmem:[#allocation2 + $0x1738] sm:$0xff]  ;;  %3830 = vst [vmem:[#allocation5 + $0x16f8] sm:$0xff] %v4871_v1  ;;  %3831 = vst [vmem:[#allocation5 + $0x1700] sm:$0xff] %v4872_v2  ;;  %v4877_v13 = vclamps-f32 %v764_v10, 1.0  ;;  %v4878_v14 = vclamps-f32 %v765_v11, 1.0  ;;  %v767_v16 = vld [vmem:[#allocation2 + $0x1740] sm:$0xff] }
 0x187   :  { %3832 = vst [vmem:[#allocation5 + $0x1708] sm:$0xff] %v4873_v3  ;;  %v4879_v15 = vclamps-f32 %v766_v12, 1.0  ;;  %v768_v17 = vld [vmem:[#allocation2 + $0x1748] sm:$0xff]  ;;  %v769_v18 = vld [vmem:[#allocation2 + $0x1750] sm:$0xff]  ;;  %3833 = vst [vmem:[#allocation5 + $0x1710] sm:$0xff] %v4874_v7  ;;  %v4880_v19 = vclamps-f32 %v767_v16, 1.0 }
 0x188   :  { %3834 = vst [vmem:[#allocation5 + $0x1718] sm:$0xff] %v4875_v8  ;;  %3835 = vst [vmem:[#allocation5 + $0x1720] sm:$0xff] %v4876_v9  ;;  %v4881_v20 = vclamps-f32 %v768_v17, 1.0  ;;  %v4882_v21 = vclamps-f32 %v769_v18, 1.0  ;;  %v770_v22 = vld [vmem:[#allocation2 + $0x1758] sm:$0xff]  ;;  %v771_v23 = vld [vmem:[#allocation2 + $0x1760] sm:$0xff] }
 0x189   :  { %v772_v24 = vld [vmem:[#allocation2 + $0x1768] sm:$0xff]  ;;  %3836 = vst [vmem:[#allocation5 + $0x1728] sm:$0xff] %v4877_v13  ;;  %3837 = vst [vmem:[#allocation5 + $0x1730] sm:$0xff] %v4878_v14  ;;  %v4883_v25 = vclamps-f32 %v770_v22, 1.0  ;;  %v4884_v26 = vclamps-f32 %v771_v23, 1.0  ;;  %v773_v28 = vld [vmem:[#allocation2 + $0x1770] sm:$0xff] }
 0x18a   :  { %3838 = vst [vmem:[#allocation5 + $0x1738] sm:$0xff] %v4879_v15  ;;  %v4885_v27 = vclamps-f32 %v772_v24, 1.0  ;;  %v774_v29 = vld [vmem:[#allocation2 + $0x1778] sm:$0xff]  ;;  %v775_v30 = vld [vmem:[#allocation2 + $0x1780] sm:$0xff]  ;;  %3839 = vst [vmem:[#allocation5 + $0x1740] sm:$0xff] %v4880_v19  ;;  %v4886_v31 = vclamps-f32 %v773_v28, 1.0 }
 0x18b   :  { %3840 = vst [vmem:[#allocation5 + $0x1748] sm:$0xff] %v4881_v20  ;;  %3841 = vst [vmem:[#allocation5 + $0x1750] sm:$0xff] %v4882_v21  ;;  %v4887_v32 = vclamps-f32 %v774_v29, 1.0  ;;  %v4888_v33 = vclamps-f32 %v775_v30, 1.0  ;;  %v776_v34 = vld [vmem:[#allocation2 + $0x1788] sm:$0xff]  ;;  %v777_v35 = vld [vmem:[#allocation2 + $0x1790] sm:$0xff] }
 0x18c   :  { %v778_v36 = vld [vmem:[#allocation2 + $0x1798] sm:$0xff]  ;;  %3842 = vst [vmem:[#allocation5 + $0x1758] sm:$0xff] %v4883_v25  ;;  %3843 = vst [vmem:[#allocation5 + $0x1760] sm:$0xff] %v4884_v26  ;;  %v4889_v37 = vclamps-f32 %v776_v34, 1.0  ;;  %v4890_v38 = vclamps-f32 %v777_v35, 1.0  ;;  %v779_v40 = vld [vmem:[#allocation2 + $0x17a0] sm:$0xff] }
 0x18d   :  { %3844 = vst [vmem:[#allocation5 + $0x1768] sm:$0xff] %v4885_v27  ;;  %v4891_v39 = vclamps-f32 %v778_v36, 1.0  ;;  %v780_v41 = vld [vmem:[#allocation2 + $0x17a8] sm:$0xff]  ;;  %v781_v42 = vld [vmem:[#allocation2 + $0x17b0] sm:$0xff]  ;;  %3845 = vst [vmem:[#allocation5 + $0x1770] sm:$0xff] %v4886_v31  ;;  %v4892_v43 = vclamps-f32 %v779_v40, 1.0 }
 0x18e   :  { %3846 = vst [vmem:[#allocation5 + $0x1778] sm:$0xff] %v4887_v32  ;;  %3847 = vst [vmem:[#allocation5 + $0x1780] sm:$0xff] %v4888_v33  ;;  %v4893_v44 = vclamps-f32 %v780_v41, 1.0  ;;  %v4894_v45 = vclamps-f32 %v781_v42, 1.0  ;;  %v782_v46 = vld [vmem:[#allocation2 + $0x17b8] sm:$0xff]  ;;  %v783_v47 = vld [vmem:[#allocation2 + $0x17c0] sm:$0xff] }
 0x18f   :  { %v784_v48 = vld [vmem:[#allocation2 + $0x17c8] sm:$0xff]  ;;  %3848 = vst [vmem:[#allocation5 + $0x1788] sm:$0xff] %v4889_v37  ;;  %3849 = vst [vmem:[#allocation5 + $0x1790] sm:$0xff] %v4890_v38  ;;  %v4895_v49 = vclamps-f32 %v782_v46, 1.0  ;;  %v4896_v50 = vclamps-f32 %v783_v47, 1.0  ;;  %v785_v52 = vld [vmem:[#allocation2 + $0x17d0] sm:$0xff] }
 0x190   :  { %3850 = vst [vmem:[#allocation5 + $0x1798] sm:$0xff] %v4891_v39  ;;  %v4897_v51 = vclamps-f32 %v784_v48, 1.0  ;;  %v786_v53 = vld [vmem:[#allocation2 + $0x17d8] sm:$0xff]  ;;  %v787_v54 = vld [vmem:[#allocation2 + $0x17e0] sm:$0xff]  ;;  %3851 = vst [vmem:[#allocation5 + $0x17a0] sm:$0xff] %v4892_v43  ;;  %v4898_v55 = vclamps-f32 %v785_v52, 1.0 }
 0x191   :  { %3852 = vst [vmem:[#allocation5 + $0x17a8] sm:$0xff] %v4893_v44  ;;  %3853 = vst [vmem:[#allocation5 + $0x17b0] sm:$0xff] %v4894_v45  ;;  %v4899_v56 = vclamps-f32 %v786_v53, 1.0  ;;  %v4900_v57 = vclamps-f32 %v787_v54, 1.0  ;;  %v788_v58 = vld [vmem:[#allocation2 + $0x17e8] sm:$0xff]  ;;  %v789_v59 = vld [vmem:[#allocation2 + $0x17f0] sm:$0xff] }
 0x192   :  { %v790_v60 = vld [vmem:[#allocation2 + $0x17f8] sm:$0xff]  ;;  %3854 = vst [vmem:[#allocation5 + $0x17b8] sm:$0xff] %v4895_v49  ;;  %3855 = vst [vmem:[#allocation5 + $0x17c0] sm:$0xff] %v4896_v50  ;;  %v4901_v61 = vclamps-f32 %v788_v58, 1.0  ;;  %v4902_v62 = vclamps-f32 %v789_v59, 1.0  ;;  %v791_v0 = vld [vmem:[#allocation2 + $0x1800] sm:$0xff] }
 0x193   :  { %3856 = vst [vmem:[#allocation5 + $0x17c8] sm:$0xff] %v4897_v51  ;;  %v4903_v63 = vclamps-f32 %v790_v60, 1.0  ;;  %v792_v1 = vld [vmem:[#allocation2 + $0x1808] sm:$0xff]  ;;  %v793_v2 = vld [vmem:[#allocation2 + $0x1810] sm:$0xff]  ;;  %3857 = vst [vmem:[#allocation5 + $0x17d0] sm:$0xff] %v4898_v55  ;;  %v4904_v3 = vclamps-f32 %v791_v0, 1.0 }
 0x194   :  { %3858 = vst [vmem:[#allocation5 + $0x17d8] sm:$0xff] %v4899_v56  ;;  %3859 = vst [vmem:[#allocation5 + $0x17e0] sm:$0xff] %v4900_v57  ;;  %v4905_v4 = vclamps-f32 %v792_v1, 1.0  ;;  %v4906_v5 = vclamps-f32 %v793_v2, 1.0  ;;  %v794_v6 = vld [vmem:[#allocation2 + $0x1818] sm:$0xff]  ;;  %v795_v7 = vld [vmem:[#allocation2 + $0x1820] sm:$0xff] }
 0x195   :  { %v796_v8 = vld [vmem:[#allocation2 + $0x1828] sm:$0xff]  ;;  %3860 = vst [vmem:[#allocation5 + $0x17e8] sm:$0xff] %v4901_v61  ;;  %3861 = vst [vmem:[#allocation5 + $0x17f0] sm:$0xff] %v4902_v62  ;;  %v4907_v9 = vclamps-f32 %v794_v6, 1.0  ;;  %v4908_v10 = vclamps-f32 %v795_v7, 1.0  ;;  %v797_v12 = vld [vmem:[#allocation2 + $0x1830] sm:$0xff] }
 0x196   :  { %3862 = vst [vmem:[#allocation5 + $0x17f8] sm:$0xff] %v4903_v63  ;;  %v4909_v11 = vclamps-f32 %v796_v8, 1.0  ;;  %v798_v13 = vld [vmem:[#allocation2 + $0x1838] sm:$0xff]  ;;  %v799_v14 = vld [vmem:[#allocation2 + $0x1840] sm:$0xff]  ;;  %3863 = vst [vmem:[#allocation5 + $0x1800] sm:$0xff] %v4904_v3  ;;  %v4910_v15 = vclamps-f32 %v797_v12, 1.0 }
 0x197   :  { %3864 = vst [vmem:[#allocation5 + $0x1808] sm:$0xff] %v4905_v4  ;;  %3865 = vst [vmem:[#allocation5 + $0x1810] sm:$0xff] %v4906_v5  ;;  %v4911_v16 = vclamps-f32 %v798_v13, 1.0  ;;  %v4912_v17 = vclamps-f32 %v799_v14, 1.0  ;;  %v800_v18 = vld [vmem:[#allocation2 + $0x1848] sm:$0xff]  ;;  %v801_v19 = vld [vmem:[#allocation2 + $0x1850] sm:$0xff] }
 0x198   :  { %v802_v20 = vld [vmem:[#allocation2 + $0x1858] sm:$0xff]  ;;  %3866 = vst [vmem:[#allocation5 + $0x1818] sm:$0xff] %v4907_v9  ;;  %3867 = vst [vmem:[#allocation5 + $0x1820] sm:$0xff] %v4908_v10  ;;  %v4913_v21 = vclamps-f32 %v800_v18, 1.0  ;;  %v4914_v22 = vclamps-f32 %v801_v19, 1.0  ;;  %v803_v24 = vld [vmem:[#allocation2 + $0x1860] sm:$0xff] }
 0x199   :  { %3868 = vst [vmem:[#allocation5 + $0x1828] sm:$0xff] %v4909_v11  ;;  %v4915_v23 = vclamps-f32 %v802_v20, 1.0  ;;  %v804_v25 = vld [vmem:[#allocation2 + $0x1868] sm:$0xff]  ;;  %v805_v26 = vld [vmem:[#allocation2 + $0x1870] sm:$0xff]  ;;  %3869 = vst [vmem:[#allocation5 + $0x1830] sm:$0xff] %v4910_v15  ;;  %v4916_v27 = vclamps-f32 %v803_v24, 1.0 }
 0x19a   :  { %3870 = vst [vmem:[#allocation5 + $0x1838] sm:$0xff] %v4911_v16  ;;  %3871 = vst [vmem:[#allocation5 + $0x1840] sm:$0xff] %v4912_v17  ;;  %v4917_v28 = vclamps-f32 %v804_v25, 1.0  ;;  %v4918_v29 = vclamps-f32 %v805_v26, 1.0  ;;  %v806_v30 = vld [vmem:[#allocation2 + $0x1878] sm:$0xff]  ;;  %v807_v31 = vld [vmem:[#allocation2 + $0x1880] sm:$0xff] }
 0x19b   :  { %v808_v32 = vld [vmem:[#allocation2 + $0x1888] sm:$0xff]  ;;  %3872 = vst [vmem:[#allocation5 + $0x1848] sm:$0xff] %v4913_v21  ;;  %3873 = vst [vmem:[#allocation5 + $0x1850] sm:$0xff] %v4914_v22  ;;  %v4919_v33 = vclamps-f32 %v806_v30, 1.0  ;;  %v4920_v34 = vclamps-f32 %v807_v31, 1.0  ;;  %v809_v36 = vld [vmem:[#allocation2 + $0x1890] sm:$0xff] }
 0x19c   :  { %3874 = vst [vmem:[#allocation5 + $0x1858] sm:$0xff] %v4915_v23  ;;  %v4921_v35 = vclamps-f32 %v808_v32, 1.0  ;;  %v810_v37 = vld [vmem:[#allocation2 + $0x1898] sm:$0xff]  ;;  %v811_v38 = vld [vmem:[#allocation2 + $0x18a0] sm:$0xff]  ;;  %3875 = vst [vmem:[#allocation5 + $0x1860] sm:$0xff] %v4916_v27  ;;  %v4922_v39 = vclamps-f32 %v809_v36, 1.0 }
 0x19d   :  { %3876 = vst [vmem:[#allocation5 + $0x1868] sm:$0xff] %v4917_v28  ;;  %3877 = vst [vmem:[#allocation5 + $0x1870] sm:$0xff] %v4918_v29  ;;  %v4923_v40 = vclamps-f32 %v810_v37, 1.0  ;;  %v4924_v41 = vclamps-f32 %v811_v38, 1.0  ;;  %v812_v42 = vld [vmem:[#allocation2 + $0x18a8] sm:$0xff]  ;;  %v813_v43 = vld [vmem:[#allocation2 + $0x18b0] sm:$0xff] }
 0x19e   :  { %v814_v44 = vld [vmem:[#allocation2 + $0x18b8] sm:$0xff]  ;;  %3878 = vst [vmem:[#allocation5 + $0x1878] sm:$0xff] %v4919_v33  ;;  %3879 = vst [vmem:[#allocation5 + $0x1880] sm:$0xff] %v4920_v34  ;;  %v4925_v45 = vclamps-f32 %v812_v42, 1.0  ;;  %v4926_v46 = vclamps-f32 %v813_v43, 1.0  ;;  %v815_v48 = vld [vmem:[#allocation2 + $0x18c0] sm:$0xff] }
 0x19f   :  { %3880 = vst [vmem:[#allocation5 + $0x1888] sm:$0xff] %v4921_v35  ;;  %v4927_v47 = vclamps-f32 %v814_v44, 1.0  ;;  %v816_v49 = vld [vmem:[#allocation2 + $0x18c8] sm:$0xff]  ;;  %v817_v50 = vld [vmem:[#allocation2 + $0x18d0] sm:$0xff]  ;;  %3881 = vst [vmem:[#allocation5 + $0x1890] sm:$0xff] %v4922_v39  ;;  %v4928_v51 = vclamps-f32 %v815_v48, 1.0 }
 0x1a0   :  { %3882 = vst [vmem:[#allocation5 + $0x1898] sm:$0xff] %v4923_v40  ;;  %3883 = vst [vmem:[#allocation5 + $0x18a0] sm:$0xff] %v4924_v41  ;;  %v4929_v52 = vclamps-f32 %v816_v49, 1.0  ;;  %v4930_v53 = vclamps-f32 %v817_v50, 1.0  ;;  %v818_v54 = vld [vmem:[#allocation2 + $0x18d8] sm:$0xff]  ;;  %v819_v55 = vld [vmem:[#allocation2 + $0x18e0] sm:$0xff] }
 0x1a1   :  { %v820_v56 = vld [vmem:[#allocation2 + $0x18e8] sm:$0xff]  ;;  %3884 = vst [vmem:[#allocation5 + $0x18a8] sm:$0xff] %v4925_v45  ;;  %3885 = vst [vmem:[#allocation5 + $0x18b0] sm:$0xff] %v4926_v46  ;;  %v4931_v57 = vclamps-f32 %v818_v54, 1.0  ;;  %v4932_v58 = vclamps-f32 %v819_v55, 1.0  ;;  %v821_v60 = vld [vmem:[#allocation2 + $0x18f0] sm:$0xff] }
 0x1a2   :  { %3886 = vst [vmem:[#allocation5 + $0x18b8] sm:$0xff] %v4927_v47  ;;  %v4933_v59 = vclamps-f32 %v820_v56, 1.0  ;;  %v822_v61 = vld [vmem:[#allocation2 + $0x18f8] sm:$0xff]  ;;  %v823_v62 = vld [vmem:[#allocation2 + $0x1900] sm:$0xff]  ;;  %3887 = vst [vmem:[#allocation5 + $0x18c0] sm:$0xff] %v4928_v51  ;;  %v4934_v63 = vclamps-f32 %v821_v60, 1.0 }
 0x1a3   :  { %3888 = vst [vmem:[#allocation5 + $0x18c8] sm:$0xff] %v4929_v52  ;;  %3889 = vst [vmem:[#allocation5 + $0x18d0] sm:$0xff] %v4930_v53  ;;  %v4935_v0 = vclamps-f32 %v822_v61, 1.0  ;;  %v4936_v1 = vclamps-f32 %v823_v62, 1.0  ;;  %v824_v2 = vld [vmem:[#allocation2 + $0x1908] sm:$0xff]  ;;  %v825_v3 = vld [vmem:[#allocation2 + $0x1910] sm:$0xff] }
 0x1a4   :  { %v826_v4 = vld [vmem:[#allocation2 + $0x1918] sm:$0xff]  ;;  %3890 = vst [vmem:[#allocation5 + $0x18d8] sm:$0xff] %v4931_v57  ;;  %3891 = vst [vmem:[#allocation5 + $0x18e0] sm:$0xff] %v4932_v58  ;;  %v4937_v5 = vclamps-f32 %v824_v2, 1.0  ;;  %v4938_v6 = vclamps-f32 %v825_v3, 1.0  ;;  %v827_v8 = vld [vmem:[#allocation2 + $0x1920] sm:$0xff] }
 0x1a5   :  { %3892 = vst [vmem:[#allocation5 + $0x18e8] sm:$0xff] %v4933_v59  ;;  %v4939_v7 = vclamps-f32 %v826_v4, 1.0  ;;  %v828_v9 = vld [vmem:[#allocation2 + $0x1928] sm:$0xff]  ;;  %v829_v10 = vld [vmem:[#allocation2 + $0x1930] sm:$0xff]  ;;  %3893 = vst [vmem:[#allocation5 + $0x18f0] sm:$0xff] %v4934_v63  ;;  %v4940_v11 = vclamps-f32 %v827_v8, 1.0 }
 0x1a6   :  { %3894 = vst [vmem:[#allocation5 + $0x18f8] sm:$0xff] %v4935_v0  ;;  %3895 = vst [vmem:[#allocation5 + $0x1900] sm:$0xff] %v4936_v1  ;;  %v4941_v12 = vclamps-f32 %v828_v9, 1.0  ;;  %v4942_v13 = vclamps-f32 %v829_v10, 1.0  ;;  %v830_v14 = vld [vmem:[#allocation2 + $0x1938] sm:$0xff]  ;;  %v831_v15 = vld [vmem:[#allocation2 + $0x1940] sm:$0xff] }
 0x1a7   :  { %v832_v16 = vld [vmem:[#allocation2 + $0x1948] sm:$0xff]  ;;  %3896 = vst [vmem:[#allocation5 + $0x1908] sm:$0xff] %v4937_v5  ;;  %3897 = vst [vmem:[#allocation5 + $0x1910] sm:$0xff] %v4938_v6  ;;  %v4943_v17 = vclamps-f32 %v830_v14, 1.0  ;;  %v4944_v18 = vclamps-f32 %v831_v15, 1.0  ;;  %v833_v20 = vld [vmem:[#allocation2 + $0x1950] sm:$0xff] }
 0x1a8   :  { %3898 = vst [vmem:[#allocation5 + $0x1918] sm:$0xff] %v4939_v7  ;;  %v4945_v19 = vclamps-f32 %v832_v16, 1.0  ;;  %v834_v21 = vld [vmem:[#allocation2 + $0x1958] sm:$0xff]  ;;  %v835_v22 = vld [vmem:[#allocation2 + $0x1960] sm:$0xff]  ;;  %3899 = vst [vmem:[#allocation5 + $0x1920] sm:$0xff] %v4940_v11  ;;  %v4946_v23 = vclamps-f32 %v833_v20, 1.0 }
 0x1a9   :  { %3900 = vst [vmem:[#allocation5 + $0x1928] sm:$0xff] %v4941_v12  ;;  %3901 = vst [vmem:[#allocation5 + $0x1930] sm:$0xff] %v4942_v13  ;;  %v4947_v24 = vclamps-f32 %v834_v21, 1.0  ;;  %v4948_v25 = vclamps-f32 %v835_v22, 1.0  ;;  %v836_v26 = vld [vmem:[#allocation2 + $0x1968] sm:$0xff]  ;;  %v837_v27 = vld [vmem:[#allocation2 + $0x1970] sm:$0xff] }
 0x1aa   :  { %v838_v28 = vld [vmem:[#allocation2 + $0x1978] sm:$0xff]  ;;  %3902 = vst [vmem:[#allocation5 + $0x1938] sm:$0xff] %v4943_v17  ;;  %3903 = vst [vmem:[#allocation5 + $0x1940] sm:$0xff] %v4944_v18  ;;  %v4949_v29 = vclamps-f32 %v836_v26, 1.0  ;;  %v4950_v30 = vclamps-f32 %v837_v27, 1.0  ;;  %v839_v32 = vld [vmem:[#allocation2 + $0x1980] sm:$0xff] }
 0x1ab   :  { %3904 = vst [vmem:[#allocation5 + $0x1948] sm:$0xff] %v4945_v19  ;;  %v4951_v31 = vclamps-f32 %v838_v28, 1.0  ;;  %v840_v33 = vld [vmem:[#allocation2 + $0x1988] sm:$0xff]  ;;  %v841_v34 = vld [vmem:[#allocation2 + $0x1990] sm:$0xff]  ;;  %3905 = vst [vmem:[#allocation5 + $0x1950] sm:$0xff] %v4946_v23  ;;  %v4952_v35 = vclamps-f32 %v839_v32, 1.0 }
 0x1ac   :  { %3906 = vst [vmem:[#allocation5 + $0x1958] sm:$0xff] %v4947_v24  ;;  %3907 = vst [vmem:[#allocation5 + $0x1960] sm:$0xff] %v4948_v25  ;;  %v4953_v36 = vclamps-f32 %v840_v33, 1.0  ;;  %v4954_v37 = vclamps-f32 %v841_v34, 1.0  ;;  %v842_v38 = vld [vmem:[#allocation2 + $0x1998] sm:$0xff]  ;;  %v843_v39 = vld [vmem:[#allocation2 + $0x19a0] sm:$0xff] }
 0x1ad   :  { %v844_v40 = vld [vmem:[#allocation2 + $0x19a8] sm:$0xff]  ;;  %3908 = vst [vmem:[#allocation5 + $0x1968] sm:$0xff] %v4949_v29  ;;  %3909 = vst [vmem:[#allocation5 + $0x1970] sm:$0xff] %v4950_v30  ;;  %v4955_v41 = vclamps-f32 %v842_v38, 1.0  ;;  %v4956_v42 = vclamps-f32 %v843_v39, 1.0  ;;  %v845_v44 = vld [vmem:[#allocation2 + $0x19b0] sm:$0xff] }
 0x1ae   :  { %3910 = vst [vmem:[#allocation5 + $0x1978] sm:$0xff] %v4951_v31  ;;  %v4957_v43 = vclamps-f32 %v844_v40, 1.0  ;;  %v846_v45 = vld [vmem:[#allocation2 + $0x19b8] sm:$0xff]  ;;  %v847_v46 = vld [vmem:[#allocation2 + $0x19c0] sm:$0xff]  ;;  %3911 = vst [vmem:[#allocation5 + $0x1980] sm:$0xff] %v4952_v35  ;;  %v4958_v47 = vclamps-f32 %v845_v44, 1.0 }
 0x1af   :  { %3912 = vst [vmem:[#allocation5 + $0x1988] sm:$0xff] %v4953_v36  ;;  %3913 = vst [vmem:[#allocation5 + $0x1990] sm:$0xff] %v4954_v37  ;;  %v4959_v48 = vclamps-f32 %v846_v45, 1.0  ;;  %v4960_v49 = vclamps-f32 %v847_v46, 1.0  ;;  %v848_v50 = vld [vmem:[#allocation2 + $0x19c8] sm:$0xff]  ;;  %v849_v51 = vld [vmem:[#allocation2 + $0x19d0] sm:$0xff] }
 0x1b0   :  { %v850_v52 = vld [vmem:[#allocation2 + $0x19d8] sm:$0xff]  ;;  %3914 = vst [vmem:[#allocation5 + $0x1998] sm:$0xff] %v4955_v41  ;;  %3915 = vst [vmem:[#allocation5 + $0x19a0] sm:$0xff] %v4956_v42  ;;  %v4961_v53 = vclamps-f32 %v848_v50, 1.0  ;;  %v4962_v54 = vclamps-f32 %v849_v51, 1.0  ;;  %v851_v56 = vld [vmem:[#allocation2 + $0x19e0] sm:$0xff] }
 0x1b1   :  { %3916 = vst [vmem:[#allocation5 + $0x19a8] sm:$0xff] %v4957_v43  ;;  %v4963_v55 = vclamps-f32 %v850_v52, 1.0  ;;  %v852_v57 = vld [vmem:[#allocation2 + $0x19e8] sm:$0xff]  ;;  %v853_v58 = vld [vmem:[#allocation2 + $0x19f0] sm:$0xff]  ;;  %3917 = vst [vmem:[#allocation5 + $0x19b0] sm:$0xff] %v4958_v47  ;;  %v4964_v59 = vclamps-f32 %v851_v56, 1.0 }
 0x1b2   :  { %3918 = vst [vmem:[#allocation5 + $0x19b8] sm:$0xff] %v4959_v48  ;;  %3919 = vst [vmem:[#allocation5 + $0x19c0] sm:$0xff] %v4960_v49  ;;  %v4965_v60 = vclamps-f32 %v852_v57, 1.0  ;;  %v4966_v61 = vclamps-f32 %v853_v58, 1.0  ;;  %v854_v62 = vld [vmem:[#allocation2 + $0x19f8] sm:$0xff]  ;;  %v855_v63 = vld [vmem:[#allocation2 + $0x1a00] sm:$0xff] }
 0x1b3   :  { %v856_v0 = vld [vmem:[#allocation2 + $0x1a08] sm:$0xff]  ;;  %3920 = vst [vmem:[#allocation5 + $0x19c8] sm:$0xff] %v4961_v53  ;;  %3921 = vst [vmem:[#allocation5 + $0x19d0] sm:$0xff] %v4962_v54  ;;  %v4967_v1 = vclamps-f32 %v854_v62, 1.0  ;;  %v4968_v2 = vclamps-f32 %v855_v63, 1.0  ;;  %v857_v4 = vld [vmem:[#allocation2 + $0x1a10] sm:$0xff] }
 0x1b4   :  { %3922 = vst [vmem:[#allocation5 + $0x19d8] sm:$0xff] %v4963_v55  ;;  %v4969_v3 = vclamps-f32 %v856_v0, 1.0  ;;  %v858_v5 = vld [vmem:[#allocation2 + $0x1a18] sm:$0xff]  ;;  %v859_v6 = vld [vmem:[#allocation2 + $0x1a20] sm:$0xff]  ;;  %3923 = vst [vmem:[#allocation5 + $0x19e0] sm:$0xff] %v4964_v59  ;;  %v4970_v7 = vclamps-f32 %v857_v4, 1.0 }
 0x1b5   :  { %3924 = vst [vmem:[#allocation5 + $0x19e8] sm:$0xff] %v4965_v60  ;;  %3925 = vst [vmem:[#allocation5 + $0x19f0] sm:$0xff] %v4966_v61  ;;  %v4971_v8 = vclamps-f32 %v858_v5, 1.0  ;;  %v4972_v9 = vclamps-f32 %v859_v6, 1.0  ;;  %v860_v10 = vld [vmem:[#allocation2 + $0x1a28] sm:$0xff]  ;;  %v861_v11 = vld [vmem:[#allocation2 + $0x1a30] sm:$0xff] }
 0x1b6   :  { %v862_v12 = vld [vmem:[#allocation2 + $0x1a38] sm:$0xff]  ;;  %3926 = vst [vmem:[#allocation5 + $0x19f8] sm:$0xff] %v4967_v1  ;;  %3927 = vst [vmem:[#allocation5 + $0x1a00] sm:$0xff] %v4968_v2  ;;  %v4973_v13 = vclamps-f32 %v860_v10, 1.0  ;;  %v4974_v14 = vclamps-f32 %v861_v11, 1.0  ;;  %v863_v16 = vld [vmem:[#allocation2 + $0x1a40] sm:$0xff] }
 0x1b7   :  { %3928 = vst [vmem:[#allocation5 + $0x1a08] sm:$0xff] %v4969_v3  ;;  %v4975_v15 = vclamps-f32 %v862_v12, 1.0  ;;  %v864_v17 = vld [vmem:[#allocation2 + $0x1a48] sm:$0xff]  ;;  %v865_v18 = vld [vmem:[#allocation2 + $0x1a50] sm:$0xff]  ;;  %3929 = vst [vmem:[#allocation5 + $0x1a10] sm:$0xff] %v4970_v7  ;;  %v4976_v19 = vclamps-f32 %v863_v16, 1.0 }
 0x1b8   :  { %3930 = vst [vmem:[#allocation5 + $0x1a18] sm:$0xff] %v4971_v8  ;;  %3931 = vst [vmem:[#allocation5 + $0x1a20] sm:$0xff] %v4972_v9  ;;  %v4977_v20 = vclamps-f32 %v864_v17, 1.0  ;;  %v4978_v21 = vclamps-f32 %v865_v18, 1.0  ;;  %v866_v22 = vld [vmem:[#allocation2 + $0x1a58] sm:$0xff]  ;;  %v867_v23 = vld [vmem:[#allocation2 + $0x1a60] sm:$0xff] }
 0x1b9   :  { %v868_v24 = vld [vmem:[#allocation2 + $0x1a68] sm:$0xff]  ;;  %3932 = vst [vmem:[#allocation5 + $0x1a28] sm:$0xff] %v4973_v13  ;;  %3933 = vst [vmem:[#allocation5 + $0x1a30] sm:$0xff] %v4974_v14  ;;  %v4979_v25 = vclamps-f32 %v866_v22, 1.0  ;;  %v4980_v26 = vclamps-f32 %v867_v23, 1.0  ;;  %v869_v28 = vld [vmem:[#allocation2 + $0x1a70] sm:$0xff] }
 0x1ba   :  { %3934 = vst [vmem:[#allocation5 + $0x1a38] sm:$0xff] %v4975_v15  ;;  %v4981_v27 = vclamps-f32 %v868_v24, 1.0  ;;  %v870_v29 = vld [vmem:[#allocation2 + $0x1a78] sm:$0xff]  ;;  %v871_v30 = vld [vmem:[#allocation2 + $0x1a80] sm:$0xff]  ;;  %3935 = vst [vmem:[#allocation5 + $0x1a40] sm:$0xff] %v4976_v19  ;;  %v4982_v31 = vclamps-f32 %v869_v28, 1.0 }
 0x1bb   :  { %3936 = vst [vmem:[#allocation5 + $0x1a48] sm:$0xff] %v4977_v20  ;;  %3937 = vst [vmem:[#allocation5 + $0x1a50] sm:$0xff] %v4978_v21  ;;  %v4983_v32 = vclamps-f32 %v870_v29, 1.0  ;;  %v4984_v33 = vclamps-f32 %v871_v30, 1.0  ;;  %v872_v34 = vld [vmem:[#allocation2 + $0x1a88] sm:$0xff]  ;;  %v873_v35 = vld [vmem:[#allocation2 + $0x1a90] sm:$0xff] }
 0x1bc   :  { %v874_v36 = vld [vmem:[#allocation2 + $0x1a98] sm:$0xff]  ;;  %3938 = vst [vmem:[#allocation5 + $0x1a58] sm:$0xff] %v4979_v25  ;;  %3939 = vst [vmem:[#allocation5 + $0x1a60] sm:$0xff] %v4980_v26  ;;  %v4985_v37 = vclamps-f32 %v872_v34, 1.0  ;;  %v4986_v38 = vclamps-f32 %v873_v35, 1.0  ;;  %v875_v40 = vld [vmem:[#allocation2 + $0x1aa0] sm:$0xff] }
 0x1bd   :  { %3940 = vst [vmem:[#allocation5 + $0x1a68] sm:$0xff] %v4981_v27  ;;  %v4987_v39 = vclamps-f32 %v874_v36, 1.0  ;;  %v876_v41 = vld [vmem:[#allocation2 + $0x1aa8] sm:$0xff]  ;;  %v877_v42 = vld [vmem:[#allocation2 + $0x1ab0] sm:$0xff]  ;;  %3941 = vst [vmem:[#allocation5 + $0x1a70] sm:$0xff] %v4982_v31  ;;  %v4988_v43 = vclamps-f32 %v875_v40, 1.0 }
 0x1be   :  { %3942 = vst [vmem:[#allocation5 + $0x1a78] sm:$0xff] %v4983_v32  ;;  %3943 = vst [vmem:[#allocation5 + $0x1a80] sm:$0xff] %v4984_v33  ;;  %v4989_v44 = vclamps-f32 %v876_v41, 1.0  ;;  %v4990_v45 = vclamps-f32 %v877_v42, 1.0  ;;  %v878_v46 = vld [vmem:[#allocation2 + $0x1ab8] sm:$0xff]  ;;  %v879_v47 = vld [vmem:[#allocation2 + $0x1ac0] sm:$0xff] }
 0x1bf   :  { %v880_v48 = vld [vmem:[#allocation2 + $0x1ac8] sm:$0xff]  ;;  %3944 = vst [vmem:[#allocation5 + $0x1a88] sm:$0xff] %v4985_v37  ;;  %3945 = vst [vmem:[#allocation5 + $0x1a90] sm:$0xff] %v4986_v38  ;;  %v4991_v49 = vclamps-f32 %v878_v46, 1.0  ;;  %v4992_v50 = vclamps-f32 %v879_v47, 1.0  ;;  %v881_v52 = vld [vmem:[#allocation2 + $0x1ad0] sm:$0xff] }
 0x1c0   :  { %3946 = vst [vmem:[#allocation5 + $0x1a98] sm:$0xff] %v4987_v39  ;;  %v4993_v51 = vclamps-f32 %v880_v48, 1.0  ;;  %v882_v53 = vld [vmem:[#allocation2 + $0x1ad8] sm:$0xff]  ;;  %v883_v54 = vld [vmem:[#allocation2 + $0x1ae0] sm:$0xff]  ;;  %3947 = vst [vmem:[#allocation5 + $0x1aa0] sm:$0xff] %v4988_v43  ;;  %v4994_v55 = vclamps-f32 %v881_v52, 1.0 }
 0x1c1   :  { %3948 = vst [vmem:[#allocation5 + $0x1aa8] sm:$0xff] %v4989_v44  ;;  %3949 = vst [vmem:[#allocation5 + $0x1ab0] sm:$0xff] %v4990_v45  ;;  %v4995_v56 = vclamps-f32 %v882_v53, 1.0  ;;  %v4996_v57 = vclamps-f32 %v883_v54, 1.0  ;;  %v884_v58 = vld [vmem:[#allocation2 + $0x1ae8] sm:$0xff]  ;;  %v885_v59 = vld [vmem:[#allocation2 + $0x1af0] sm:$0xff] }
 0x1c2   :  { %v886_v60 = vld [vmem:[#allocation2 + $0x1af8] sm:$0xff]  ;;  %3950 = vst [vmem:[#allocation5 + $0x1ab8] sm:$0xff] %v4991_v49  ;;  %3951 = vst [vmem:[#allocation5 + $0x1ac0] sm:$0xff] %v4992_v50  ;;  %v4997_v61 = vclamps-f32 %v884_v58, 1.0  ;;  %v4998_v62 = vclamps-f32 %v885_v59, 1.0  ;;  %v887_v0 = vld [vmem:[#allocation2 + $0x1b00] sm:$0xff] }
 0x1c3   :  { %3952 = vst [vmem:[#allocation5 + $0x1ac8] sm:$0xff] %v4993_v51  ;;  %v4999_v63 = vclamps-f32 %v886_v60, 1.0  ;;  %v888_v1 = vld [vmem:[#allocation2 + $0x1b08] sm:$0xff]  ;;  %v889_v2 = vld [vmem:[#allocation2 + $0x1b10] sm:$0xff]  ;;  %3953 = vst [vmem:[#allocation5 + $0x1ad0] sm:$0xff] %v4994_v55  ;;  %v5000_v3 = vclamps-f32 %v887_v0, 1.0 }
 0x1c4   :  { %3954 = vst [vmem:[#allocation5 + $0x1ad8] sm:$0xff] %v4995_v56  ;;  %3955 = vst [vmem:[#allocation5 + $0x1ae0] sm:$0xff] %v4996_v57  ;;  %v5001_v4 = vclamps-f32 %v888_v1, 1.0  ;;  %v5002_v5 = vclamps-f32 %v889_v2, 1.0  ;;  %v890_v6 = vld [vmem:[#allocation2 + $0x1b18] sm:$0xff]  ;;  %v891_v7 = vld [vmem:[#allocation2 + $0x1b20] sm:$0xff] }
 0x1c5   :  { %v892_v8 = vld [vmem:[#allocation2 + $0x1b28] sm:$0xff]  ;;  %3956 = vst [vmem:[#allocation5 + $0x1ae8] sm:$0xff] %v4997_v61  ;;  %3957 = vst [vmem:[#allocation5 + $0x1af0] sm:$0xff] %v4998_v62  ;;  %v5003_v9 = vclamps-f32 %v890_v6, 1.0  ;;  %v5004_v10 = vclamps-f32 %v891_v7, 1.0  ;;  %v893_v12 = vld [vmem:[#allocation2 + $0x1b30] sm:$0xff] }
 0x1c6   :  { %3958 = vst [vmem:[#allocation5 + $0x1af8] sm:$0xff] %v4999_v63  ;;  %v5005_v11 = vclamps-f32 %v892_v8, 1.0  ;;  %v894_v13 = vld [vmem:[#allocation2 + $0x1b38] sm:$0xff]  ;;  %v895_v14 = vld [vmem:[#allocation2 + $0x1b40] sm:$0xff]  ;;  %3959 = vst [vmem:[#allocation5 + $0x1b00] sm:$0xff] %v5000_v3  ;;  %v5006_v15 = vclamps-f32 %v893_v12, 1.0 }
 0x1c7   :  { %3960 = vst [vmem:[#allocation5 + $0x1b08] sm:$0xff] %v5001_v4  ;;  %3961 = vst [vmem:[#allocation5 + $0x1b10] sm:$0xff] %v5002_v5  ;;  %v5007_v16 = vclamps-f32 %v894_v13, 1.0  ;;  %v5008_v17 = vclamps-f32 %v895_v14, 1.0  ;;  %v896_v18 = vld [vmem:[#allocation2 + $0x1b48] sm:$0xff]  ;;  %v897_v19 = vld [vmem:[#allocation2 + $0x1b50] sm:$0xff] }
 0x1c8   :  { %v898_v20 = vld [vmem:[#allocation2 + $0x1b58] sm:$0xff]  ;;  %3962 = vst [vmem:[#allocation5 + $0x1b18] sm:$0xff] %v5003_v9  ;;  %3963 = vst [vmem:[#allocation5 + $0x1b20] sm:$0xff] %v5004_v10  ;;  %v5009_v21 = vclamps-f32 %v896_v18, 1.0  ;;  %v5010_v22 = vclamps-f32 %v897_v19, 1.0  ;;  %v899_v24 = vld [vmem:[#allocation2 + $0x1b60] sm:$0xff] }
 0x1c9   :  { %3964 = vst [vmem:[#allocation5 + $0x1b28] sm:$0xff] %v5005_v11  ;;  %v5011_v23 = vclamps-f32 %v898_v20, 1.0  ;;  %v900_v25 = vld [vmem:[#allocation2 + $0x1b68] sm:$0xff]  ;;  %v901_v26 = vld [vmem:[#allocation2 + $0x1b70] sm:$0xff]  ;;  %3965 = vst [vmem:[#allocation5 + $0x1b30] sm:$0xff] %v5006_v15  ;;  %v5012_v27 = vclamps-f32 %v899_v24, 1.0 }
 0x1ca   :  { %3966 = vst [vmem:[#allocation5 + $0x1b38] sm:$0xff] %v5007_v16  ;;  %3967 = vst [vmem:[#allocation5 + $0x1b40] sm:$0xff] %v5008_v17  ;;  %v5013_v28 = vclamps-f32 %v900_v25, 1.0  ;;  %v5014_v29 = vclamps-f32 %v901_v26, 1.0  ;;  %v902_v30 = vld [vmem:[#allocation2 + $0x1b78] sm:$0xff]  ;;  %v903_v31 = vld [vmem:[#allocation2 + $0x1b80] sm:$0xff] }
 0x1cb   :  { %v904_v32 = vld [vmem:[#allocation2 + $0x1b88] sm:$0xff]  ;;  %3968 = vst [vmem:[#allocation5 + $0x1b48] sm:$0xff] %v5009_v21  ;;  %3969 = vst [vmem:[#allocation5 + $0x1b50] sm:$0xff] %v5010_v22  ;;  %v5015_v33 = vclamps-f32 %v902_v30, 1.0  ;;  %v5016_v34 = vclamps-f32 %v903_v31, 1.0  ;;  %v905_v36 = vld [vmem:[#allocation2 + $0x1b90] sm:$0xff] }
 0x1cc   :  { %3970 = vst [vmem:[#allocation5 + $0x1b58] sm:$0xff] %v5011_v23  ;;  %v5017_v35 = vclamps-f32 %v904_v32, 1.0  ;;  %v906_v37 = vld [vmem:[#allocation2 + $0x1b98] sm:$0xff]  ;;  %v907_v38 = vld [vmem:[#allocation2 + $0x1ba0] sm:$0xff]  ;;  %3971 = vst [vmem:[#allocation5 + $0x1b60] sm:$0xff] %v5012_v27  ;;  %v5018_v39 = vclamps-f32 %v905_v36, 1.0 }
 0x1cd   :  { %3972 = vst [vmem:[#allocation5 + $0x1b68] sm:$0xff] %v5013_v28  ;;  %3973 = vst [vmem:[#allocation5 + $0x1b70] sm:$0xff] %v5014_v29  ;;  %v5019_v40 = vclamps-f32 %v906_v37, 1.0  ;;  %v5020_v41 = vclamps-f32 %v907_v38, 1.0  ;;  %v908_v42 = vld [vmem:[#allocation2 + $0x1ba8] sm:$0xff]  ;;  %v909_v43 = vld [vmem:[#allocation2 + $0x1bb0] sm:$0xff] }
 0x1ce   :  { %v910_v44 = vld [vmem:[#allocation2 + $0x1bb8] sm:$0xff]  ;;  %3974 = vst [vmem:[#allocation5 + $0x1b78] sm:$0xff] %v5015_v33  ;;  %3975 = vst [vmem:[#allocation5 + $0x1b80] sm:$0xff] %v5016_v34  ;;  %v5021_v45 = vclamps-f32 %v908_v42, 1.0  ;;  %v5022_v46 = vclamps-f32 %v909_v43, 1.0  ;;  %v911_v48 = vld [vmem:[#allocation2 + $0x1bc0] sm:$0xff] }
 0x1cf   :  { %3976 = vst [vmem:[#allocation5 + $0x1b88] sm:$0xff] %v5017_v35  ;;  %v5023_v47 = vclamps-f32 %v910_v44, 1.0  ;;  %v912_v49 = vld [vmem:[#allocation2 + $0x1bc8] sm:$0xff]  ;;  %v913_v50 = vld [vmem:[#allocation2 + $0x1bd0] sm:$0xff]  ;;  %3977 = vst [vmem:[#allocation5 + $0x1b90] sm:$0xff] %v5018_v39  ;;  %v5024_v51 = vclamps-f32 %v911_v48, 1.0 }
 0x1d0   :  { %3978 = vst [vmem:[#allocation5 + $0x1b98] sm:$0xff] %v5019_v40  ;;  %3979 = vst [vmem:[#allocation5 + $0x1ba0] sm:$0xff] %v5020_v41  ;;  %v5025_v52 = vclamps-f32 %v912_v49, 1.0  ;;  %v5026_v53 = vclamps-f32 %v913_v50, 1.0  ;;  %v914_v54 = vld [vmem:[#allocation2 + $0x1bd8] sm:$0xff]  ;;  %v915_v55 = vld [vmem:[#allocation2 + $0x1be0] sm:$0xff] }
 0x1d1   :  { %v916_v56 = vld [vmem:[#allocation2 + $0x1be8] sm:$0xff]  ;;  %3980 = vst [vmem:[#allocation5 + $0x1ba8] sm:$0xff] %v5021_v45  ;;  %3981 = vst [vmem:[#allocation5 + $0x1bb0] sm:$0xff] %v5022_v46  ;;  %v5027_v57 = vclamps-f32 %v914_v54, 1.0  ;;  %v5028_v58 = vclamps-f32 %v915_v55, 1.0  ;;  %v917_v60 = vld [vmem:[#allocation2 + $0x1bf0] sm:$0xff] }
 0x1d2   :  { %3982 = vst [vmem:[#allocation5 + $0x1bb8] sm:$0xff] %v5023_v47  ;;  %v5029_v59 = vclamps-f32 %v916_v56, 1.0  ;;  %v918_v61 = vld [vmem:[#allocation2 + $0x1bf8] sm:$0xff]  ;;  %v919_v62 = vld [vmem:[#allocation2 + $0x1c00] sm:$0xff]  ;;  %3983 = vst [vmem:[#allocation5 + $0x1bc0] sm:$0xff] %v5024_v51  ;;  %v5030_v63 = vclamps-f32 %v917_v60, 1.0 }
 0x1d3   :  { %3984 = vst [vmem:[#allocation5 + $0x1bc8] sm:$0xff] %v5025_v52  ;;  %3985 = vst [vmem:[#allocation5 + $0x1bd0] sm:$0xff] %v5026_v53  ;;  %v5031_v0 = vclamps-f32 %v918_v61, 1.0  ;;  %v5032_v1 = vclamps-f32 %v919_v62, 1.0  ;;  %v920_v2 = vld [vmem:[#allocation2 + $0x1c08] sm:$0xff]  ;;  %v921_v3 = vld [vmem:[#allocation2 + $0x1c10] sm:$0xff] }
 0x1d4   :  { %v922_v4 = vld [vmem:[#allocation2 + $0x1c18] sm:$0xff]  ;;  %3986 = vst [vmem:[#allocation5 + $0x1bd8] sm:$0xff] %v5027_v57  ;;  %3987 = vst [vmem:[#allocation5 + $0x1be0] sm:$0xff] %v5028_v58  ;;  %v5033_v5 = vclamps-f32 %v920_v2, 1.0  ;;  %v5034_v6 = vclamps-f32 %v921_v3, 1.0  ;;  %v923_v8 = vld [vmem:[#allocation2 + $0x1c20] sm:$0xff] }
 0x1d5   :  { %3988 = vst [vmem:[#allocation5 + $0x1be8] sm:$0xff] %v5029_v59  ;;  %v5035_v7 = vclamps-f32 %v922_v4, 1.0  ;;  %v924_v9 = vld [vmem:[#allocation2 + $0x1c28] sm:$0xff]  ;;  %v925_v10 = vld [vmem:[#allocation2 + $0x1c30] sm:$0xff]  ;;  %3989 = vst [vmem:[#allocation5 + $0x1bf0] sm:$0xff] %v5030_v63  ;;  %v5036_v11 = vclamps-f32 %v923_v8, 1.0 }
 0x1d6   :  { %3990 = vst [vmem:[#allocation5 + $0x1bf8] sm:$0xff] %v5031_v0  ;;  %3991 = vst [vmem:[#allocation5 + $0x1c00] sm:$0xff] %v5032_v1  ;;  %v5037_v12 = vclamps-f32 %v924_v9, 1.0  ;;  %v5038_v13 = vclamps-f32 %v925_v10, 1.0  ;;  %v926_v14 = vld [vmem:[#allocation2 + $0x1c38] sm:$0xff]  ;;  %v927_v15 = vld [vmem:[#allocation2 + $0x1c40] sm:$0xff] }
 0x1d7   :  { %v928_v16 = vld [vmem:[#allocation2 + $0x1c48] sm:$0xff]  ;;  %3992 = vst [vmem:[#allocation5 + $0x1c08] sm:$0xff] %v5033_v5  ;;  %3993 = vst [vmem:[#allocation5 + $0x1c10] sm:$0xff] %v5034_v6  ;;  %v5039_v17 = vclamps-f32 %v926_v14, 1.0  ;;  %v5040_v18 = vclamps-f32 %v927_v15, 1.0  ;;  %v929_v20 = vld [vmem:[#allocation2 + $0x1c50] sm:$0xff] }
 0x1d8   :  { %3994 = vst [vmem:[#allocation5 + $0x1c18] sm:$0xff] %v5035_v7  ;;  %v5041_v19 = vclamps-f32 %v928_v16, 1.0  ;;  %v930_v21 = vld [vmem:[#allocation2 + $0x1c58] sm:$0xff]  ;;  %v931_v22 = vld [vmem:[#allocation2 + $0x1c60] sm:$0xff]  ;;  %3995 = vst [vmem:[#allocation5 + $0x1c20] sm:$0xff] %v5036_v11  ;;  %v5042_v23 = vclamps-f32 %v929_v20, 1.0 }
 0x1d9   :  { %3996 = vst [vmem:[#allocation5 + $0x1c28] sm:$0xff] %v5037_v12  ;;  %3997 = vst [vmem:[#allocation5 + $0x1c30] sm:$0xff] %v5038_v13  ;;  %v5043_v24 = vclamps-f32 %v930_v21, 1.0  ;;  %v5044_v25 = vclamps-f32 %v931_v22, 1.0  ;;  %v932_v26 = vld [vmem:[#allocation2 + $0x1c68] sm:$0xff]  ;;  %v933_v27 = vld [vmem:[#allocation2 + $0x1c70] sm:$0xff] }
 0x1da   :  { %v934_v28 = vld [vmem:[#allocation2 + $0x1c78] sm:$0xff]  ;;  %3998 = vst [vmem:[#allocation5 + $0x1c38] sm:$0xff] %v5039_v17  ;;  %3999 = vst [vmem:[#allocation5 + $0x1c40] sm:$0xff] %v5040_v18  ;;  %v5045_v29 = vclamps-f32 %v932_v26, 1.0  ;;  %v5046_v30 = vclamps-f32 %v933_v27, 1.0  ;;  %v935_v32 = vld [vmem:[#allocation2 + $0x1c80] sm:$0xff] }
 0x1db   :  { %4000 = vst [vmem:[#allocation5 + $0x1c48] sm:$0xff] %v5041_v19  ;;  %v5047_v31 = vclamps-f32 %v934_v28, 1.0  ;;  %v936_v33 = vld [vmem:[#allocation2 + $0x1c88] sm:$0xff]  ;;  %v937_v34 = vld [vmem:[#allocation2 + $0x1c90] sm:$0xff]  ;;  %4001 = vst [vmem:[#allocation5 + $0x1c50] sm:$0xff] %v5042_v23  ;;  %v5048_v35 = vclamps-f32 %v935_v32, 1.0 }
 0x1dc   :  { %4002 = vst [vmem:[#allocation5 + $0x1c58] sm:$0xff] %v5043_v24  ;;  %4003 = vst [vmem:[#allocation5 + $0x1c60] sm:$0xff] %v5044_v25  ;;  %v5049_v36 = vclamps-f32 %v936_v33, 1.0  ;;  %v5050_v37 = vclamps-f32 %v937_v34, 1.0  ;;  %v938_v38 = vld [vmem:[#allocation2 + $0x1c98] sm:$0xff]  ;;  %v939_v39 = vld [vmem:[#allocation2 + $0x1ca0] sm:$0xff] }
 0x1dd   :  { %v940_v40 = vld [vmem:[#allocation2 + $0x1ca8] sm:$0xff]  ;;  %4004 = vst [vmem:[#allocation5 + $0x1c68] sm:$0xff] %v5045_v29  ;;  %4005 = vst [vmem:[#allocation5 + $0x1c70] sm:$0xff] %v5046_v30  ;;  %v5051_v41 = vclamps-f32 %v938_v38, 1.0  ;;  %v5052_v42 = vclamps-f32 %v939_v39, 1.0  ;;  %v941_v44 = vld [vmem:[#allocation2 + $0x1cb0] sm:$0xff] }
 0x1de   :  { %4006 = vst [vmem:[#allocation5 + $0x1c78] sm:$0xff] %v5047_v31  ;;  %v5053_v43 = vclamps-f32 %v940_v40, 1.0  ;;  %v942_v45 = vld [vmem:[#allocation2 + $0x1cb8] sm:$0xff]  ;;  %v943_v46 = vld [vmem:[#allocation2 + $0x1cc0] sm:$0xff]  ;;  %4007 = vst [vmem:[#allocation5 + $0x1c80] sm:$0xff] %v5048_v35  ;;  %v5054_v47 = vclamps-f32 %v941_v44, 1.0 }
 0x1df   :  { %4008 = vst [vmem:[#allocation5 + $0x1c88] sm:$0xff] %v5049_v36  ;;  %4009 = vst [vmem:[#allocation5 + $0x1c90] sm:$0xff] %v5050_v37  ;;  %v5055_v48 = vclamps-f32 %v942_v45, 1.0  ;;  %v5056_v49 = vclamps-f32 %v943_v46, 1.0  ;;  %v944_v50 = vld [vmem:[#allocation2 + $0x1cc8] sm:$0xff]  ;;  %v945_v51 = vld [vmem:[#allocation2 + $0x1cd0] sm:$0xff] }
 0x1e0   :  { %v946_v52 = vld [vmem:[#allocation2 + $0x1cd8] sm:$0xff]  ;;  %4010 = vst [vmem:[#allocation5 + $0x1c98] sm:$0xff] %v5051_v41  ;;  %4011 = vst [vmem:[#allocation5 + $0x1ca0] sm:$0xff] %v5052_v42  ;;  %v5057_v53 = vclamps-f32 %v944_v50, 1.0  ;;  %v5058_v54 = vclamps-f32 %v945_v51, 1.0  ;;  %v947_v56 = vld [vmem:[#allocation2 + $0x1ce0] sm:$0xff] }
 0x1e1   :  { %4012 = vst [vmem:[#allocation5 + $0x1ca8] sm:$0xff] %v5053_v43  ;;  %v5059_v55 = vclamps-f32 %v946_v52, 1.0  ;;  %v948_v57 = vld [vmem:[#allocation2 + $0x1ce8] sm:$0xff]  ;;  %v949_v58 = vld [vmem:[#allocation2 + $0x1cf0] sm:$0xff]  ;;  %4013 = vst [vmem:[#allocation5 + $0x1cb0] sm:$0xff] %v5054_v47  ;;  %v5060_v59 = vclamps-f32 %v947_v56, 1.0 }
 0x1e2   :  { %4014 = vst [vmem:[#allocation5 + $0x1cb8] sm:$0xff] %v5055_v48  ;;  %4015 = vst [vmem:[#allocation5 + $0x1cc0] sm:$0xff] %v5056_v49  ;;  %v5061_v60 = vclamps-f32 %v948_v57, 1.0  ;;  %v5062_v61 = vclamps-f32 %v949_v58, 1.0  ;;  %v950_v62 = vld [vmem:[#allocation2 + $0x1cf8] sm:$0xff]  ;;  %v951_v63 = vld [vmem:[#allocation2 + $0x1d00] sm:$0xff] }
 0x1e3   :  { %v952_v0 = vld [vmem:[#allocation2 + $0x1d08] sm:$0xff]  ;;  %4016 = vst [vmem:[#allocation5 + $0x1cc8] sm:$0xff] %v5057_v53  ;;  %4017 = vst [vmem:[#allocation5 + $0x1cd0] sm:$0xff] %v5058_v54  ;;  %v5063_v1 = vclamps-f32 %v950_v62, 1.0  ;;  %v5064_v2 = vclamps-f32 %v951_v63, 1.0  ;;  %v953_v4 = vld [vmem:[#allocation2 + $0x1d10] sm:$0xff] }
 0x1e4   :  { %4018 = vst [vmem:[#allocation5 + $0x1cd8] sm:$0xff] %v5059_v55  ;;  %v5065_v3 = vclamps-f32 %v952_v0, 1.0  ;;  %v954_v5 = vld [vmem:[#allocation2 + $0x1d18] sm:$0xff]  ;;  %v955_v6 = vld [vmem:[#allocation2 + $0x1d20] sm:$0xff]  ;;  %4019 = vst [vmem:[#allocation5 + $0x1ce0] sm:$0xff] %v5060_v59  ;;  %v5066_v7 = vclamps-f32 %v953_v4, 1.0 }
 0x1e5   :  { %4020 = vst [vmem:[#allocation5 + $0x1ce8] sm:$0xff] %v5061_v60  ;;  %4021 = vst [vmem:[#allocation5 + $0x1cf0] sm:$0xff] %v5062_v61  ;;  %v5067_v8 = vclamps-f32 %v954_v5, 1.0  ;;  %v5068_v9 = vclamps-f32 %v955_v6, 1.0  ;;  %v956_v10 = vld [vmem:[#allocation2 + $0x1d28] sm:$0xff]  ;;  %v957_v11 = vld [vmem:[#allocation2 + $0x1d30] sm:$0xff] }
 0x1e6   :  { %v958_v12 = vld [vmem:[#allocation2 + $0x1d38] sm:$0xff]  ;;  %4022 = vst [vmem:[#allocation5 + $0x1cf8] sm:$0xff] %v5063_v1  ;;  %4023 = vst [vmem:[#allocation5 + $0x1d00] sm:$0xff] %v5064_v2  ;;  %v5069_v13 = vclamps-f32 %v956_v10, 1.0  ;;  %v5070_v14 = vclamps-f32 %v957_v11, 1.0  ;;  %v959_v16 = vld [vmem:[#allocation2 + $0x1d40] sm:$0xff] }
 0x1e7   :  { %4024 = vst [vmem:[#allocation5 + $0x1d08] sm:$0xff] %v5065_v3  ;;  %v5071_v15 = vclamps-f32 %v958_v12, 1.0  ;;  %v960_v17 = vld [vmem:[#allocation2 + $0x1d48] sm:$0xff]  ;;  %v961_v18 = vld [vmem:[#allocation2 + $0x1d50] sm:$0xff]  ;;  %4025 = vst [vmem:[#allocation5 + $0x1d10] sm:$0xff] %v5066_v7  ;;  %v5072_v19 = vclamps-f32 %v959_v16, 1.0 }
 0x1e8   :  { %4026 = vst [vmem:[#allocation5 + $0x1d18] sm:$0xff] %v5067_v8  ;;  %4027 = vst [vmem:[#allocation5 + $0x1d20] sm:$0xff] %v5068_v9  ;;  %v5073_v20 = vclamps-f32 %v960_v17, 1.0  ;;  %v5074_v21 = vclamps-f32 %v961_v18, 1.0  ;;  %v962_v22 = vld [vmem:[#allocation2 + $0x1d58] sm:$0xff]  ;;  %v963_v23 = vld [vmem:[#allocation2 + $0x1d60] sm:$0xff] }
 0x1e9   :  { %v964_v24 = vld [vmem:[#allocation2 + $0x1d68] sm:$0xff]  ;;  %4028 = vst [vmem:[#allocation5 + $0x1d28] sm:$0xff] %v5069_v13  ;;  %4029 = vst [vmem:[#allocation5 + $0x1d30] sm:$0xff] %v5070_v14  ;;  %v5075_v25 = vclamps-f32 %v962_v22, 1.0  ;;  %v5076_v26 = vclamps-f32 %v963_v23, 1.0  ;;  %v965_v28 = vld [vmem:[#allocation2 + $0x1d70] sm:$0xff] }
 0x1ea   :  { %4030 = vst [vmem:[#allocation5 + $0x1d38] sm:$0xff] %v5071_v15  ;;  %v5077_v27 = vclamps-f32 %v964_v24, 1.0  ;;  %v966_v29 = vld [vmem:[#allocation2 + $0x1d78] sm:$0xff]  ;;  %v967_v30 = vld [vmem:[#allocation2 + $0x1d80] sm:$0xff]  ;;  %4031 = vst [vmem:[#allocation5 + $0x1d40] sm:$0xff] %v5072_v19  ;;  %v5078_v31 = vclamps-f32 %v965_v28, 1.0 }
 0x1eb   :  { %4032 = vst [vmem:[#allocation5 + $0x1d48] sm:$0xff] %v5073_v20  ;;  %4033 = vst [vmem:[#allocation5 + $0x1d50] sm:$0xff] %v5074_v21  ;;  %v5079_v32 = vclamps-f32 %v966_v29, 1.0  ;;  %v5080_v33 = vclamps-f32 %v967_v30, 1.0  ;;  %v968_v34 = vld [vmem:[#allocation2 + $0x1d88] sm:$0xff]  ;;  %v969_v35 = vld [vmem:[#allocation2 + $0x1d90] sm:$0xff] }
 0x1ec   :  { %v970_v36 = vld [vmem:[#allocation2 + $0x1d98] sm:$0xff]  ;;  %4034 = vst [vmem:[#allocation5 + $0x1d58] sm:$0xff] %v5075_v25  ;;  %4035 = vst [vmem:[#allocation5 + $0x1d60] sm:$0xff] %v5076_v26  ;;  %v5081_v37 = vclamps-f32 %v968_v34, 1.0  ;;  %v5082_v38 = vclamps-f32 %v969_v35, 1.0  ;;  %v971_v40 = vld [vmem:[#allocation2 + $0x1da0] sm:$0xff] }
 0x1ed   :  { %4036 = vst [vmem:[#allocation5 + $0x1d68] sm:$0xff] %v5077_v27  ;;  %v5083_v39 = vclamps-f32 %v970_v36, 1.0  ;;  %v972_v41 = vld [vmem:[#allocation2 + $0x1da8] sm:$0xff]  ;;  %v973_v42 = vld [vmem:[#allocation2 + $0x1db0] sm:$0xff]  ;;  %4037 = vst [vmem:[#allocation5 + $0x1d70] sm:$0xff] %v5078_v31  ;;  %v5084_v43 = vclamps-f32 %v971_v40, 1.0 }
 0x1ee   :  { %4038 = vst [vmem:[#allocation5 + $0x1d78] sm:$0xff] %v5079_v32  ;;  %4039 = vst [vmem:[#allocation5 + $0x1d80] sm:$0xff] %v5080_v33  ;;  %v5085_v44 = vclamps-f32 %v972_v41, 1.0  ;;  %v5086_v45 = vclamps-f32 %v973_v42, 1.0  ;;  %v974_v46 = vld [vmem:[#allocation2 + $0x1db8] sm:$0xff]  ;;  %v975_v47 = vld [vmem:[#allocation2 + $0x1dc0] sm:$0xff] }
 0x1ef   :  { %v976_v48 = vld [vmem:[#allocation2 + $0x1dc8] sm:$0xff]  ;;  %4040 = vst [vmem:[#allocation5 + $0x1d88] sm:$0xff] %v5081_v37  ;;  %4041 = vst [vmem:[#allocation5 + $0x1d90] sm:$0xff] %v5082_v38  ;;  %v5087_v49 = vclamps-f32 %v974_v46, 1.0  ;;  %v5088_v50 = vclamps-f32 %v975_v47, 1.0  ;;  %v977_v52 = vld [vmem:[#allocation2 + $0x1dd0] sm:$0xff] }
 0x1f0   :  { %4042 = vst [vmem:[#allocation5 + $0x1d98] sm:$0xff] %v5083_v39  ;;  %v5089_v51 = vclamps-f32 %v976_v48, 1.0  ;;  %v978_v53 = vld [vmem:[#allocation2 + $0x1dd8] sm:$0xff]  ;;  %v979_v54 = vld [vmem:[#allocation2 + $0x1de0] sm:$0xff]  ;;  %4043 = vst [vmem:[#allocation5 + $0x1da0] sm:$0xff] %v5084_v43  ;;  %v5090_v55 = vclamps-f32 %v977_v52, 1.0 }
 0x1f1   :  { %4044 = vst [vmem:[#allocation5 + $0x1da8] sm:$0xff] %v5085_v44  ;;  %4045 = vst [vmem:[#allocation5 + $0x1db0] sm:$0xff] %v5086_v45  ;;  %v5091_v56 = vclamps-f32 %v978_v53, 1.0  ;;  %v5092_v57 = vclamps-f32 %v979_v54, 1.0  ;;  %v980_v58 = vld [vmem:[#allocation2 + $0x1de8] sm:$0xff]  ;;  %v981_v59 = vld [vmem:[#allocation2 + $0x1df0] sm:$0xff] }
 0x1f2   :  { %v982_v60 = vld [vmem:[#allocation2 + $0x1df8] sm:$0xff]  ;;  %4046 = vst [vmem:[#allocation5 + $0x1db8] sm:$0xff] %v5087_v49  ;;  %4047 = vst [vmem:[#allocation5 + $0x1dc0] sm:$0xff] %v5088_v50  ;;  %v5093_v61 = vclamps-f32 %v980_v58, 1.0  ;;  %v5094_v62 = vclamps-f32 %v981_v59, 1.0  ;;  %v983_v0 = vld [vmem:[#allocation2 + $0x1e00] sm:$0xff] }
 0x1f3   :  { %4048 = vst [vmem:[#allocation5 + $0x1dc8] sm:$0xff] %v5089_v51  ;;  %v5095_v63 = vclamps-f32 %v982_v60, 1.0  ;;  %v984_v1 = vld [vmem:[#allocation2 + $0x1e08] sm:$0xff]  ;;  %v985_v2 = vld [vmem:[#allocation2 + $0x1e10] sm:$0xff]  ;;  %4049 = vst [vmem:[#allocation5 + $0x1dd0] sm:$0xff] %v5090_v55  ;;  %v5096_v3 = vclamps-f32 %v983_v0, 1.0 }
 0x1f4   :  { %4050 = vst [vmem:[#allocation5 + $0x1dd8] sm:$0xff] %v5091_v56  ;;  %4051 = vst [vmem:[#allocation5 + $0x1de0] sm:$0xff] %v5092_v57  ;;  %v5097_v4 = vclamps-f32 %v984_v1, 1.0  ;;  %v5098_v5 = vclamps-f32 %v985_v2, 1.0  ;;  %v986_v6 = vld [vmem:[#allocation2 + $0x1e18] sm:$0xff]  ;;  %v987_v7 = vld [vmem:[#allocation2 + $0x1e20] sm:$0xff] }
 0x1f5   :  { %v988_v8 = vld [vmem:[#allocation2 + $0x1e28] sm:$0xff]  ;;  %4052 = vst [vmem:[#allocation5 + $0x1de8] sm:$0xff] %v5093_v61  ;;  %4053 = vst [vmem:[#allocation5 + $0x1df0] sm:$0xff] %v5094_v62  ;;  %v5099_v9 = vclamps-f32 %v986_v6, 1.0  ;;  %v5100_v10 = vclamps-f32 %v987_v7, 1.0  ;;  %v989_v12 = vld [vmem:[#allocation2 + $0x1e30] sm:$0xff] }
 0x1f6   :  { %4054 = vst [vmem:[#allocation5 + $0x1df8] sm:$0xff] %v5095_v63  ;;  %v5101_v11 = vclamps-f32 %v988_v8, 1.0  ;;  %v990_v13 = vld [vmem:[#allocation2 + $0x1e38] sm:$0xff]  ;;  %v991_v14 = vld [vmem:[#allocation2 + $0x1e40] sm:$0xff]  ;;  %4055 = vst [vmem:[#allocation5 + $0x1e00] sm:$0xff] %v5096_v3  ;;  %v5102_v15 = vclamps-f32 %v989_v12, 1.0 }
 0x1f7   :  { %4056 = vst [vmem:[#allocation5 + $0x1e08] sm:$0xff] %v5097_v4  ;;  %4057 = vst [vmem:[#allocation5 + $0x1e10] sm:$0xff] %v5098_v5  ;;  %v5103_v16 = vclamps-f32 %v990_v13, 1.0  ;;  %v5104_v17 = vclamps-f32 %v991_v14, 1.0  ;;  %v992_v18 = vld [vmem:[#allocation2 + $0x1e48] sm:$0xff]  ;;  %v993_v19 = vld [vmem:[#allocation2 + $0x1e50] sm:$0xff] }
 0x1f8   :  { %v994_v20 = vld [vmem:[#allocation2 + $0x1e58] sm:$0xff]  ;;  %4058 = vst [vmem:[#allocation5 + $0x1e18] sm:$0xff] %v5099_v9  ;;  %4059 = vst [vmem:[#allocation5 + $0x1e20] sm:$0xff] %v5100_v10  ;;  %v5105_v21 = vclamps-f32 %v992_v18, 1.0  ;;  %v5106_v22 = vclamps-f32 %v993_v19, 1.0  ;;  %v995_v24 = vld [vmem:[#allocation2 + $0x1e60] sm:$0xff] }
 0x1f9   :  { %4060 = vst [vmem:[#allocation5 + $0x1e28] sm:$0xff] %v5101_v11  ;;  %v5107_v23 = vclamps-f32 %v994_v20, 1.0  ;;  %v996_v25 = vld [vmem:[#allocation2 + $0x1e68] sm:$0xff]  ;;  %v997_v26 = vld [vmem:[#allocation2 + $0x1e70] sm:$0xff]  ;;  %4061 = vst [vmem:[#allocation5 + $0x1e30] sm:$0xff] %v5102_v15  ;;  %v5108_v27 = vclamps-f32 %v995_v24, 1.0 }
 0x1fa   :  { %4062 = vst [vmem:[#allocation5 + $0x1e38] sm:$0xff] %v5103_v16  ;;  %4063 = vst [vmem:[#allocation5 + $0x1e40] sm:$0xff] %v5104_v17  ;;  %v5109_v28 = vclamps-f32 %v996_v25, 1.0  ;;  %v5110_v29 = vclamps-f32 %v997_v26, 1.0  ;;  %v998_v30 = vld [vmem:[#allocation2 + $0x1e78] sm:$0xff]  ;;  %v999_v31 = vld [vmem:[#allocation2 + $0x1e80] sm:$0xff] }
 0x1fb   :  { %v1000_v32 = vld [vmem:[#allocation2 + $0x1e88] sm:$0xff]  ;;  %4064 = vst [vmem:[#allocation5 + $0x1e48] sm:$0xff] %v5105_v21  ;;  %4065 = vst [vmem:[#allocation5 + $0x1e50] sm:$0xff] %v5106_v22  ;;  %v5111_v33 = vclamps-f32 %v998_v30, 1.0  ;;  %v5112_v34 = vclamps-f32 %v999_v31, 1.0  ;;  %v1001_v36 = vld [vmem:[#allocation2 + $0x1e90] sm:$0xff] }
 0x1fc   :  { %4066 = vst [vmem:[#allocation5 + $0x1e58] sm:$0xff] %v5107_v23  ;;  %v5113_v35 = vclamps-f32 %v1000_v32, 1.0  ;;  %v1002_v37 = vld [vmem:[#allocation2 + $0x1e98] sm:$0xff]  ;;  %v1003_v38 = vld [vmem:[#allocation2 + $0x1ea0] sm:$0xff]  ;;  %4067 = vst [vmem:[#allocation5 + $0x1e60] sm:$0xff] %v5108_v27  ;;  %v5114_v39 = vclamps-f32 %v1001_v36, 1.0 }
 0x1fd   :  { %4068 = vst [vmem:[#allocation5 + $0x1e68] sm:$0xff] %v5109_v28  ;;  %4069 = vst [vmem:[#allocation5 + $0x1e70] sm:$0xff] %v5110_v29  ;;  %v5115_v40 = vclamps-f32 %v1002_v37, 1.0  ;;  %v5116_v41 = vclamps-f32 %v1003_v38, 1.0  ;;  %v1004_v42 = vld [vmem:[#allocation2 + $0x1ea8] sm:$0xff]  ;;  %v1005_v43 = vld [vmem:[#allocation2 + $0x1eb0] sm:$0xff] }
 0x1fe   :  { %v1006_v44 = vld [vmem:[#allocation2 + $0x1eb8] sm:$0xff]  ;;  %4070 = vst [vmem:[#allocation5 + $0x1e78] sm:$0xff] %v5111_v33  ;;  %4071 = vst [vmem:[#allocation5 + $0x1e80] sm:$0xff] %v5112_v34  ;;  %v5117_v45 = vclamps-f32 %v1004_v42, 1.0  ;;  %v5118_v46 = vclamps-f32 %v1005_v43, 1.0  ;;  %v1007_v48 = vld [vmem:[#allocation2 + $0x1ec0] sm:$0xff] }
 0x1ff   :  { %4072 = vst [vmem:[#allocation5 + $0x1e88] sm:$0xff] %v5113_v35  ;;  %v5119_v47 = vclamps-f32 %v1006_v44, 1.0  ;;  %v1008_v49 = vld [vmem:[#allocation2 + $0x1ec8] sm:$0xff]  ;;  %v1009_v50 = vld [vmem:[#allocation2 + $0x1ed0] sm:$0xff]  ;;  %4073 = vst [vmem:[#allocation5 + $0x1e90] sm:$0xff] %v5114_v39  ;;  %v5120_v51 = vclamps-f32 %v1007_v48, 1.0 }
 0x200   :  { %4074 = vst [vmem:[#allocation5 + $0x1e98] sm:$0xff] %v5115_v40  ;;  %4075 = vst [vmem:[#allocation5 + $0x1ea0] sm:$0xff] %v5116_v41  ;;  %v5121_v52 = vclamps-f32 %v1008_v49, 1.0  ;;  %v5122_v53 = vclamps-f32 %v1009_v50, 1.0  ;;  %v1010_v54 = vld [vmem:[#allocation2 + $0x1ed8] sm:$0xff]  ;;  %v1011_v55 = vld [vmem:[#allocation2 + $0x1ee0] sm:$0xff] }
 0x201   :  { %v1012_v56 = vld [vmem:[#allocation2 + $0x1ee8] sm:$0xff]  ;;  %4076 = vst [vmem:[#allocation5 + $0x1ea8] sm:$0xff] %v5117_v45  ;;  %4077 = vst [vmem:[#allocation5 + $0x1eb0] sm:$0xff] %v5118_v46  ;;  %v5123_v57 = vclamps-f32 %v1010_v54, 1.0  ;;  %v5124_v58 = vclamps-f32 %v1011_v55, 1.0  ;;  %v1013_v60 = vld [vmem:[#allocation2 + $0x1ef0] sm:$0xff] }
 0x202   :  { %4078 = vst [vmem:[#allocation5 + $0x1eb8] sm:$0xff] %v5119_v47  ;;  %v5125_v59 = vclamps-f32 %v1012_v56, 1.0  ;;  %v1014_v61 = vld [vmem:[#allocation2 + $0x1ef8] sm:$0xff]  ;;  %v1015_v62 = vld [vmem:[#allocation2 + $0x1f00] sm:$0xff]  ;;  %4079 = vst [vmem:[#allocation5 + $0x1ec0] sm:$0xff] %v5120_v51  ;;  %v5126_v63 = vclamps-f32 %v1013_v60, 1.0 }
 0x203   :  { %4080 = vst [vmem:[#allocation5 + $0x1ec8] sm:$0xff] %v5121_v52  ;;  %4081 = vst [vmem:[#allocation5 + $0x1ed0] sm:$0xff] %v5122_v53  ;;  %v5127_v0 = vclamps-f32 %v1014_v61, 1.0  ;;  %v5128_v1 = vclamps-f32 %v1015_v62, 1.0  ;;  %v1016_v2 = vld [vmem:[#allocation2 + $0x1f08] sm:$0xff]  ;;  %v1017_v3 = vld [vmem:[#allocation2 + $0x1f10] sm:$0xff] }
 0x204   :  { %v1018_v4 = vld [vmem:[#allocation2 + $0x1f18] sm:$0xff]  ;;  %4082 = vst [vmem:[#allocation5 + $0x1ed8] sm:$0xff] %v5123_v57  ;;  %4083 = vst [vmem:[#allocation5 + $0x1ee0] sm:$0xff] %v5124_v58  ;;  %v5129_v5 = vclamps-f32 %v1016_v2, 1.0  ;;  %v5130_v6 = vclamps-f32 %v1017_v3, 1.0  ;;  %v1019_v8 = vld [vmem:[#allocation2 + $0x1f20] sm:$0xff] }
 0x205   :  { %4084 = vst [vmem:[#allocation5 + $0x1ee8] sm:$0xff] %v5125_v59  ;;  %v5131_v7 = vclamps-f32 %v1018_v4, 1.0  ;;  %v1020_v9 = vld [vmem:[#allocation2 + $0x1f28] sm:$0xff]  ;;  %v1021_v10 = vld [vmem:[#allocation2 + $0x1f30] sm:$0xff]  ;;  %4085 = vst [vmem:[#allocation5 + $0x1ef0] sm:$0xff] %v5126_v63  ;;  %v5132_v11 = vclamps-f32 %v1019_v8, 1.0 }
 0x206   :  { %4086 = vst [vmem:[#allocation5 + $0x1ef8] sm:$0xff] %v5127_v0  ;;  %4087 = vst [vmem:[#allocation5 + $0x1f00] sm:$0xff] %v5128_v1  ;;  %v5133_v12 = vclamps-f32 %v1020_v9, 1.0  ;;  %v5134_v13 = vclamps-f32 %v1021_v10, 1.0  ;;  %v1022_v14 = vld [vmem:[#allocation2 + $0x1f38] sm:$0xff]  ;;  %v1023_v15 = vld [vmem:[#allocation2 + $0x1f40] sm:$0xff] }
 0x207   :  { %v1024_v16 = vld [vmem:[#allocation2 + $0x1f48] sm:$0xff]  ;;  %4088 = vst [vmem:[#allocation5 + $0x1f08] sm:$0xff] %v5129_v5  ;;  %4089 = vst [vmem:[#allocation5 + $0x1f10] sm:$0xff] %v5130_v6  ;;  %v5135_v17 = vclamps-f32 %v1022_v14, 1.0  ;;  %v5136_v18 = vclamps-f32 %v1023_v15, 1.0  ;;  %v1025_v20 = vld [vmem:[#allocation2 + $0x1f50] sm:$0xff] }
 0x208   :  { %4090 = vst [vmem:[#allocation5 + $0x1f18] sm:$0xff] %v5131_v7  ;;  %v5137_v19 = vclamps-f32 %v1024_v16, 1.0  ;;  %v1026_v21 = vld [vmem:[#allocation2 + $0x1f58] sm:$0xff]  ;;  %v1027_v22 = vld [vmem:[#allocation2 + $0x1f60] sm:$0xff]  ;;  %4091 = vst [vmem:[#allocation5 + $0x1f20] sm:$0xff] %v5132_v11  ;;  %v5138_v23 = vclamps-f32 %v1025_v20, 1.0 }
 0x209   :  { %4092 = vst [vmem:[#allocation5 + $0x1f28] sm:$0xff] %v5133_v12  ;;  %4093 = vst [vmem:[#allocation5 + $0x1f30] sm:$0xff] %v5134_v13  ;;  %v5139_v24 = vclamps-f32 %v1026_v21, 1.0  ;;  %v5140_v25 = vclamps-f32 %v1027_v22, 1.0  ;;  %v1028_v26 = vld [vmem:[#allocation2 + $0x1f68] sm:$0xff]  ;;  %v1029_v27 = vld [vmem:[#allocation2 + $0x1f70] sm:$0xff] }
 0x20a   :  { %v1030_v28 = vld [vmem:[#allocation2 + $0x1f78] sm:$0xff]  ;;  %4094 = vst [vmem:[#allocation5 + $0x1f38] sm:$0xff] %v5135_v17  ;;  %4095 = vst [vmem:[#allocation5 + $0x1f40] sm:$0xff] %v5136_v18  ;;  %v5141_v29 = vclamps-f32 %v1028_v26, 1.0  ;;  %v5142_v30 = vclamps-f32 %v1029_v27, 1.0  ;;  %v1031_v32 = vld [vmem:[#allocation2 + $0x1f80] sm:$0xff] }
 0x20b   :  { %4096 = vst [vmem:[#allocation5 + $0x1f48] sm:$0xff] %v5137_v19  ;;  %v5143_v31 = vclamps-f32 %v1030_v28, 1.0  ;;  %v1032_v33 = vld [vmem:[#allocation2 + $0x1f88] sm:$0xff]  ;;  %v1033_v34 = vld [vmem:[#allocation2 + $0x1f90] sm:$0xff]  ;;  %4097 = vst [vmem:[#allocation5 + $0x1f50] sm:$0xff] %v5138_v23  ;;  %v5144_v35 = vclamps-f32 %v1031_v32, 1.0 }
 0x20c   :  { %4098 = vst [vmem:[#allocation5 + $0x1f58] sm:$0xff] %v5139_v24  ;;  %4099 = vst [vmem:[#allocation5 + $0x1f60] sm:$0xff] %v5140_v25  ;;  %v5145_v36 = vclamps-f32 %v1032_v33, 1.0  ;;  %v5146_v37 = vclamps-f32 %v1033_v34, 1.0  ;;  %v1034_v38 = vld [vmem:[#allocation2 + $0x1f98] sm:$0xff]  ;;  %v1035_v39 = vld [vmem:[#allocation2 + $0x1fa0] sm:$0xff] }
 0x20d   :  { %v1036_v40 = vld [vmem:[#allocation2 + $0x1fa8] sm:$0xff]  ;;  %4100 = vst [vmem:[#allocation5 + $0x1f68] sm:$0xff] %v5141_v29  ;;  %4101 = vst [vmem:[#allocation5 + $0x1f70] sm:$0xff] %v5142_v30  ;;  %v5147_v41 = vclamps-f32 %v1034_v38, 1.0  ;;  %v5148_v42 = vclamps-f32 %v1035_v39, 1.0  ;;  %v1037_v44 = vld [vmem:[#allocation2 + $0x1fb0] sm:$0xff] }
 0x20e   :  { %4102 = vst [vmem:[#allocation5 + $0x1f78] sm:$0xff] %v5143_v31  ;;  %v5149_v43 = vclamps-f32 %v1036_v40, 1.0  ;;  %v1038_v45 = vld [vmem:[#allocation2 + $0x1fb8] sm:$0xff]  ;;  %v1039_v46 = vld [vmem:[#allocation2 + $0x1fc0] sm:$0xff]  ;;  %4103 = vst [vmem:[#allocation5 + $0x1f80] sm:$0xff] %v5144_v35  ;;  %v5150_v47 = vclamps-f32 %v1037_v44, 1.0 }
 0x20f   :  { %4104 = vst [vmem:[#allocation5 + $0x1f88] sm:$0xff] %v5145_v36  ;;  %4105 = vst [vmem:[#allocation5 + $0x1f90] sm:$0xff] %v5146_v37  ;;  %v5151_v48 = vclamps-f32 %v1038_v45, 1.0  ;;  %v5152_v49 = vclamps-f32 %v1039_v46, 1.0  ;;  %v1040_v50 = vld [vmem:[#allocation2 + $0x1fc8] sm:$0xff]  ;;  %v1041_v51 = vld [vmem:[#allocation2 + $0x1fd0] sm:$0xff] }
 0x210   :  { %v1042_v52 = vld [vmem:[#allocation2 + $0x1fd8] sm:$0xff]  ;;  %4106 = vst [vmem:[#allocation5 + $0x1f98] sm:$0xff] %v5147_v41  ;;  %4107 = vst [vmem:[#allocation5 + $0x1fa0] sm:$0xff] %v5148_v42  ;;  %v5153_v53 = vclamps-f32 %v1040_v50, 1.0  ;;  %v5154_v54 = vclamps-f32 %v1041_v51, 1.0  ;;  %v1043_v56 = vld [vmem:[#allocation2 + $0x1fe0] sm:$0xff] }
 0x211   :  { %4108 = vst [vmem:[#allocation5 + $0x1fa8] sm:$0xff] %v5149_v43  ;;  %v5155_v55 = vclamps-f32 %v1042_v52, 1.0  ;;  %v1044_v57 = vld [vmem:[#allocation2 + $0x1fe8] sm:$0xff]  ;;  %v1045_v58 = vld [vmem:[#allocation2 + $0x1ff0] sm:$0xff]  ;;  %4109 = vst [vmem:[#allocation5 + $0x1fb0] sm:$0xff] %v5150_v47  ;;  %v5156_v59 = vclamps-f32 %v1043_v56, 1.0 }
 0x212   :  { %4110 = vst [vmem:[#allocation5 + $0x1fb8] sm:$0xff] %v5151_v48  ;;  %4111 = vst [vmem:[#allocation5 + $0x1fc0] sm:$0xff] %v5152_v49  ;;  %v5157_v60 = vclamps-f32 %v1044_v57, 1.0  ;;  %v5158_v61 = vclamps-f32 %v1045_v58, 1.0  ;;  %v1046_v62 = vld [vmem:[#allocation2 + $0x1ff8] sm:$0xff] }
 0x213   :  { %4112 = vst [vmem:[#allocation5 + $0x1fc8] sm:$0xff] %v5153_v53  ;;  %4113 = vst [vmem:[#allocation5 + $0x1fd0] sm:$0xff] %v5154_v54  ;;  %v5159_v63 = vclamps-f32 %v1046_v62, 1.0 }
 0x214   :  { %4114 = vst [vmem:[#allocation5 + $0x1fd8] sm:$0xff] %v5155_v55  ;;  %4115 = vst [vmem:[#allocation5 + $0x1fe0] sm:$0xff] %v5156_v59 }
 0x215   :  { %4116 = vst [vmem:[#allocation5 + $0x1fe8] sm:$0xff] %v5157_v60  ;;  %4117 = vst [vmem:[#allocation5 + $0x1ff0] sm:$0xff] %v5158_v61 }
 0x216   :  { %4118 = vst [vmem:[#allocation5 + $0x1ff8] sm:$0xff] %v5159_v63 }
 0x217   :  { %5197 = shalt.err (!%p5194_p12)
}
 0x218   :  { %s5198_s24 = scalar_lea.hbm %s5257_s1, 131072 }
 0x219   :  { %p5199_p13 = scmp.ne.s32.totalorder %s5257_s1, %s5198_s24  ;;  %p5202_p0 = scmp.lt.u32.totalorder %s5198_s24, %s5257_s1 }
 0x21b   :  { %p5204_p1 = pnand %p5202_p0, %p5199_p13 }
 0x21d   :  { %5207 = shalt.err (!%p5204_p1)
}
 0x21e   :  { %4130 = dma.vmem_to_hbm [thread:$0]  %s4125_s20, 131072, %s5257_s1, [#allocation4], %s5213_s16, %s5213_s16, %s5214_s17  }
 0x21f   :  { %5210 = dma.done.wait [#allocation4], 131072  }
 0x220   :  { %5211 = vsyncadd [#allocation4], 4294836224 }
 0x221   :  { %4134 = vsyncpa [#allocation3], 1 }
 0x222   :  { %4135 = vsyncpa [#allocation4], 1 }

</bundles_post_ra>
